<compile_context>
chip_gen: v6e
topology: v6e:2x2x1
jax: 0.10.0
libtpu: 0.0.40
codegen_flags: <defaults>
</compile_context>

<pallas_src>
import functools
import math

import jax
import jax.numpy as jnp
from jax import lax
from jax.experimental import pallas as pl
from jax.experimental.pallas import tpu as pltpu

BN_EPS = 1e-5


# ---------------------------------------------------------------------------
# Weight packing: ConvTranspose2d(k=3, s=2, p=1, op=1) -> 6 per-tap matrices.
#
#   out[2r+0, 2c+pw] = x[r, c  ] @ W0[pw] + x[r, c+1] @ W1[pw]
#   out[2r+1, 2c+pw] = x[r, c  ] @ W2[pw] + x[r, c+1] @ W3[pw]
#                    + x[r+1,c ] @ W4[pw] + x[r+1,c+1] @ W5[pw]
#
# Each packed matrix is (Cin, 2*Cout) with columns ordered [pw=0 | pw=1].
# ---------------------------------------------------------------------------
def _pack_tap_weights(w_t, dtype):
    cin, cout = w_t.shape[0], w_t.shape[1]
    # spatially flipped kernel: wf[kh, kw] = w_t[:, :, 2-kh, 2-kw]  (Cin, Cout)
    wf = jnp.transpose(w_t[:, :, ::-1, ::-1], (2, 3, 0, 1)).astype(jnp.float32)
    z = jnp.zeros((cin, cout), jnp.float32)

    def cols(pw0, pw1):
        return jnp.concatenate([pw0, pw1], axis=1)          # (Cin, 2*Cout)

    w6 = jnp.stack([
        cols(wf[1, 1], wf[1, 0]),   # oh even, tap x[r,   c  ]
        cols(z,        wf[1, 2]),   # oh even, tap x[r,   c+1]
        cols(wf[0, 1], wf[0, 0]),   # oh odd,  tap x[r,   c  ]
        cols(z,        wf[0, 2]),   # oh odd,  tap x[r,   c+1]
        cols(wf[2, 1], wf[2, 0]),   # oh odd,  tap x[r+1, c  ]
        cols(z,        wf[2, 2]),   # oh odd,  tap x[r+1, c+1]
    ], axis=0)                      # (6, Cin, 2*Cout)
    return w6.astype(dtype)


# ---------------------------------------------------------------------------
# Shared tile body: build the 4 taps in-kernel (tile + 1-row halo) and run the
# 6 sub-pixel matmuls (bf16 operands, f32 accumulation).
# ---------------------------------------------------------------------------
def _phase_matmuls(x_ref, h_ref, w_ref, *, tm, W, Cin):
    tmW = tm * W
    t00 = x_ref[0, :, 0:W, :].reshape(tmW, Cin)          # x[r,   c  ]
    t01 = x_ref[0, :, 1:W + 1, :].reshape(tmW, Cin)      # x[r,   c+1]
    if tm > 1:
        t10 = jnp.concatenate(
            [x_ref[0, 1:tm, 0:W, :], h_ref[0, :, 0:W, :]], axis=0
        ).reshape(tmW, Cin)                              # x[r+1, c  ]
        t11 = jnp.concatenate(
            [x_ref[0, 1:tm, 1:W + 1, :], h_ref[0, :, 1:W + 1, :]], axis=0
        ).reshape(tmW, Cin)                              # x[r+1, c+1]
    else:
        t10 = h_ref[0, :, 0:W, :].reshape(tmW, Cin)
        t11 = h_ref[0, :, 1:W + 1, :].reshape(tmW, Cin)

    def mm(a, k):
        return jnp.dot(a, w_ref[k], preferred_element_type=jnp.float32)

    y0 = mm(t00, 0) + mm(t01, 1)                             # even output rows
    y1 = mm(t00, 2) + mm(t01, 3) + mm(t10, 4) + mm(t11, 5)   # odd output rows
    return y0, y1                                            # (tm*W, 2*Cout) f32


# ---------------------------------------------------------------------------
# Pass 1: per-tile centered BatchNorm partials (sum + M2) per row-phase.
# ---------------------------------------------------------------------------
def _stats_kernel(x_ref, h_ref, w_ref, stats_ref, *, tm, W, Cin, H):
    y0, y1 = _phase_matmuls(x_ref, h_ref, w_ref, tm=tm, W=W, Cin=Cin)

    i = pl.program_id(1)
    valid = jnp.minimum(tm, H - i * tm) * W          # valid flattened rows
    rows = lax.broadcasted_iota(jnp.int32, (tm * W, 1), 0)
    mask = rows < valid
    n = valid.astype(jnp.float32)

    y0m = jnp.where(mask, y0, 0.0)
    y1m = jnp.where(mask, y1, 0.0)
    s0 = jnp.sum(y0m, axis=0, keepdims=True)         # (1, 2*Cout)
    s1 = jnp.sum(y1m, axis=0, keepdims=True)
    mu0 = s0 / n
    mu1 = s1 / n
    d0 = jnp.where(mask, y0 - mu0, 0.0)
    d1 = jnp.where(mask, y1 - mu1, 0.0)
    m20 = jnp.sum(d0 * d0, axis=0, keepdims=True)
    m21 = jnp.sum(d1 * d1, axis=0, keepdims=True)

    stats_ref[0, 0] = jnp.concatenate([s0, s1, m20, m21], axis=0)   # (4, 2*Cout)


# ---------------------------------------------------------------------------
# Pass 2: recompute the sub-pixel conv with the BN affine applied and write the
# final output (no output-sized intermediate ever hits HBM).
# ---------------------------------------------------------------------------
def _output_kernel(x_ref, h_ref, w_ref, scale_ref, shift_ref, o_ref, *, tm, W, Cin):
    y0, y1 = _phase_matmuls(x_ref, h_ref, w_ref, tm=tm, W=W, Cin=Cin)
    sc = scale_ref[...]                               # (1, 2*Cout)
    sh = shift_ref[...]
    c2 = sc.shape[-1]
    o_ref[0, :, 0, :, :] = (y0 * sc + sh).reshape(tm, W, c2)
    o_ref[0, :, 1, :, :] = (y1 * sc + sh).reshape(tm, W, c2)


# ---------------------------------------------------------------------------
# Generation-aware tile sizing.
# ---------------------------------------------------------------------------
def _vmem_capacity_bytes():
    try:
        return int(pltpu.get_tpu_info().vmem_capacity_bytes)
    except Exception:
        return 64 * 1024 * 1024          # conservative: v7x per-TensorCore VMEM


def _pick_tile_rows(B, H, W, Cin, Cout, vmem_bytes):
    budget = vmem_bytes // 2             # headroom for pipelining / compiler scratch
    in_row = 2 * (W + 1) * Cin * 2                       # double-buffered bf16 input
    out_row = 2 * 2 * W * (2 * Cout) * 4                 # double-buffered f32 output
    live_row = 4 * W * Cin * 2 + 2 * W * (2 * Cout) * 4  # taps + y0/y1 live values
    fixed = (2 * 6 * Cin * (2 * Cout) * 2                # weights (double-buffered)
             + 2 * (W + 1) * Cin * 2                     # halo row
             + 8 * (2 * Cout) * 4)                       # stats / scale / shift
    rows = max(1, (budget - fixed) // (in_row + out_row + live_row))
    if rows >= 8:
        rows = (rows // 8) * 8
    rows = int(min(H, rows))
    if B == 1 and H >= 16:
        rows = min(rows, -(-H // 2))     # keep >=2 row tiles so megacore can shard
    return max(1, rows)


# ---------------------------------------------------------------------------
# Wrapper.
# ---------------------------------------------------------------------------
def upsampling_layer(x, w_t, bias, gamma, beta, *, tile_rows=None,
                     compute_dtype=jnp.bfloat16):
    """Forward pass of CFPFormer's UpsamplingLayer.

    x     : (B, H, W, Cin) float32
    w_t   : (Cin, Cout, 3, 3)  ConvTranspose2d weight (PyTorch layout)
    bias  : (Cout,)            ConvTranspose2d bias (cancelled by BN, unused)
    gamma, beta : (Cout,)      BatchNorm2d affine parameters
    returns (B, 2H, 2W, Cout) float32
    """
    B, H, W, Cin = x.shape
    Cin2, Cout, KH, KW = w_t.shape
    assert Cin == Cin2 and KH == 3 and KW == 3
    Ho, Wo = 2 * H, 2 * W

    vmem_cap = _vmem_capacity_bytes()
    if tile_rows is None:
        tile_rows = _pick_tile_rows(B, H, W, Cin, Cout, vmem_cap)
    tm = int(min(max(1, int(tile_rows)), H))
    grid_h = -(-H // tm)                 # cdiv: ragged last tile handled in-kernel
    grid = (B, grid_h)

    # The conv bias is exactly cancelled by the BN mean subtraction (training-
    # mode batch statistics); it would only affect the un-modeled running_mean.
    del bias

    w6 = _pack_tap_weights(w_t, compute_dtype)           # (6, Cin, 2*Cout)
    # One zero row/col of padding per image covers the x[r+1]/x[c+1] edge taps.
    # This bf16 pad is the ONLY extra HBM copy of the input (no patches array).
    xp = jnp.pad(x, ((0, 0), (0, 1), (0, 1), (0, 0))).astype(compute_dtype)

    xp_spec = pl.BlockSpec((1, tm, W + 1, Cin), lambda b, i: (b, i, 0, 0))
    # Row halo: element row (i+1)*tm of the padded image (the zero pad row for
    # the last tile).  H-block size 1 => the index map value IS the row offset,
    # so the halo is DMA'd straight from xp (no separate halo array).
    halo_spec = pl.BlockSpec((1, 1, W + 1, Cin),
                             lambda b, i: (b, jnp.minimum((i + 1) * tm, H), 0, 0))
    w_spec = pl.BlockSpec((6, Cin, 2 * Cout), lambda b, i: (0, 0, 0))

    vmem_limit = int(min(vmem_cap * 0.85, 120 * 1024 * 1024))
    cparams = pltpu.CompilerParams(
        dimension_semantics=("parallel", "parallel"),
        vmem_limit_bytes=vmem_limit)

    conv_flops = 2 * B * H * W * 12 * Cin * Cout
    in_bytes = xp.size * 2 + w6.size * 2
    out_bytes = B * H * 2 * W * 2 * Cout * 4

    # ---- pass 1: fused sub-pixel conv -> per-tile centered BN partials -----
    stats = pl.pallas_call(
        functools.partial(_stats_kernel, tm=tm, W=W, Cin=Cin, H=H),
        grid=grid,
        in_specs=[xp_spec, halo_spec, w_spec],
        out_specs=pl.BlockSpec((1, 1, 4, 2 * Cout), lambda b, i: (b, i, 0, 0)),
        out_shape=jax.ShapeDtypeStruct((B, grid_h, 4, 2 * Cout), jnp.float32),
        compiler_params=cparams,
        cost_estimate=pl.CostEstimate(
            flops=conv_flops, transcendentals=0,
            bytes_accessed=in_bytes + B * grid_h * 8 * Cout * 4),
    )(xp, xp, w6)

    # ---- combine per-tile partials (parallel-variance formula), tiny XLA ---
    n_rows = jnp.minimum(tm, H - jnp.arange(grid_h) * tm).astype(jnp.float32)
    ng = (n_rows * W)[None, :, None, None, None]          # (1, grid_h, 1, 1, 1)
    N = float(B * Ho * Wo)
    sums = stats[:, :, 0:2, :].reshape(B, grid_h, 2, 2, Cout)   # (b,i,ph,pw,co)
    m2s = stats[:, :, 2:4, :].reshape(B, grid_h, 2, 2, Cout)
    mean = jnp.sum(sums, axis=(0, 1, 2, 3)) / N                 # (Cout,)
    mean_g = sums / ng
    m2 = (jnp.sum(m2s, axis=(0, 1, 2, 3))
          + jnp.sum(ng * (mean_g - mean) ** 2, axis=(0, 1, 2, 3)))
    var = m2 / N                                                # biased (training BN)
    inv_std = lax.rsqrt(var + BN_EPS)
    scale = gamma.astype(jnp.float32) * inv_std
    shift = beta.astype(jnp.float32) - mean * scale
    scale2 = jnp.tile(scale, 2).reshape(1, 2 * Cout)            # [pw=0 | pw=1] lanes
    shift2 = jnp.tile(shift, 2).reshape(1, 2 * Cout)

    # ---- pass 2: recompute conv with BN applied, write final output --------
    out = pl.pallas_call(
        functools.partial(_output_kernel, tm=tm, W=W, Cin=Cin),
        grid=grid,
        in_specs=[xp_spec, halo_spec, w_spec,
                  pl.BlockSpec((1, 2 * Cout), lambda b, i: (0, 0)),
                  pl.BlockSpec((1, 2 * Cout), lambda b, i: (0, 0))],
        out_specs=pl.BlockSpec((1, tm, 2, W, 2 * Cout),
                               lambda b, i: (b, i, 0, 0, 0)),
        out_shape=jax.ShapeDtypeStruct((B, H, 2, W, 2 * Cout), jnp.float32),
        compiler_params=cparams,
        cost_estimate=pl.CostEstimate(
            flops=conv_flops, transcendentals=0,
            bytes_accessed=in_bytes + out_bytes),
    )(xp, xp, w6, scale2, shift2)

    # (B, H, 2, W, 2*Cout) is (b, oh%2 split, ow%2*cout split) in row-major
    # order, so this reshape is free (no transpose, no extra HBM pass).
    # TODO(synk): BatchNorm2d running_mean/running_var buffer updates (stateful
    # training-time side effect) are not modeled; forward uses batch stats only.
    return out.reshape(B, Ho, Wo, Cout)


def _reference(x, w_t, bias, gamma, beta):
    """Pure-JAX reference (lhs-dilated conv == transposed conv) + BatchNorm."""
    x_nchw = jnp.transpose(x, (0, 3, 1, 2))
    w_oihw = jnp.transpose(w_t[:, :, ::-1, ::-1], (1, 0, 2, 3))
    y = lax.conv_general_dilated(
        x_nchw, w_oihw, window_strides=(1, 1),
        padding=((1, 2), (1, 2)), lhs_dilation=(2, 2),
        dimension_numbers=("NCHW", "OIHW", "NCHW"))
    y = y + bias[None, :, None, None]
    mean = jnp.mean(y, axis=(0, 2, 3), keepdims=True)
    var = jnp.mean((y - mean) ** 2, axis=(0, 2, 3), keepdims=True)
    y = (y - mean) / jnp.sqrt(var + BN_EPS)
    y = y * gamma[None, :, None, None] + beta[None, :, None, None]
    return jnp.transpose(y, (0, 2, 3, 1))


if __name__ == "__main__":
    B, H, W = 2, 16, 16
    dim, out_dim = 4, 8

    key = jax.random.PRNGKey(0)
    kx, kw, kb = jax.random.split(key, 3)

    x = jax.random.normal(kx, (B, H, W, dim), jnp.float32)          # B H W C
    # ConvTranspose2d params: weight (in, out, kH, kW), bias (out,)
    fan = dim * 3 * 3
    bound = 1.0 / math.sqrt(fan)
    w_t = jax.random.uniform(kw, (dim, out_dim, 3, 3), jnp.float32, -bound, bound)
    bias = jax.random.uniform(kb, (out_dim,), jnp.float32, -bound, bound)
    # BatchNorm2d params (PyTorch init): gamma=1, beta=0
    gamma = jnp.ones((out_dim,), jnp.float32)
    beta = jnp.zeros((out_dim,), jnp.float32)

    # tile_rows=8 -> grid (2, 2): exercises the pipelined, multi-tile path and
    # both "parallel" grid axes.
    fwd = jax.jit(functools.partial(upsampling_layer, tile_rows=8))
    out = jax.block_until_ready(fwd(x, w_t, bias, gamma, beta))
    assert out.shape == (B, 2 * H, 2 * W, out_dim), out.shape

    # Tight check against a reference fed the same bf16-rounded operands the
    # MXU sees (both sides accumulate in f32).
    xq = x.astype(jnp.bfloat16).astype(jnp.float32)
    wq = w_t.astype(jnp.bfloat16).astype(jnp.float32)
    ref_q = _reference(xq, wq, bias, gamma, beta)
    err_q = float(jnp.abs(out - ref_q).max())
    assert jnp.allclose(out, ref_q, atol=2e-3, rtol=2e-3), err_q

    # Loose sanity check against the full-f32 module semantics (difference is
    # only the bf16 operand rounding of the MXU inputs).
    ref = _reference(x, w_t, bias, gamma, beta)
    err = float(jnp.abs(out - ref).max())
    assert jnp.allclose(out, ref, atol=8e-2, rtol=8e-2), err

    # Ragged tiling (16 rows, tile of 6 -> masked 4-row last tile) exercises
    # the cdiv grid + in-kernel masking path added per the review.
    fwd_ragged = jax.jit(functools.partial(upsampling_layer, tile_rows=6))
    out_r = jax.block_until_ready(fwd_ragged(x, w_t, bias, gamma, beta))
    err_r = float(jnp.abs(out_r - ref_q).max())
    assert jnp.allclose(out_r, ref_q, atol=2e-3, rtol=2e-3), err_r

    print("KERNEL_OK")
</pallas_src>

<mosaic_0001>
module attributes {stable_mosaic.version = 11 : i64} {
  func.func @_stats_kernel(%arg0: i32, %arg1: i32, %arg2: memref<1x8x17x4xbf16, #tpu.memory_space<vmem>>, %arg3: memref<1x1x17x4xbf16, #tpu.memory_space<vmem>>, %arg4: memref<6x4x16xbf16, #tpu.memory_space<vmem>>, %arg5: memref<1x1x4x16xf32, #tpu.memory_space<vmem>>) attributes {dimension_semantics = [#tpu.dimension_semantics<parallel>, #tpu.dimension_semantics<parallel>], iteration_bounds = array<i64: 2, 2>, scalar_prefetch = 0 : i64, scratch_operands = 0 : i64, tpu.core_type = #tpu.core_type<tc>, window_params = [{transform_indices = @transform_0, window_bounds = array<i64: 1, 8, 17, 4>}, {transform_indices = @transform_1, window_bounds = array<i64: 1, 1, 17, 4>}, {pipeline_mode = #tpu.pipeline_mode<synchronous>, transform_indices = @transform_2, window_bounds = array<i64: 6, 4, 16>}, {transform_indices = @transform_3, window_bounds = array<i64: 1, 1, 4, 16>}]} {
    %c0 = arith.constant 0 : index
    %c0_0 = arith.constant 0 : index
    %c0_1 = arith.constant 0 : index
    %c0_2 = arith.constant 0 : index
    %0 = vector.load %arg2[%c0, %c0_0, %c0_1, %c0_2] : memref<1x8x17x4xbf16, #tpu.memory_space<vmem>>, vector<1x8x16x4xbf16>
    %1 = vector.shape_cast %0 : vector<1x8x16x4xbf16> to vector<8x16x4xbf16>
    %2 = vector.shape_cast %1 : vector<8x16x4xbf16> to vector<128x4xbf16>
    %c0_3 = arith.constant 0 : index
    %c0_4 = arith.constant 0 : index
    %c1 = arith.constant 1 : index
    %c0_5 = arith.constant 0 : index
    %3 = vector.load %arg2[%c0_3, %c0_4, %c1, %c0_5] : memref<1x8x17x4xbf16, #tpu.memory_space<vmem>>, vector<1x8x16x4xbf16>
    %4 = vector.shape_cast %3 : vector<1x8x16x4xbf16> to vector<8x16x4xbf16>
    %5 = vector.shape_cast %4 : vector<8x16x4xbf16> to vector<128x4xbf16>
    %c0_6 = arith.constant 0 : index
    %c1_7 = arith.constant 1 : index
    %c0_8 = arith.constant 0 : index
    %c0_9 = arith.constant 0 : index
    %6 = vector.load %arg2[%c0_6, %c1_7, %c0_8, %c0_9] : memref<1x8x17x4xbf16, #tpu.memory_space<vmem>>, vector<1x7x16x4xbf16>
    %7 = vector.shape_cast %6 : vector<1x7x16x4xbf16> to vector<7x16x4xbf16>
    %c0_10 = arith.constant 0 : index
    %c0_11 = arith.constant 0 : index
    %c0_12 = arith.constant 0 : index
    %c0_13 = arith.constant 0 : index
    %8 = vector.load %arg3[%c0_10, %c0_11, %c0_12, %c0_13] : memref<1x1x17x4xbf16, #tpu.memory_space<vmem>>, vector<1x1x16x4xbf16>
    %9 = vector.shape_cast %8 : vector<1x1x16x4xbf16> to vector<1x16x4xbf16>
    %10 = tpu.concatenate %7, %9 in 0 : vector<7x16x4xbf16>, vector<1x16x4xbf16> -> vector<8x16x4xbf16>
    %11 = vector.shape_cast %10 : vector<8x16x4xbf16> to vector<128x4xbf16>
    %c0_14 = arith.constant 0 : index
    %c1_15 = arith.constant 1 : index
    %c1_16 = arith.constant 1 : index
    %c0_17 = arith.constant 0 : index
    %12 = vector.load %arg2[%c0_14, %c1_15, %c1_16, %c0_17] : memref<1x8x17x4xbf16, #tpu.memory_space<vmem>>, vector<1x7x16x4xbf16>
    %13 = vector.shape_cast %12 : vector<1x7x16x4xbf16> to vector<7x16x4xbf16>
    %c0_18 = arith.constant 0 : index
    %c0_19 = arith.constant 0 : index
    %c1_20 = arith.constant 1 : index
    %c0_21 = arith.constant 0 : index
    %14 = vector.load %arg3[%c0_18, %c0_19, %c1_20, %c0_21] : memref<1x1x17x4xbf16, #tpu.memory_space<vmem>>, vector<1x1x16x4xbf16>
    %15 = vector.shape_cast %14 : vector<1x1x16x4xbf16> to vector<1x16x4xbf16>
    %16 = tpu.concatenate %13, %15 in 0 : vector<7x16x4xbf16>, vector<1x16x4xbf16> -> vector<8x16x4xbf16>
    %17 = vector.shape_cast %16 : vector<8x16x4xbf16> to vector<128x4xbf16>
    %c0_22 = arith.constant 0 : index
    %c0_23 = arith.constant 0 : index
    %c0_24 = arith.constant 0 : index
    %18 = vector.load %arg4[%c0_22, %c0_23, %c0_24] : memref<6x4x16xbf16, #tpu.memory_space<vmem>>, vector<1x4x16xbf16>
    %19 = vector.shape_cast %18 : vector<1x4x16xbf16> to vector<4x16xbf16>
    %cst = arith.constant dense<0.000000e+00> : vector<128x16xf32>
    %20 = tpu.matmul %2, %19, %cst {dimension_numbers = #tpu.dot_dimension_numbers<[1], [0], [0], [1], [0, 0, 1, 1], [], []>} : vector<128x4xbf16>, vector<4x16xbf16>, vector<128x16xf32> -> vector<128x16xf32>
    %c1_25 = arith.constant 1 : index
    %c0_26 = arith.constant 0 : index
    %c0_27 = arith.constant 0 : index
    %21 = vector.load %arg4[%c1_25, %c0_26, %c0_27] : memref<6x4x16xbf16, #tpu.memory_space<vmem>>, vector<1x4x16xbf16>
    %22 = vector.shape_cast %21 : vector<1x4x16xbf16> to vector<4x16xbf16>
    %cst_28 = arith.constant dense<0.000000e+00> : vector<128x16xf32>
    %23 = tpu.matmul %5, %22, %cst_28 {dimension_numbers = #tpu.dot_dimension_numbers<[1], [0], [0], [1], [0, 0, 1, 1], [], []>} : vector<128x4xbf16>, vector<4x16xbf16>, vector<128x16xf32> -> vector<128x16xf32>
    %24 = arith.addf %20, %23 : vector<128x16xf32>
    %c2 = arith.constant 2 : index
    %c0_29 = arith.constant 0 : index
    %c0_30 = arith.constant 0 : index
    %25 = vector.load %arg4[%c2, %c0_29, %c0_30] : memref<6x4x16xbf16, #tpu.memory_space<vmem>>, vector<1x4x16xbf16>
    %26 = vector.shape_cast %25 : vector<1x4x16xbf16> to vector<4x16xbf16>
    %cst_31 = arith.constant dense<0.000000e+00> : vector<128x16xf32>
    %27 = tpu.matmul %2, %26, %cst_31 {dimension_numbers = #tpu.dot_dimension_numbers<[1], [0], [0], [1], [0, 0, 1, 1], [], []>} : vector<128x4xbf16>, vector<4x16xbf16>, vector<128x16xf32> -> vector<128x16xf32>
    %c3 = arith.constant 3 : index
    %c0_32 = arith.constant 0 : index
    %c0_33 = arith.constant 0 : index
    %28 = vector.load %arg4[%c3, %c0_32, %c0_33] : memref<6x4x16xbf16, #tpu.memory_space<vmem>>, vector<1x4x16xbf16>
    %29 = vector.shape_cast %28 : vector<1x4x16xbf16> to vector<4x16xbf16>
    %cst_34 = arith.constant dense<0.000000e+00> : vector<128x16xf32>
    %30 = tpu.matmul %5, %29, %cst_34 {dimension_numbers = #tpu.dot_dimension_numbers<[1], [0], [0], [1], [0, 0, 1, 1], [], []>} : vector<128x4xbf16>, vector<4x16xbf16>, vector<128x16xf32> -> vector<128x16xf32>
    %31 = arith.addf %27, %30 : vector<128x16xf32>
    %c4 = arith.constant 4 : index
    %c0_35 = arith.constant 0 : index
    %c0_36 = arith.constant 0 : index
    %32 = vector.load %arg4[%c4, %c0_35, %c0_36] : memref<6x4x16xbf16, #tpu.memory_space<vmem>>, vector<1x4x16xbf16>
    %33 = vector.shape_cast %32 : vector<1x4x16xbf16> to vector<4x16xbf16>
    %cst_37 = arith.constant dense<0.000000e+00> : vector<128x16xf32>
    %34 = tpu.matmul %11, %33, %cst_37 {dimension_numbers = #tpu.dot_dimension_numbers<[1], [0], [0], [1], [0, 0, 1, 1], [], []>} : vector<128x4xbf16>, vector<4x16xbf16>, vector<128x16xf32> -> vector<128x16xf32>
    %35 = arith.addf %31, %34 : vector<128x16xf32>
    %c5 = arith.constant 5 : index
    %c0_38 = arith.constant 0 : index
    %c0_39 = arith.constant 0 : index
    %36 = vector.load %arg4[%c5, %c0_38, %c0_39] : memref<6x4x16xbf16, #tpu.memory_space<vmem>>, vector<1x4x16xbf16>
    %37 = vector.shape_cast %36 : vector<1x4x16xbf16> to vector<4x16xbf16>
    %cst_40 = arith.constant dense<0.000000e+00> : vector<128x16xf32>
    %38 = tpu.matmul %17, %37, %cst_40 {dimension_numbers = #tpu.dot_dimension_numbers<[1], [0], [0], [1], [0, 0, 1, 1], [], []>} : vector<128x4xbf16>, vector<4x16xbf16>, vector<128x16xf32> -> vector<128x16xf32>
    %39 = arith.addf %35, %38 : vector<128x16xf32>
    %c8_i32 = arith.constant 8 : i32
    %40 = arith.muli %arg1, %c8_i32 : i32
    %c16_i32 = arith.constant 16 : i32
    %41 = arith.subi %c16_i32, %40 : i32
    %c8_i32_41 = arith.constant 8 : i32
    %42 = arith.minsi %c8_i32_41, %41 : i32
    %c16_i32_42 = arith.constant 16 : i32
    %43 = arith.muli %42, %c16_i32_42 : i32
    %44 = tpu.iota {dimensions = array<i32: 0>} : vector<128x1xi32>
    %45 = vector.broadcast %43 : i32 to vector<128x1xi32>
    %46 = arith.cmpi slt, %44, %45 : vector<128x1xi32>
    %47 = arith.sitofp %43 : i32 to f32
    %cst_43 = arith.constant 0.000000e+00 : f32
    %48 = vector.shape_cast %46 : vector<128x1xi1> to vector<128x1xi1>
    %49 = vector.broadcast %48 : vector<128x1xi1> to vector<128x16xi1>
    %50 = vector.broadcast %cst_43 : f32 to vector<128x16xf32>
    %51 = arith.select %49, %24, %50 : vector<128x16xi1>, vector<128x16xf32>
    %cst_44 = arith.constant 0.000000e+00 : f32
    %52 = vector.shape_cast %46 : vector<128x1xi1> to vector<128x1xi1>
    %53 = vector.broadcast %52 : vector<128x1xi1> to vector<128x16xi1>
    %54 = vector.broadcast %cst_44 : f32 to vector<128x16xf32>
    %55 = arith.select %53, %39, %54 : vector<128x16xi1>, vector<128x16xf32>
    %cst_45 = arith.constant dense<0.000000e+00> : vector<16xf32>
    %56 = vector.multi_reduction <add>, %51, %cst_45 [0] : vector<128x16xf32> to vector<16xf32>
    %57 = vector.shape_cast %56 : vector<16xf32> to vector<1x16xf32>
    %cst_46 = arith.constant dense<0.000000e+00> : vector<16xf32>
    %58 = vector.multi_reduction <add>, %55, %cst_46 [0] : vector<128x16xf32> to vector<16xf32>
    %59 = vector.shape_cast %58 : vector<16xf32> to vector<1x16xf32>
    %60 = vector.broadcast %47 : f32 to vector<1x16xf32>
    %61 = arith.divf %57, %60 : vector<1x16xf32>
    %62 = vector.broadcast %47 : f32 to vector<1x16xf32>
    %63 = arith.divf %59, %62 : vector<1x16xf32>
    %64 = vector.broadcast %61 : vector<1x16xf32> to vector<128x16xf32>
    %65 = arith.subf %24, %64 : vector<128x16xf32>
    %cst_47 = arith.constant 0.000000e+00 : f32
    %66 = vector.shape_cast %46 : vector<128x1xi1> to vector<128x1xi1>
    %67 = vector.broadcast %66 : vector<128x1xi1> to vector<128x16xi1>
    %68 = vector.broadcast %cst_47 : f32 to vector<128x16xf32>
    %69 = arith.select %67, %65, %68 : vector<128x16xi1>, vector<128x16xf32>
    %70 = vector.broadcast %63 : vector<1x16xf32> to vector<128x16xf32>
    %71 = arith.subf %39, %70 : vector<128x16xf32>
    %cst_48 = arith.constant 0.000000e+00 : f32
    %72 = vector.shape_cast %46 : vector<128x1xi1> to vector<128x1xi1>
    %73 = vector.broadcast %72 : vector<128x1xi1> to vector<128x16xi1>
    %74 = vector.broadcast %cst_48 : f32 to vector<128x16xf32>
    %75 = arith.select %73, %71, %74 : vector<128x16xi1>, vector<128x16xf32>
    %76 = arith.mulf %69, %69 : vector<128x16xf32>
    %cst_49 = arith.constant dense<0.000000e+00> : vector<16xf32>
    %77 = vector.multi_reduction <add>, %76, %cst_49 [0] : vector<128x16xf32> to vector<16xf32>
    %78 = vector.shape_cast %77 : vector<16xf32> to vector<1x16xf32>
    %79 = arith.mulf %75, %75 : vector<128x16xf32>
    %cst_50 = arith.constant dense<0.000000e+00> : vector<16xf32>
    %80 = vector.multi_reduction <add>, %79, %cst_50 [0] : vector<128x16xf32> to vector<16xf32>
    %81 = vector.shape_cast %80 : vector<16xf32> to vector<1x16xf32>
    %82 = tpu.concatenate %57, %59, %78, %81 in 0 : vector<1x16xf32>, vector<1x16xf32>, vector<1x16xf32>, vector<1x16xf32> -> vector<4x16xf32>
    %c0_51 = arith.constant 0 : index
    %c0_52 = arith.constant 0 : index
    %c0_53 = arith.constant 0 : index
    %c0_54 = arith.constant 0 : index
    %83 = vector.load %arg5[%c0_51, %c0_52, %c0_53, %c0_54] : memref<1x1x4x16xf32, #tpu.memory_space<vmem>>, vector<1x1x4x16xf32>
    %84 = vector.shape_cast %83 : vector<1x1x4x16xf32> to vector<4x16xf32>
    %85 = vector.shape_cast %82 : vector<4x16xf32> to vector<1x1x4x16xf32>
    tpu.vector_store %arg5[%c0_51, %c0_52, %c0_53, %c0_54], %85 {strides = array<i32>} : memref<1x1x4x16xf32, #tpu.memory_space<vmem>>, vector<1x1x4x16xf32>,
    return
  }
  func.func @transform_0(%arg0: i32, %arg1: i32) -> (i32, i32, i32, i32) {
    %c0_i32 = arith.constant 0 : i32
    %c0_i32_0 = arith.constant 0 : i32
    %c0_i32_1 = arith.constant 0 : i32
    return %arg0, %arg1, %c0_i32, %c0_i32_0 : i32, i32, i32, i32
  }
  func.func @transform_1(%arg0: i32, %arg1: i32) -> (i32, i32, i32, i32) {
    %c1_i32 = arith.constant 1 : i32
    %0 = arith.addi %arg1, %c1_i32 : i32
    %c8_i32 = arith.constant 8 : i32
    %1 = arith.muli %0, %c8_i32 : i32
    %c16_i32 = arith.constant 16 : i32
    %2 = arith.minsi %1, %c16_i32 : i32
    %c0_i32 = arith.constant 0 : i32
    %c0_i32_0 = arith.constant 0 : i32
    %c0_i32_1 = arith.constant 0 : i32
    return %arg0, %2, %c0_i32, %c0_i32_0 : i32, i32, i32, i32
  }
  func.func @transform_2(%arg0: i32, %arg1: i32) -> (i32, i32, i32) {
    %c0_i32 = arith.constant 0 : i32
    %c0_i32_0 = arith.constant 0 : i32
    %c0_i32_1 = arith.constant 0 : i32
    %c0_i32_2 = arith.constant 0 : i32
    return %c0_i32, %c0_i32_0, %c0_i32_1 : i32, i32, i32
  }
  func.func @transform_3(%arg0: i32, %arg1: i32) -> (i32, i32, i32, i32) {
    %c0_i32 = arith.constant 0 : i32
    %c0_i32_0 = arith.constant 0 : i32
    %c0_i32_1 = arith.constant 0 : i32
    return %arg0, %arg1, %c0_i32, %c0_i32_0 : i32, i32, i32, i32
  }
}

module attributes {stable_mosaic.version = 11 : i64} {
  func.func @_output_kernel(%arg0: i32, %arg1: i32, %arg2: memref<1x8x17x4xbf16, #tpu.memory_space<vmem>>, %arg3: memref<1x1x17x4xbf16, #tpu.memory_space<vmem>>, %arg4: memref<6x4x16xbf16, #tpu.memory_space<vmem>>, %arg5: memref<1x16xf32, #tpu.memory_space<vmem>>, %arg6: memref<1x16xf32, #tpu.memory_space<vmem>>, %arg7: memref<1x8x2x16x16xf32, #tpu.memory_space<vmem>>) attributes {dimension_semantics = [#tpu.dimension_semantics<parallel>, #tpu.dimension_semantics<parallel>], iteration_bounds = array<i64: 2, 2>, scalar_prefetch = 0 : i64, scratch_operands = 0 : i64, tpu.core_type = #tpu.core_type<tc>, window_params = [{transform_indices = @transform_0, window_bounds = array<i64: 1, 8, 17, 4>}, {transform_indices = @transform_1, window_bounds = array<i64: 1, 1, 17, 4>}, {pipeline_mode = #tpu.pipeline_mode<synchronous>, transform_indices = @transform_2, window_bounds = array<i64: 6, 4, 16>}, {pipeline_mode = #tpu.pipeline_mode<synchronous>, transform_indices = @transform_3, window_bounds = array<i64: 1, 16>}, {pipeline_mode = #tpu.pipeline_mode<synchronous>, transform_indices = @transform_4, window_bounds = array<i64: 1, 16>}, {transform_indices = @transform_5, window_bounds = array<i64: 1, 8, 2, 16, 16>}]} {
    %c0 = arith.constant 0 : index
    %c0_0 = arith.constant 0 : index
    %c0_1 = arith.constant 0 : index
    %c0_2 = arith.constant 0 : index
    %0 = vector.load %arg2[%c0, %c0_0, %c0_1, %c0_2] : memref<1x8x17x4xbf16, #tpu.memory_space<vmem>>, vector<1x8x16x4xbf16>
    %1 = vector.shape_cast %0 : vector<1x8x16x4xbf16> to vector<8x16x4xbf16>
    %2 = vector.shape_cast %1 : vector<8x16x4xbf16> to vector<128x4xbf16>
    %c0_3 = arith.constant 0 : index
    %c0_4 = arith.constant 0 : index
    %c1 = arith.constant 1 : index
    %c0_5 = arith.constant 0 : index
    %3 = vector.load %arg2[%c0_3, %c0_4, %c1, %c0_5] : memref<1x8x17x4xbf16, #tpu.memory_space<vmem>>, vector<1x8x16x4xbf16>
    %4 = vector.shape_cast %3 : vector<1x8x16x4xbf16> to vector<8x16x4xbf16>
    %5 = vector.shape_cast %4 : vector<8x16x4xbf16> to vector<128x4xbf16>
    %c0_6 = arith.constant 0 : index
    %c1_7 = arith.constant 1 : index
    %c0_8 = arith.constant 0 : index
    %c0_9 = arith.constant 0 : index
    %6 = vector.load %arg2[%c0_6, %c1_7, %c0_8, %c0_9] : memref<1x8x17x4xbf16, #tpu.memory_space<vmem>>, vector<1x7x16x4xbf16>
    %7 = vector.shape_cast %6 : vector<1x7x16x4xbf16> to vector<7x16x4xbf16>
    %c0_10 = arith.constant 0 : index
    %c0_11 = arith.constant 0 : index
    %c0_12 = arith.constant 0 : index
    %c0_13 = arith.constant 0 : index
    %8 = vector.load %arg3[%c0_10, %c0_11, %c0_12, %c0_13] : memref<1x1x17x4xbf16, #tpu.memory_space<vmem>>, vector<1x1x16x4xbf16>
    %9 = vector.shape_cast %8 : vector<1x1x16x4xbf16> to vector<1x16x4xbf16>
    %10 = tpu.concatenate %7, %9 in 0 : vector<7x16x4xbf16>, vector<1x16x4xbf16> -> vector<8x16x4xbf16>
    %11 = vector.shape_cast %10 : vector<8x16x4xbf16> to vector<128x4xbf16>
    %c0_14 = arith.constant 0 : index
    %c1_15 = arith.constant 1 : index
    %c1_16 = arith.constant 1 : index
    %c0_17 = arith.constant 0 : index
    %12 = vector.load %arg2[%c0_14, %c1_15, %c1_16, %c0_17] : memref<1x8x17x4xbf16, #tpu.memory_space<vmem>>, vector<1x7x16x4xbf16>
    %13 = vector.shape_cast %12 : vector<1x7x16x4xbf16> to vector<7x16x4xbf16>
    %c0_18 = arith.constant 0 : index
    %c0_19 = arith.constant 0 : index
    %c1_20 = arith.constant 1 : index
    %c0_21 = arith.constant 0 : index
    %14 = vector.load %arg3[%c0_18, %c0_19, %c1_20, %c0_21] : memref<1x1x17x4xbf16, #tpu.memory_space<vmem>>, vector<1x1x16x4xbf16>
    %15 = vector.shape_cast %14 : vector<1x1x16x4xbf16> to vector<1x16x4xbf16>
    %16 = tpu.concatenate %13, %15 in 0 : vector<7x16x4xbf16>, vector<1x16x4xbf16> -> vector<8x16x4xbf16>
    %17 = vector.shape_cast %16 : vector<8x16x4xbf16> to vector<128x4xbf16>
    %c0_22 = arith.constant 0 : index
    %c0_23 = arith.constant 0 : index
    %c0_24 = arith.constant 0 : index
    %18 = vector.load %arg4[%c0_22, %c0_23, %c0_24] : memref<6x4x16xbf16, #tpu.memory_space<vmem>>, vector<1x4x16xbf16>
    %19 = vector.shape_cast %18 : vector<1x4x16xbf16> to vector<4x16xbf16>
    %cst = arith.constant dense<0.000000e+00> : vector<128x16xf32>
    %20 = tpu.matmul %2, %19, %cst {dimension_numbers = #tpu.dot_dimension_numbers<[1], [0], [0], [1], [0, 0, 1, 1], [], []>} : vector<128x4xbf16>, vector<4x16xbf16>, vector<128x16xf32> -> vector<128x16xf32>
    %c1_25 = arith.constant 1 : index
    %c0_26 = arith.constant 0 : index
    %c0_27 = arith.constant 0 : index
    %21 = vector.load %arg4[%c1_25, %c0_26, %c0_27] : memref<6x4x16xbf16, #tpu.memory_space<vmem>>, vector<1x4x16xbf16>
    %22 = vector.shape_cast %21 : vector<1x4x16xbf16> to vector<4x16xbf16>
    %cst_28 = arith.constant dense<0.000000e+00> : vector<128x16xf32>
    %23 = tpu.matmul %5, %22, %cst_28 {dimension_numbers = #tpu.dot_dimension_numbers<[1], [0], [0], [1], [0, 0, 1, 1], [], []>} : vector<128x4xbf16>, vector<4x16xbf16>, vector<128x16xf32> -> vector<128x16xf32>
    %24 = arith.addf %20, %23 : vector<128x16xf32>
    %c2 = arith.constant 2 : index
    %c0_29 = arith.constant 0 : index
    %c0_30 = arith.constant 0 : index
    %25 = vector.load %arg4[%c2, %c0_29, %c0_30] : memref<6x4x16xbf16, #tpu.memory_space<vmem>>, vector<1x4x16xbf16>
    %26 = vector.shape_cast %25 : vector<1x4x16xbf16> to vector<4x16xbf16>
    %cst_31 = arith.constant dense<0.000000e+00> : vector<128x16xf32>
    %27 = tpu.matmul %2, %26, %cst_31 {dimension_numbers = #tpu.dot_dimension_numbers<[1], [0], [0], [1], [0, 0, 1, 1], [], []>} : vector<128x4xbf16>, vector<4x16xbf16>, vector<128x16xf32> -> vector<128x16xf32>
    %c3 = arith.constant 3 : index
    %c0_32 = arith.constant 0 : index
    %c0_33 = arith.constant 0 : index
    %28 = vector.load %arg4[%c3, %c0_32, %c0_33] : memref<6x4x16xbf16, #tpu.memory_space<vmem>>, vector<1x4x16xbf16>
    %29 = vector.shape_cast %28 : vector<1x4x16xbf16> to vector<4x16xbf16>
    %cst_34 = arith.constant dense<0.000000e+00> : vector<128x16xf32>
    %30 = tpu.matmul %5, %29, %cst_34 {dimension_numbers = #tpu.dot_dimension_numbers<[1], [0], [0], [1], [0, 0, 1, 1], [], []>} : vector<128x4xbf16>, vector<4x16xbf16>, vector<128x16xf32> -> vector<128x16xf32>
    %31 = arith.addf %27, %30 : vector<128x16xf32>
    %c4 = arith.constant 4 : index
    %c0_35 = arith.constant 0 : index
    %c0_36 = arith.constant 0 : index
    %32 = vector.load %arg4[%c4, %c0_35, %c0_36] : memref<6x4x16xbf16, #tpu.memory_space<vmem>>, vector<1x4x16xbf16>
    %33 = vector.shape_cast %32 : vector<1x4x16xbf16> to vector<4x16xbf16>
    %cst_37 = arith.constant dense<0.000000e+00> : vector<128x16xf32>
    %34 = tpu.matmul %11, %33, %cst_37 {dimension_numbers = #tpu.dot_dimension_numbers<[1], [0], [0], [1], [0, 0, 1, 1], [], []>} : vector<128x4xbf16>, vector<4x16xbf16>, vector<128x16xf32> -> vector<128x16xf32>
    %35 = arith.addf %31, %34 : vector<128x16xf32>
    %c5 = arith.constant 5 : index
    %c0_38 = arith.constant 0 : index
    %c0_39 = arith.constant 0 : index
    %36 = vector.load %arg4[%c5, %c0_38, %c0_39] : memref<6x4x16xbf16, #tpu.memory_space<vmem>>, vector<1x4x16xbf16>
    %37 = vector.shape_cast %36 : vector<1x4x16xbf16> to vector<4x16xbf16>
    %cst_40 = arith.constant dense<0.000000e+00> : vector<128x16xf32>
    %38 = tpu.matmul %17, %37, %cst_40 {dimension_numbers = #tpu.dot_dimension_numbers<[1], [0], [0], [1], [0, 0, 1, 1], [], []>} : vector<128x4xbf16>, vector<4x16xbf16>, vector<128x16xf32> -> vector<128x16xf32>
    %39 = arith.addf %35, %38 : vector<128x16xf32>
    %c0_41 = arith.constant 0 : index
    %c0_42 = arith.constant 0 : index
    %40 = vector.load %arg5[%c0_41, %c0_42] : memref<1x16xf32, #tpu.memory_space<vmem>>, vector<1x16xf32>
    %c0_43 = arith.constant 0 : index
    %c0_44 = arith.constant 0 : index
    %41 = vector.load %arg6[%c0_43, %c0_44] : memref<1x16xf32, #tpu.memory_space<vmem>>, vector<1x16xf32>
    %42 = vector.broadcast %40 : vector<1x16xf32> to vector<128x16xf32>
    %43 = arith.mulf %24, %42 : vector<128x16xf32>
    %44 = vector.broadcast %41 : vector<1x16xf32> to vector<128x16xf32>
    %45 = arith.addf %43, %44 : vector<128x16xf32>
    %46 = vector.shape_cast %45 : vector<128x16xf32> to vector<8x16x16xf32>
    %c0_45 = arith.constant 0 : index
    %c0_46 = arith.constant 0 : index
    %c0_47 = arith.constant 0 : index
    %c0_48 = arith.constant 0 : index
    %c0_49 = arith.constant 0 : index
    %47 = vector.load %arg7[%c0_45, %c0_46, %c0_47, %c0_48, %c0_49] : memref<1x8x2x16x16xf32, #tpu.memory_space<vmem>>, vector<1x8x1x16x16xf32>
    %48 = vector.shape_cast %47 : vector<1x8x1x16x16xf32> to vector<8x16x16xf32>
    %49 = vector.shape_cast %46 : vector<8x16x16xf32> to vector<1x8x1x16x16xf32>
    tpu.vector_store %arg7[%c0_45, %c0_46, %c0_47, %c0_48, %c0_49], %49 {strides = array<i32>} : memref<1x8x2x16x16xf32, #tpu.memory_space<vmem>>, vector<1x8x1x16x16xf32>,
    %50 = vector.broadcast %40 : vector<1x16xf32> to vector<128x16xf32>
    %51 = arith.mulf %39, %50 : vector<128x16xf32>
    %52 = vector.broadcast %41 : vector<1x16xf32> to vector<128x16xf32>
    %53 = arith.addf %51, %52 : vector<128x16xf32>
    %54 = vector.shape_cast %53 : vector<128x16xf32> to vector<8x16x16xf32>
    %c0_50 = arith.constant 0 : index
    %c0_51 = arith.constant 0 : index
    %c1_52 = arith.constant 1 : index
    %c0_53 = arith.constant 0 : index
    %c0_54 = arith.constant 0 : index
    %55 = vector.load %arg7[%c0_50, %c0_51, %c1_52, %c0_53, %c0_54] : memref<1x8x2x16x16xf32, #tpu.memory_space<vmem>>, vector<1x8x1x16x16xf32>
    %56 = vector.shape_cast %55 : vector<1x8x1x16x16xf32> to vector<8x16x16xf32>
    %57 = vector.shape_cast %54 : vector<8x16x16xf32> to vector<1x8x1x16x16xf32>
    tpu.vector_store %arg7[%c0_50, %c0_51, %c1_52, %c0_53, %c0_54], %57 {strides = array<i32>} : memref<1x8x2x16x16xf32, #tpu.memory_space<vmem>>, vector<1x8x1x16x16xf32>,
    return
  }
  func.func @transform_0(%arg0: i32, %arg1: i32) -> (i32, i32, i32, i32) {
    %c0_i32 = arith.constant 0 : i32
    %c0_i32_0 = arith.constant 0 : i32
    %c0_i32_1 = arith.constant 0 : i32
    return %arg0, %arg1, %c0_i32, %c0_i32_0 : i32, i32, i32, i32
  }
  func.func @transform_1(%arg0: i32, %arg1: i32) -> (i32, i32, i32, i32) {
    %c1_i32 = arith.constant 1 : i32
    %0 = arith.addi %arg1, %c1_i32 : i32
    %c8_i32 = arith.constant 8 : i32
    %1 = arith.muli %0, %c8_i32 : i32
    %c16_i32 = arith.constant 16 : i32
    %2 = arith.minsi %1, %c16_i32 : i32
    %c0_i32 = arith.constant 0 : i32
    %c0_i32_0 = arith.constant 0 : i32
    %c0_i32_1 = arith.constant 0 : i32
    return %arg0, %2, %c0_i32, %c0_i32_0 : i32, i32, i32, i32
  }
  func.func @transform_2(%arg0: i32, %arg1: i32) -> (i32, i32, i32) {
    %c0_i32 = arith.constant 0 : i32
    %c0_i32_0 = arith.constant 0 : i32
    %c0_i32_1 = arith.constant 0 : i32
    %c0_i32_2 = arith.constant 0 : i32
    return %c0_i32, %c0_i32_0, %c0_i32_1 : i32, i32, i32
  }
  func.func @transform_3(%arg0: i32, %arg1: i32) -> (i32, i32) {
    %c0_i32 = arith.constant 0 : i32
    %c0_i32_0 = arith.constant 0 : i32
    %c0_i32_1 = arith.constant 0 : i32
    return %c0_i32, %c0_i32_0 : i32, i32
  }
  func.func @transform_4(%arg0: i32, %arg1: i32) -> (i32, i32) {
    %c0_i32 = arith.constant 0 : i32
    %c0_i32_0 = arith.constant 0 : i32
    %c0_i32_1 = arith.constant 0 : i32
    return %c0_i32, %c0_i32_0 : i32, i32
  }
  func.func @transform_5(%arg0: i32, %arg1: i32) -> (i32, i32, i32, i32, i32) {
    %c0_i32 = arith.constant 0 : i32
    %c0_i32_0 = arith.constant 0 : i32
    %c0_i32_1 = arith.constant 0 : i32
    %c0_i32_2 = arith.constant 0 : i32
    return %arg0, %arg1, %c0_i32, %c0_i32_0, %c0_i32_1 : i32, i32, i32, i32, i32
  }
}

</mosaic_0001>

<bundles_post_ra>
// kernel: tile.19
= control target key start
LH: loop header
LB: loop body
LE: loop exit
PB: predicated region body
PF: predicated region fallthrough
CT: control target
= control target key end

     0   :  { %vm8_vm0 = vcmask 64512   ;;  %vm14_vm1 = vcmask 130112   ;;  %s42_s0 = inlined_call_operand.vmem [shape: f32[2,8], index: 0, kind: input, shape index: {}]   ;;  %s43_s1 = inlined_call_operand.vmem [shape: f32[1,16], index: 1, kind: output, shape index: {}]  }
   0x1   :  { %v5_v0 = vld [vmem:[%s42_s0] sm:$0x3]  ;;  %s25_s0 = smov 8  }
   0x2   :  { %6 = vst [vmem:[#allocation1] sm:$0x3] %v5_v0 }
   0x9   :  { %v11_v1 = vld [vmem:[#allocation1 + $0x1] sm:$0x1]   ;;  %v7_v2 = vld [vmem:[#allocation1] sm:$0x1]  }
   0xa   :  { %12 = vrot.lane.b32.xlu0 %v11_v1, %s25_s0  ;;  %9 = vst.msk [vmem:[#allocation0] sm:$0x1] %vm8_vm0, %v7_v2  }
  0x7c   :  { %v13_v3 = vpop.permute.xlu0 %12  }
  0x7d   :  { %15 = vst.msk [vmem:[#allocation0] sm:$0x1] %vm14_vm1, %v13_v3  }
  0x84   :  { %v20_v4 = vld [vmem:[#allocation0] sm:$0x1] }
  0x85   :  { %23 = vst [vmem:[%s43_s1] sm:$0x1] %v20_v4 }

// kernel: upsampling_layer.3
= control target key start
LH: loop header
LB: loop body
LE: loop exit
PB: predicated region body
PF: predicated region fallthrough
CT: control target
= control target key end

     0   :  { %s2341_s18 = smov 0   ;;  %s2343_s19 = smov 0   ;;  %s2990_s0 = inlined_call_operand.vmem [shape: bf16[2,17,17,4], index: 0, kind: input, shape index: {}, may-alias: {0,1}]   ;;  %s2991_s1 = inlined_call_operand.vmem [shape: bf16[2,17,17,4], index: 1, kind: input, shape index: {}, may-alias: {0,1}]   ;;  %s2992_s2 = inlined_call_operand.vmem [shape: bf16[6,4,16], index: 2, kind: input, shape index: {}]   ;;  %s2993_s3 = inlined_call_operand.vmem [shape: f32[1,16], index: 3, kind: input, shape index: {}]   ;;  %s2994_s4 = inlined_call_operand.vmem [shape: f32[1,16], index: 4, kind: input, shape index: {}]   ;;  %s2995_s5 = inlined_call_operand.vmem [shape: f32[2,16,2,16,16], index: 5, kind: output, shape index: {}]  }
   0x1   :  { %s2345_s20 = smov 0   ;;  %s2347_s21 = smov 0  }
   0x2   :  { %s2349_s22 = smov 0  }
   0x3 LB: > { %s24_s23 = sadd.s32 1, %s2301_s20  ;;  %s27_s24 = sadd.s32 1, %s2305_s21  ;;  %s2309_s22 = sphi %s2349_s22, %s15_s22   ;;  %s2305_s21 = sphi %s2347_s21, %s3002_s21   ;;  %s2301_s20 = sphi %s2345_s20, %s3001_s20   ;;  %s2297_s19 = sphi %s2343_s19, %s3000_s19   ;;  %s2293_s18 = sphi %s2341_s18, %s2999_s18  }
   0x4   : > { %p25_p0 = scmp.ge.s32.totalorder %s24_s23, 2  ;;  %p1900_p1 = scmp.ge.s32.totalorder %s2309_s22, 1 }
   0x5   : > { %p251_p2 = scmp.lt.s32.totalorder %s2309_s22, 5 }
   0x6   : > { %s3004_s23 = smov (%p25_p0, %s24_s23), 0  ;;  %s3006_s24 = smov (!%p25_p0, %s27_s24), %s2305_s21 }
   0x7   : > { %p252_p3 = pnand %p1900_p1, %p251_p2  ;;  %p29_p4 = scmp.ge.s32.totalorder %s3006_s24, 2 }
   0x8   : > { %s2377_s29 = sshll.u32 (!%p252_p3), %s2293_s18, 3  ;;  %p313_p5 = scmp.lt.s32.totalorder (!%p252_p3), %s2297_s19, 1 }
   0x9   : > { %s3008_s24 = smov (%p29_p4, %s3006_s24), 0  ;;  %255 = sbr.rel (%p252_p3) target bundleno = 336 (0x150), region = 40 }
   0xa   : > { %p315_p6 = scmp.lt.s32.totalorder (!%p252_p3), %s2377_s29, 16  ;;  %s2043_s27 = sadd.s32 (!%p252_p3), 8, %s2377_s29 }
   0xb   : > { %p2579_p7 = scmp.lt.s32.totalorder (!%p252_p3), %s2043_s27, 16  ;;  %p348_p8 = scmp.lt.s32.totalorder (!%p252_p3), %s2377_s29, 15 }
   0xe   : > { %v793_v0 = vld [vmem:[%s2992_s2] sm:$0x3]  ;;  %vm845_vm0 = vcmask 1041408   ;;  %v1933_v1 = vld [vmem:[%s2992_s2 + $0x2] sm:$0x3]  ;;  %s3010_s19 = smov (!%p313_p5, %s2297_s19), 1 }
   0xf   : > { %2207 = vmatprep.subr.msk.bf16.mxu1 %vm845_vm0, %v793_v0  ;;  %v1011_v2 = vsel %vm845_vm0, %v793_v0, 0  ;;  %2206 = vmatprep.subr.msk.bf16.mxu0 %vm845_vm0, %v1933_v1  ;;  %v847_v3 = vsel %vm845_vm0, %v1933_v1, 0  ;;  %v1967_v4 = vld [vmem:[%s2992_s2 + $0x6] sm:$0x3]  ;;  %v1966_v5 = vld [vmem:[%s2992_s2 + $0x4] sm:$0x3] }
  0x10   : > { %2117 = vmatpush3.bf16.msra.mxu1 %v1011_v2  ;;  %2099 = vmatpush3.bf16.msra.mxu0 %v847_v3  ;;  %s316_s9 = scalar_select %p315_p6, %s2377_s29, 16  ;;  %vm820_vm1 = vcmask 31744   ;;  %vm381_vm2 = vsmask.f32 3328  ;;  %vm382_vm3 = vsmask.f32 7440 }
  0x11   : > { %2208 = vmatprep.subr.msk.bf16.mxu0 %vm845_vm0, %v1967_v4  ;;  %2209 = vmatprep.subr.msk.bf16.mxu1 %vm845_vm0, %v1966_v5  ;;  %s2213_s10 = smul.u32 51, %s3010_s19  ;;  %v2404_v6 = vsel %vm845_vm0, %v1967_v4, 0  ;;  %v1215_v7 = vsel %vm845_vm0, %v1966_v5, 0  ;;  %v2423_v35 = vld [vmem:[%s2992_s2 + $0xa] sm:$0x3]  ;;  %vm2427_vm4 = vmor %vm381_vm2, %vm382_vm3  ;;  %s3012_s27 = smov (!%p2579_p7, %s2043_s27), 16 }
  0x12   : > { %s2212_s11 = smul.u32 3, %s316_s9  ;;  %s3014_s27 = smov (!%p2579_p7, %s3012_s27), 16  ;;  %vm1708_vm5 = vcmask 130048  }
  0x13   : > { %s2214_s30 = smul.u32 3, %s3014_s27  ;;  %s3016_s29 = smov (!%p348_p8, %s2377_s29), 15 }
  0x14   : > { %s319_s12 = sadd.s32 %s2213_s10, %s2212_s11  ;;  %s1909_s11 = sshll.u32 %s3016_s29, 2 }
  0x15   : > { %s1902_s13 = sshll.u32 %s319_s12, 2  ;;  %s2666_s6 = sadd.s32 %s2214_s30, %s2213_s10 }
  0x16   : > { %s2401_s16 = scalar_lea.vmem %s2990_s0, %s1902_s13  ;;  %s1907_s7 = sshll.u32 %s2666_s6, 2 }
  0x17   : > { %v357_v8 = vld [vmem:[%s2401_s16] sm:$0xf]  ;;  %v358_v9 = vld [vmem:[%s2401_s16 + $0x4] sm:$0xf]  ;;  %v359_v10 = vld [vmem:[%s2401_s16 + $0xc] sm:$0xf]  ;;  %s2708_s10 = scalar_lea.vmem %s2991_s1, %s1907_s7 }
  0x18   : > { %v385_v11 = vshrl.u32 %v357_v8, 16  ;;  %v388_v12 = vshll.u32 %v357_v8, 16  ;;  %v394_v13 = vshll.u32 %v358_v9, 16  ;;  %v398_v14 = vshrl.u32 %v358_v9, 16  ;;  %v360_v15 = vld [vmem:[%s2401_s16 + $0x10] sm:$0xf] }
  0x19   : > { %v2411_v16 = vcombine.low %v357_v8, %v358_v9  ;;  %v409_v17 = vshrl.u32 %v359_v10, 16  ;;  %v412_v18 = vshll.u32 %v359_v10, 16  ;;  %v418_v19 = vshll.u32 %v360_v15, 16  ;;  %v373_v20 = vld [vmem:[%s2401_s16 + $0x8] sm:$0x1]  ;;  %s1910_s12 = sshll.u32 %s3010_s19, 6 }
  0x1a   : > { %v387_v21 = vrot.slane %v385_v11, 4  ;;  %v390_v22 = vrot.slane %v388_v12, 5  ;;  %v396_v23 = vrot.slane %v394_v13, 5  ;;  %v400_v24 = vrot.slane %v398_v14, 4  ;;  %v374_v25 = vld [vmem:[%s2401_s16 + $0x14] sm:$0x1]  ;;  %s352_s13 = sadd.s32 %s1910_s12, %s1909_s11 }
  0x1b   : > { %2118 = vmatprep.mubr.msk.bf16.mxu1 %vm820_vm1, %v2411_v16  ;;  %v411_v26 = vrot.slane %v409_v17, 4  ;;  %v414_v27 = vrot.slane %v412_v18, 5  ;;  %v420_v28 = vrot.slane %v418_v19, 5  ;;  %v422_v29 = vshrl.u32 %v360_v15, 16  ;;  %v361_v30 = vld [vmem:[%s2401_s16 + $0x18] sm:$0xf] }
  0x1c   : > { %v2418_v31 = vcombine.low %v359_v10, %v360_v15  ;;  %v391_v32 = vor.u32 %v390_v22, %v387_v21  ;;  %v401_v33 = vor.u32 %v400_v24, %v396_v23  ;;  %v404_v34 = vshll.u32 %v373_v20, 16  ;;  %v362_v40 = vld [vmem:[%s2401_s16 + $0x1c] sm:$0xf]  ;;  %v363_v50 = vld [vmem:[%s2401_s16 + $0x24] sm:$0xf] }
  0x1d   : > { %v424_v36 = vrot.slane %v422_v29, 4  ;;  %v415_v38 = vor.u32 %v414_v27, %v411_v26  ;;  %v428_v39 = vshll.u32 %v374_v25, 16  ;;  %v433_v41 = vshrl.u32 %v361_v30, 16  ;;  %v364_v55 = vld [vmem:[%s2401_s16 + $0x28] sm:$0xf] }
  0x1e   : > { %2119 = vmatmul.mubr.msk.bf16.vlgmr.msra.gmra.mxu1 %vm820_vm1, %v2418_v31  ;;  %v392_v42 = vrot.slane %v391_v32, 4  ;;  %v402_v43 = vrot.slane %v401_v33, 4  ;;  %v406_v44 = vrot.slane %v404_v34, 5  ;;  %v436_v45 = vshll.u32 %v361_v30, 16  ;;  %v375_v60 = vld [vmem:[%s2401_s16 + $0x20] sm:$0x1] }
  0x1f   : > { %v416_v46 = vrot.slane %v415_v38, 4  ;;  %v425_v47 = vor.u32 %v424_v36, %v420_v28  ;;  %v430_v48 = vrot.slane %v428_v39, 5  ;;  %2153 = vmatpush3.bf16.msra.mxu1 %v1215_v7  ;;  %v435_v49 = vrot.slane %v433_v41, 4  ;;  %v376_v1 = vld [vmem:[%s2401_s16 + $0x2c] sm:$0x1] }
  0x20   : > { %v397_v51 = vsel %vm2427_vm4, %v392_v42, %v396_v23  ;;  %v407_v52 = vsel %vm2427_vm4, %v402_v43, %v406_v44  ;;  %v438_v53 = vrot.slane %v436_v45, 5  ;;  %v442_v54 = vshll.u32 %v362_v40, 16  ;;  %2211 = vmatprep.subr.msk.bf16.mxu1 %vm845_vm0, %v2423_v35  ;;  %v365_v7 = vld [vmem:[%s2401_s16 + $0x30] sm:$0xf]  ;;  %v2464_v17 = vld [vmem:[%s2992_s2 + $0x8] sm:$0x3] }
  0x21   : > { %v2442_v56 = vcombine.low %v397_v51, %v407_v52  ;;  %v421_v57 = vsel %vm2427_vm4, %v416_v46, %v420_v28  ;;  %v426_v58 = vrot.slane %v425_v47, 4  ;;  %v446_v59 = vshrl.u32 %v362_v40, 16  ;;  %v366_v21 = vld [vmem:[%s2401_s16 + $0x34] sm:$0xf]  ;;  %v367_v32 = vld [vmem:[%s2401_s16 + $0x3c] sm:$0xf] }
  0x22   : > { %v444_v61 = vrot.slane %v442_v54, 5  ;;  %v2447_v62 = vcombine.low %v361_v30, %v362_v40  ;;  %v457_v63 = vshrl.u32 %v363_v50, 16  ;;  %v460_v0 = vshll.u32 %v363_v50, 16  ;;  %v368_v38 = vld [vmem:[%s2401_s16 + $0x40] sm:$0xf] }
  0x23   : > { %2100 = vmatprep.mubr.msk.bf16.mxu0 %vm820_vm1, %v2442_v56  ;;  %v431_v2 = vsel %vm2427_vm4, %v426_v58, %v430_v48  ;;  %v448_v3 = vrot.slane %v446_v59, 4  ;;  %v466_v4 = vshll.u32 %v364_v55, 16  ;;  %v470_v5 = vshrl.u32 %v364_v55, 16  ;;  %v377_v47 = vld [vmem:[%s2401_s16 + $0x38] sm:$0x1] }
  0x24   : > { %v2455_v8 = vcombine.low %v421_v57, %v431_v2  ;;  %2122 = vmatprep.mubr.msk.bf16.mxu1 %vm820_vm1, %v2447_v62  ;;  %v459_v9 = vrot.slane %v457_v63, 4  ;;  %v462_v10 = vrot.slane %v460_v0, 5  ;;  %v2459_v11 = vcombine.low %v363_v50, %v364_v55  ;;  %v378_v48 = vld [vmem:[%s2401_s16 + $0x44] sm:$0x1] }
  0x25   : > { %v468_v12 = vrot.slane %v466_v4, 5  ;;  %v472_v13 = vrot.slane %v470_v5, 4  ;;  %v439_v14 = vor.u32 %v438_v53, %v435_v49  ;;  %v449_v15 = vor.u32 %v448_v3, %v444_v61  ;;  %v369_v53 = vld [vmem:[%s2401_s16 + $0x48] sm:$0xf]  ;;  %v370_v3 = vld [vmem:[%s2401_s16 + $0x4c] sm:$0xf] }
  0x26   : > { %2101 = vmatmul.mubr.msk.bf16.vlgmr.msra.gmra.mxu0 %vm820_vm1, %v2455_v8  ;;  %2123 = vmatmul.mubr.msk.bf16.gmra.mxu1 %vm820_vm1, %v2459_v11  ;;  %v452_v18 = vshll.u32 %v375_v60, 16  ;;  %v463_v19 = vor.u32 %v462_v10, %v459_v9  ;;  %v476_v20 = vshll.u32 %v376_v1, 16  ;;  %v481_v22 = vshrl.u32 %v365_v7, 16 }
  0x27   : > { %2135 = vmatpush3.bf16.msra.mxu0 %v2404_v6  ;;  %v440_v23 = vrot.slane %v439_v14, 4  ;;  %v450_v24 = vrot.slane %v449_v15, 4  ;;  %v473_v25 = vor.u32 %v472_v13, %v468_v12  ;;  %v484_v26 = vshll.u32 %v365_v7, 16 }
  0x28   : > { %v454_v27 = vrot.slane %v452_v18, 5  ;;  %v464_v28 = vrot.slane %v463_v19, 4  ;;  %v478_v29 = vrot.slane %v476_v20, 5  ;;  %v483_v30 = vrot.slane %v481_v22, 4  ;;  %2210 = vmatprep.subr.msk.bf16.mxu0 %vm845_vm0, %v2464_v17  ;;  %v371_v18 = vld [vmem:[%s2401_s16 + $0x54] sm:$0xf] }
  0x29   : > { %v445_v33 = vsel %vm2427_vm4, %v440_v23, %v444_v61  ;;  %v474_v34 = vrot.slane %v473_v25, 4  ;;  %v486_v36 = vrot.slane %v484_v26, 5  ;;  %v490_v6 = vshll.u32 %v366_v21, 16  ;;  %v372_v23 = vld [vmem:[%s2401_s16 + $0x58] sm:$0xf] }
  0x2a   : > { %v455_v39 = vsel %vm2427_vm4, %v450_v24, %v454_v27  ;;  %v469_v40 = vsel %vm2427_vm4, %v464_v28, %v468_v12  ;;  %v494_v41 = vshrl.u32 %v366_v21, 16  ;;  %v2482_v42 = vcombine.low %v365_v7, %v366_v21 }
  0x2b   : > { %v2484_v43 = vcombine.low %v445_v33, %v455_v39  ;;  %v479_v44 = vsel %vm2427_vm4, %v474_v34, %v478_v29  ;;  %v492_v45 = vrot.slane %v490_v6, 5  ;;  %v505_v46 = vshrl.u32 %v367_v32, 16  ;;  %v379_v33 = vld [vmem:[%s2401_s16 + $0x50] sm:$0x1]  ;;  %v380_v39 = vld [vmem:[%s2401_s16 + $0x5c] sm:$0x1] }
  0x2c   : > { %v2490_v49 = vcombine.low %v469_v40, %v479_v44  ;;  %v496_v50 = vrot.slane %v494_v41, 4  ;;  %2126 = vmatprep.mubr.msk.bf16.mxu1 %vm820_vm1, %v2482_v42  ;;  %v508_v51 = vshll.u32 %v367_v32, 16  ;;  %v514_v52 = vshll.u32 %v368_v38, 16 }
  0x2d   : > { %2104 = vmatprep.mubr.msk.bf16.mxu0 %vm820_vm1, %v2484_v43  ;;  %v507_v54 = vrot.slane %v505_v46, 4  ;;  %v518_v55 = vshrl.u32 %v368_v38, 16  ;;  %v2497_v57 = vcombine.low %v367_v32, %v368_v38  ;;  %v487_v58 = vor.u32 %v486_v36, %v483_v30 }
  0x2e   : > { %2105 = vmatmul.mubr.msk.bf16.gmra.mxu0 %vm820_vm1, %v2490_v49  ;;  %v510_v59 = vrot.slane %v508_v51, 5  ;;  %v516_v60 = vrot.slane %v514_v52, 5  ;;  %v497_v61 = vor.u32 %v496_v50, %v492_v45  ;;  %v500_v63 = vshll.u32 %v377_v47, 16 }
  0x2f   : > { %v520_v0 = vrot.slane %v518_v55, 4  ;;  %2127 = vmatmul.mubr.msk.bf16.gmra.mxu1 %vm820_vm1, %v2497_v57  ;;  %v488_v1 = vrot.slane %v487_v58, 4  ;;  %v524_v2 = vshll.u32 %v378_v48, 16  ;;  %v529_v4 = vshrl.u32 %v369_v53, 16 }
  0x30   : > { %v498_v5 = vrot.slane %v497_v61, 4  ;;  %v502_v7 = vrot.slane %v500_v63, 5  ;;  %v511_v9 = vor.u32 %v510_v59, %v507_v54  ;;  %v532_v10 = vshll.u32 %v369_v53, 16  ;;  %v2535_v63 = vld [vmem:[%s2401_s16 + $0xc] sm:$0xf] }
  0x31   : > { %v493_v12 = vsel %vm2427_vm4, %v488_v1, %v492_v45  ;;  %v521_v13 = vor.u32 %v520_v0, %v516_v60  ;;  %v526_v14 = vrot.slane %v524_v2, 5  ;;  %v531_v15 = vrot.slane %v529_v4, 4 }
  0x32   : > { %v503_v19 = vsel %vm2427_vm4, %v498_v5, %v502_v7  ;;  %v512_v20 = vrot.slane %v511_v9, 4  ;;  %v534_v21 = vrot.slane %v532_v10, 5  ;;  %v538_v22 = vshll.u32 %v370_v3, 16  ;;  %v2548_v5 = vld [vmem:[%s2401_s16 + $0x10] sm:$0xf] }
  0x33   : > { %v2510_v24 = vcombine.low %v493_v12, %v503_v19  ;;  %v522_v25 = vrot.slane %v521_v13, 4  ;;  %v542_v26 = vshrl.u32 %v370_v3, 16  ;;  %v2512_v27 = vcombine.low %v369_v53, %v370_v3  ;;  %v2559_v13 = vld [vmem:[%s2401_s16 + $0x18] sm:$0xf] }
  0x34   : > { %v517_v28 = vsel %vm2427_vm4, %v512_v20, %v516_v60  ;;  %v540_v29 = vrot.slane %v538_v22, 5  ;;  %v553_v30 = vshrl.u32 %v371_v18, 16  ;;  %v556_v32 = vshll.u32 %v371_v18, 16 }
  0x35   : > { %2108 = vmatprep.mubr.msk.bf16.mxu0 %vm820_vm1, %v2510_v24  ;;  %v527_v34 = vsel %vm2427_vm4, %v522_v25, %v526_v14  ;;  %v544_v36 = vrot.slane %v542_v26, 4  ;;  %2130 = vmatprep.mubr.msk.bf16.mxu1 %vm820_vm1, %v2512_v27  ;;  %v562_v6 = vshll.u32 %v372_v23, 16  ;;  %v566_v38 = vshrl.u32 %v372_v23, 16  ;;  %v2562_v14 = vld [vmem:[%s2401_s16 + $0x1c] sm:$0xf] }
  0x36   : > { %v2524_v40 = vcombine.low %v517_v28, %v527_v34  ;;  %v555_v41 = vrot.slane %v553_v30, 4  ;;  %v558_v44 = vrot.slane %v556_v32, 5  ;;  %v2526_v45 = vcombine.low %v371_v18, %v372_v23  ;;  %v1926_v25 = vld [vmem:[%s2401_s16 + $0x14] sm:$0x1]  ;;  %v2589_v28 = vld [vmem:[%s2401_s16 + $0x24] sm:$0xf] }
  0x37   : > { %v564_v46 = vrot.slane %v562_v6, 5  ;;  %v568_v47 = vrot.slane %v566_v38, 4  ;;  %v535_v48 = vor.u32 %v534_v21, %v531_v15  ;;  %v545_v50 = vor.u32 %v544_v36, %v540_v29  ;;  %v2594_v34 = vld [vmem:[%s2401_s16 + $0x28] sm:$0xf]  ;;  %v1927_v36 = vld [vmem:[%s2401_s16 + $0x20] sm:$0x1] }
  0x38   : > { %2109 = vmatmul.mubr.msk.bf16.gmra.mxu0 %vm820_vm1, %v2524_v40  ;;  %2131 = vmatmul.mubr.msk.bf16.gmra.mxu1 %vm820_vm1, %v2526_v45  ;;  %v548_v51 = vshll.u32 %v379_v33, 16  ;;  %v559_v52 = vor.u32 %v558_v44, %v555_v41  ;;  %v572_v53 = vshll.u32 %v380_v39, 16  ;;  %v602_v7 = vshrl.u32 %v2535_v63, 16 }
  0x39   : > { %v536_v54 = vrot.slane %v535_v48, 4  ;;  %v546_v55 = vrot.slane %v545_v50, 4  ;;  %v569_v58 = vor.u32 %v568_v47, %v564_v46  ;;  %2154 = vmatprep.mubr.msk.bf16.mxu1 %vm820_vm1, %v2411_v16  ;;  %v605_v9 = vshll.u32 %v2535_v63, 16  ;;  %v2616_v48 = vld [vmem:[%s2401_s16 + $0x30] sm:$0xf] }
  0x3a   : > { %v550_v59 = vrot.slane %v548_v51, 5  ;;  %v560_v60 = vrot.slane %v559_v52, 4  ;;  %v574_v61 = vrot.slane %v572_v53, 5  ;;  %v1547_v12 = vsel %vm845_vm0, %v2423_v35, 0  ;;  %v1928_v50 = vld [vmem:[%s2401_s16 + $0x2c] sm:$0x1] }
  0x3b   : > { %v541_v0 = vsel %vm2427_vm4, %v536_v54, %v540_v29  ;;  %v570_v1 = vrot.slane %v569_v58, 4  ;;  %v611_v15 = vshll.u32 %v2548_v5, 16  ;;  %v615_v18 = vshrl.u32 %v2548_v5, 16  ;;  %v2620_v51 = vld [vmem:[%s2401_s16 + $0x34] sm:$0xf] }
  0x3c   : > { %v551_v2 = vsel %vm2427_vm4, %v546_v55, %v550_v59  ;;  %v565_v3 = vsel %vm2427_vm4, %v560_v60, %v564_v46  ;;  %v604_v35 = vrot.slane %v602_v7, 4  ;;  %v607_v19 = vrot.slane %v605_v9, 5  ;;  %v2626_v55 = vld [vmem:[%s2401_s16 + $0x3c] sm:$0xf] }
  0x3d   : > { %v2543_v4 = vcombine.low %v541_v0, %v551_v2  ;;  %v575_v16 = vsel %vm2427_vm4, %v570_v1, %v574_v61  ;;  %v626_v20 = vshrl.u32 %v2559_v13, 16  ;;  %v635_v21 = vshll.u32 %v2562_v14, 16  ;;  %v2633_v61 = vld [vmem:[%s2401_s16 + $0x40] sm:$0xf] }
  0x3e   : > { %v2552_v10 = vcombine.low %v565_v3, %v575_v16  ;;  %v639_v22 = vshrl.u32 %v2562_v14, 16  ;;  %v617_v23 = vrot.slane %v615_v18, 4  ;;  %v608_v26 = vor.u32 %v607_v19, %v604_v35 }
  0x3f   : > { %2112 = vmatprep.mubr.msk.bf16.mxu0 %vm820_vm1, %v2543_v4  ;;  %v628_v29 = vrot.slane %v626_v20, 4  ;;  %v2591_v32 = vrot.slane %v635_v21, 5  ;;  %v621_v6 = vshll.u32 %v1926_v25, 16  ;;  %v650_v38 = vshrl.u32 %v2589_v28, 16 }
  0x40   : > { %2113 = vmatmul.mubr.msk.bf16.gmra.mxu0 %vm820_vm1, %v2552_v10  ;;  %2155 = vmatmul.mubr.msk.bf16.vlgmr.msra.gmra.mxu1 %vm820_vm1, %v2418_v31  ;;  %v629_v31 = vshll.u32 %v2559_v13, 16  ;;  %v641_v33 = vrot.slane %v639_v22, 4  ;;  %v653_v39 = vshll.u32 %v2589_v28, 16  ;;  %v663_v41 = vshrl.u32 %v2594_v34, 16 }
  0x41   : > { %2136 = vmatprep.mubr.msk.bf16.mxu0 %vm820_vm1, %v2442_v56  ;;  %2189 = vmatpush3.bf16.msra.mxu1 %v1547_v12  ;;  %v2583_v56 = vrot.slane %v611_v15, 5  ;;  %v645_v47 = vshll.u32 %v1927_v36, 16  ;;  %v623_v52 = vrot.slane %v621_v6, 5  ;;  %v652_v53 = vrot.slane %v650_v38, 4 }
  0x42   : > { %2158 = vmatprep.mubr.msk.bf16.mxu1 %vm820_vm1, %v2447_v62  ;;  %v1381_v62 = vsel %vm845_vm0, %v2464_v17, 0  ;;  %v631_v30 = vrot.slane %v629_v31, 5  ;;  %v642_v46 = vor.u32 %v641_v33, %v2591_v32  ;;  %v655_v54 = vrot.slane %v653_v39, 5  ;;  %v2671_v33 = vld [vmem:[%s2401_s16 + $0x48] sm:$0xf] }
  0x43   : > { %v618_v17 = vor.u32 %v617_v23, %v2583_v56  ;;  %v665_v58 = vrot.slane %v663_v41, 4  ;;  %v674_v59 = vshrl.u32 %v2616_v48, 16  ;;  %v677_v60 = vshll.u32 %v2616_v48, 16  ;;  %v2674_v39 = vld [vmem:[%s2401_s16 + $0x4c] sm:$0xf] }
  0x44   : > { %v632_v44 = vor.u32 %v631_v30, %v628_v29  ;;  %v643_v2 = vrot.slane %v642_v46, 4  ;;  %v647_v3 = vrot.slane %v645_v47, 5  ;;  %v683_v16 = vshll.u32 %v2620_v51, 16  ;;  %v2680_v47 = vld [vmem:[%s2401_s16 + $0x54] sm:$0xf] }
  0x45   : > { %v687_v7 = vshrl.u32 %v2620_v51, 16  ;;  %v698_v9 = vshrl.u32 %v2626_v55, 16  ;;  %v701_v12 = vshll.u32 %v2626_v55, 16  ;;  %v669_v18 = vshll.u32 %v1928_v50, 16  ;;  %v2683_v50 = vld [vmem:[%s2401_s16 + $0x58] sm:$0xf] }
  0x46   : > { %v633_v1 = vrot.slane %v632_v44, 4  ;;  %v707_v35 = vshll.u32 %v2633_v61, 16  ;;  %v711_v19 = vshrl.u32 %v2633_v61, 16  ;;  %v679_v31 = vrot.slane %v677_v60, 5 }
  0x47   : > { %v648_v22 = vsel %vm2427_vm4, %v643_v2, %v647_v3  ;;  %v2661_v23 = vrot.slane %v683_v16, 5  ;;  %v703_v25 = vrot.slane %v701_v12, 5  ;;  %v671_v29 = vrot.slane %v669_v18, 5 }
  0x48   : > { %2137 = vmatmul.mubr.msk.bf16.vlgmr.msra.gmra.mxu0 %vm820_vm1, %v2455_v8  ;;  %2159 = vmatmul.mubr.msk.bf16.gmra.mxu1 %vm820_vm1, %v2459_v11  ;;  %v659_v8 = vshll.u32 %v2594_v34, 16  ;;  %v609_v11 = vrot.slane %v608_v26, 4  ;;  %v638_v21 = vsel %vm2427_vm4, %v633_v1, %v2591_v32  ;;  %v2668_v30 = vrot.slane %v707_v35, 5 }
  0x49   : > { %2171 = vmatpush3.bf16.msra.mxu0 %v1381_v62  ;;  %2140 = vmatprep.mubr.msk.bf16.mxu0 %vm820_vm1, %v2484_v43  ;;  %v619_v43 = vrot.slane %v618_v17, 4  ;;  %v1930_v62 = vld [vmem:[%s2401_s16 + $0x44] sm:$0x1]  ;;  %v713_v32 = vrot.slane %v711_v19, 4  ;;  %v722_v46 = vshrl.u32 %v2671_v33, 16  ;;  %v746_v60 = vshrl.u32 %v2680_v47, 16 }
  0x4a   : > { %2162 = vmatprep.mubr.msk.bf16.mxu1 %vm820_vm1, %v2482_v42  ;;  %v2628_v42 = vrot.slane %v659_v8, 5  ;;  %v614_v0 = vsel %vm2427_vm4, %v609_v11, %v2583_v56  ;;  %v1929_v56 = vld [vmem:[%s2401_s16 + $0x38] sm:$0x1]  ;;  %v2003_v8 = vcombine.low %v638_v21, %v648_v22  ;;  %v717_v44 = vshll.u32 %v1930_v62, 16  ;;  %v1931_v19 = vld [vmem:[%s2401_s16 + $0x50] sm:$0x1] }
  0x4b   : > { %v624_v15 = vsel %vm2427_vm4, %v619_v43, %v623_v52  ;;  %v693_v38 = vshll.u32 %v1929_v56, 16  ;;  %v714_v43 = vor.u32 %v713_v32, %v2668_v30  ;;  %v725_v52 = vshll.u32 %v2671_v33, 16  ;;  %v2717_v22 = vld [vmem:[%s2708_s10 + $0x4] sm:$0xf] }
  0x4c   : > { %v666_v20 = vor.u32 %v665_v58, %v2628_v42  ;;  %v2002_v26 = vcombine.low %v614_v0, %v624_v15  ;;  %v749_v0 = vshll.u32 %v2680_v47, 16  ;;  %v755_v1 = vshll.u32 %v2683_v50, 16 }
  0x4d   : > { %v719_v3 = vrot.slane %v717_v44, 5  ;;  %v724_v16 = vrot.slane %v722_v46, 4  ;;  %v1985_v18 = vcombine.low %v2535_v63, %v2548_v5  ;;  %v1932_v5 = vld [vmem:[%s2401_s16 + $0x5c] sm:$0x1]  ;;  %s1911_s16 = sshll.u32 %s352_s13, 3 }
  0x4e   : > { %v667_v17 = vrot.slane %v666_v20, 4  ;;  %v748_v20 = vrot.slane %v746_v60, 4  ;;  %s2795_s25 = scalar_lea.vmem %s2995_s5, %s1911_s16 }
  0x50   : > { %2141 = vmatmul.mubr.msk.bf16.gmra.mxu0 %vm820_vm1, %v2490_v49  ;;  %2163 = vmatmul.mubr.msk.bf16.gmra.mxu1 %vm820_vm1, %v2497_v57  ;;  %v656_v49 = vor.u32 %v655_v54, %v652_v53  ;;  %v676_v57 = vrot.slane %v674_v59, 4  ;;  %v731_v53 = vshll.u32 %v2674_v39, 16  ;;  %v735_v54 = vshrl.u32 %v2674_v39, 16 }
  0x51   : > { %2144 = vmatprep.mubr.msk.bf16.mxu0 %vm820_vm1, %v2510_v24  ;;  %2166 = vmatprep.mubr.msk.bf16.mxu1 %vm820_vm1, %v2512_v27  ;;  %v689_v24 = vrot.slane %v687_v7, 4  ;;  %v700_v27 = vrot.slane %v698_v9, 4  ;;  %v695_v59 = vrot.slane %v693_v38, 5  ;;  %v715_v7 = vrot.slane %v714_v43, 4 }
  0x52   : > { %v657_v36 = vrot.slane %v656_v49, 4  ;;  %v680_v6 = vor.u32 %v679_v31, %v676_v57  ;;  %v727_v9 = vrot.slane %v725_v52, 5  ;;  %v733_v12 = vrot.slane %v731_v53, 5  ;;  %v2714_v49 = vld [vmem:[%s2708_s10] sm:$0xf] }
  0x53   : > { %v690_v41 = vor.u32 %v689_v24, %v2661_v23  ;;  %v704_v11 = vor.u32 %v703_v25, %v700_v27  ;;  %v737_v15 = vrot.slane %v735_v54, 4  ;;  %v751_v57 = vrot.slane %v749_v0, 5 }
  0x54   : > { %v681_v58 = vrot.slane %v680_v6, 4  ;;  %v757_v31 = vrot.slane %v755_v1, 5  ;;  %v720_v62 = vsel %vm2427_vm4, %v715_v7, %v719_v3  ;;  %v728_v27 = vor.u32 %v727_v9, %v724_v16 }
  0x55   : > { %v705_v2 = vrot.slane %v704_v11, 4  ;;  %v738_v25 = vor.u32 %v737_v15, %v733_v12  ;;  %v752_v32 = vor.u32 %v751_v57, %v748_v20  ;;  %v1986_v6 = vcombine.low %v2559_v13, %v2562_v14 }
  0x56   : > { %v686_v56 = vsel %vm2427_vm4, %v681_v58, %v2661_v23  ;;  %v770_v23 = vshrl.u32 %v2714_v49, 16  ;;  %v729_v11 = vrot.slane %v728_v27, 4  ;;  %v1992_v15 = vcombine.low %v2714_v49, %v2717_v22 }
  0x57   : > { %v710_v63 = vsel %vm2427_vm4, %v705_v2, %v2668_v30  ;;  %v779_v30 = vshll.u32 %v2717_v22, 16  ;;  %v739_v44 = vrot.slane %v738_v25, 4  ;;  %v1989_v2 = vcombine.low %v2626_v55, %v2633_v61 }
  0x58   : > { %2145 = vmatmul.mubr.msk.bf16.gmra.mxu0 %vm820_vm1, %v2524_v40  ;;  %2167 = vmatmul.mubr.msk.bf16.gmra.mxu1 %vm820_vm1, %v2526_v45  ;;  %v662_v40 = vsel %vm2427_vm4, %v657_v36, %v2628_v42  ;;  %v672_v45 = vsel %vm2427_vm4, %v667_v17, %v671_v29  ;;  %v691_v42 = vrot.slane %v690_v41, 4  ;;  %v773_v29 = vshll.u32 %v2714_v49, 16  ;;  %v2789_v49 = vld [vmem:[%s2994_s4] ss:$0 sm:$0xff] }
  0x59   : > { %2148 = vmatprep.mubr.msk.bf16.mxu0 %vm820_vm1, %v2543_v4  ;;  %2190 = vmatprep.mubr.msk.bf16.mxu1 %vm820_vm1, %v2002_v26  ;;  %v759_v4 = vshrl.u32 %v2683_v50, 16  ;;  %v2004_v35 = vcombine.low %v662_v40, %v672_v45  ;;  %v741_v26 = vshll.u32 %v1931_v19, 16  ;;  %v765_v17 = vshll.u32 %v1932_v5, 16 }
  0x5a   : > { %v696_v24 = vsel %vm2427_vm4, %v691_v42, %v695_v59  ;;  %v2006_v41 = vcombine.low %v710_v63, %v720_v62  ;;  %v772_v43 = vrot.slane %v770_v23, 4  ;;  %v775_v52 = vrot.slane %v773_v29, 5  ;;  %v600_v59 = vld [vmem:[%s2708_s10 + $0x8] sm:$0x1] }
  0x5b   : > { %v761_v21 = vrot.slane %v759_v4, 4  ;;  %v2005_v38 = vcombine.low %v686_v56, %v696_v24  ;;  %v743_v46 = vrot.slane %v741_v26, 5  ;;  %v781_v53 = vrot.slane %v779_v30, 5 }
  0x5c   : > { %v753_v40 = vrot.slane %v752_v32, 4  ;;  %v767_v58 = vrot.slane %v765_v17, 5  ;;  %v734_v13 = vsel %vm2427_vm4, %v729_v11, %v733_v12  ;;  %v789_v60 = vshll.u32 %v600_v59, 16 }
  0x5d   : > { %v762_v36 = vor.u32 %v761_v21, %v757_v31  ;;  %v744_v14 = vsel %vm2427_vm4, %v739_v44, %v743_v46  ;;  %v1988_v4 = vcombine.low %v2616_v48, %v2620_v51  ;;  %v1990_v55 = vcombine.low %v2671_v33, %v2674_v39 }
  0x5e   : > { %v758_v0 = vsel %vm2427_vm4, %v753_v40, %v757_v31  ;;  %v2007_v42 = vcombine.low %v734_v13, %v744_v14  ;;  %v791_v9 = vrot.slane %v789_v60, 5  ;;  %v1991_v12 = vcombine.low %v2680_v47, %v2683_v50  ;;  %v2784_v50 = vld [vmem:[%s2993_s3] ss:$0 sm:$0xff] }
  0x5f   : > { %v763_v45 = vrot.slane %v762_v36, 4 }
  0x60   : > { %2149 = vmatmul.mubr.msk.bf16.gmra.mxu0 %vm820_vm1, %v2552_v10  ;;  %2191 = vmatmul.mubr.msk.bf16.vlgmr.msra.gmra.mxu1 %vm820_vm1, %v2003_v8  ;;  %v783_v10 = vshrl.u32 %v2717_v22, 16  ;;  %v1987_v8 = vcombine.low %v2589_v28, %v2594_v34  ;;  %v776_v28 = vor.u32 %v775_v52, %v772_v43 }
  0x61   : > { %2172 = vmatprep.mubr.msk.bf16.mxu0 %vm820_vm1, %v1985_v18  ;;  %2194 = vmatprep.mubr.msk.bf16.mxu1 %vm820_vm1, %v2004_v35  ;;  %v768_v1 = vsel %vm2427_vm4, %v763_v45, %v767_v58 }
  0x62   : > { %v785_v54 = vrot.slane %v783_v10, 4  ;;  %v2008_v3 = vcombine.low %v758_v0, %v768_v1  ;;  %v777_v16 = vrot.slane %v776_v28, 4 }
  0x64   : > { %v786_v34 = vor.u32 %v785_v54, %v781_v53  ;;  %v782_v48 = vsel %vm2427_vm4, %v777_v16, %v781_v53 }
  0x66   : > { %v787_v7 = vrot.slane %v786_v34, 4 }
  0x68   : > { %2173 = vmatmul.mubr.msk.bf16.vlgmr.msra.gmra.mxu0 %vm820_vm1, %v1986_v6  ;;  %2195 = vmatmul.mubr.msk.bf16.gmra.mxu1 %vm820_vm1, %v2005_v38  ;;  %v792_v51 = vsel %vm2427_vm4, %v787_v7, %v791_v9 }
  0x69   : > { %2176 = vmatprep.mubr.msk.bf16.mxu0 %vm820_vm1, %v1987_v8  ;;  %2198 = vmatprep.mubr.msk.bf16.mxu1 %vm820_vm1, %v2006_v41  ;;  %v2009_v61 = vcombine.low %v782_v48, %v792_v51 }
  0x70   : > { %2177 = vmatmul.mubr.msk.bf16.gmra.mxu0 %vm820_vm1, %v1988_v4  ;;  %2199 = vmatmul.mubr.msk.bf16.gmra.mxu1 %vm820_vm1, %v2007_v42 }
  0x71   : > { %2180 = vmatprep.mubr.msk.bf16.mxu0 %vm820_vm1, %v1989_v2  ;;  %2202 = vmatprep.mubr.msk.bf16.mxu1 %vm820_vm1, %v2008_v3 }
  0x78   : > { %2181 = vmatmul.mubr.msk.bf16.gmra.mxu0 %vm820_vm1, %v1990_v55  ;;  %2203 = vmatmul.mubr.msk.bf16.gmra.mxu1 %vm820_vm1, %v2009_v61 }
  0x79   : > { %2184 = vmatprep.mubr.msk.bf16.mxu0 %vm820_vm1, %v1991_v12 }
  0x80   : > { %2185 = vmatmul.mubr.msk.bf16.gmra.mxu0 %vm820_vm1, %v1992_v15 }
  0xde   : > { %v2120_v37 = vpop.f32.mrf.mxu1 }
  0xe0   : > { %v1047_v18 = vpop.f32.mrf.mxu1 }
  0xe2   : > { %v2121_v33 = vpop.f32.mrf.mxu1 }
  0xe4   : > { %v1050_v39 = vpop.f32.mrf.mxu1 }
  0xe6   : > { %v2102_v47 = vpop.f32.mrf.mxu0  ;;  %v2124_v35 = vpop.f32.mrf.mxu1 }
  0xe7   : > { %v1056_v19 = vadd.f32 %v2120_v37, %v2102_v47 }
  0xe8   : > { %v883_v20 = vpop.f32.mrf.mxu0  ;;  %v1063_v57 = vpop.f32.mrf.mxu1 }
  0xe9   : > { %v1672_v31 = vmul.f32 %v2784_v50, %v1056_v19  ;;  %v1048_v21 = vadd.f32 %v1047_v18, %v883_v20 }
  0xea   : > { %v2103_v22 = vpop.f32.mrf.mxu0  ;;  %v2125_v56 = vpop.f32.mrf.mxu1 }
  0xeb   : > { %v1694_v24 = vadd.f32 %v2789_v49, %v1672_v31  ;;  %v1670_v63 = vmul.f32 %v2784_v50, %v1048_v21  ;;  %v1059_v5 = vadd.f32 %v2121_v33, %v2103_v22 }
  0xec   : > { %v886_v62 = vpop.f32.mrf.mxu0  ;;  %v1066_v27 = vpop.f32.mrf.mxu1 }
  0xed   : > { %1711 = vst.msk [vmem:[%s2795_s25 + $0x20] sm:$0xff] %vm1708_vm5, %v1694_v24  ;;  %v1692_v25 = vadd.f32 %v2789_v49, %v1670_v63  ;;  %v1673_v26 = vmul.f32 %v2784_v50, %v1059_v5  ;;  %v1051_v23 = vadd.f32 %v1050_v39, %v886_v62 }
  0xee   : > { %v2106_v29 = vpop.f32.mrf.mxu0 }
  0xef   : > { %1709 = vst.msk [vmem:[%s2795_s25] sm:$0xff] %vm1708_vm5, %v1692_v25  ;;  %v1695_v30 = vadd.f32 %v2789_v49, %v1673_v26  ;;  %v1671_v10 = vmul.f32 %v2784_v50, %v1051_v23  ;;  %v1072_v32 = vadd.f32 %v2124_v35, %v2106_v29  ;;  %v2128_v36 = vpop.f32.mrf.mxu1 }
  0xf0   : > { %v899_v17 = vpop.f32.mrf.mxu0 }
  0xf1   : > { %1712 = vst.msk [vmem:[%s2795_s25 + $0x28] sm:$0xff] %vm1708_vm5, %v1695_v30  ;;  %v1693_v6 = vadd.f32 %v2789_v49, %v1671_v10  ;;  %v1676_v38 = vmul.f32 %v2784_v50, %v1072_v32  ;;  %v1064_v8 = vadd.f32 %v1063_v57, %v899_v17  ;;  %v1079_v41 = vpop.f32.mrf.mxu1 }
  0xf2   : > { %v2107_v11 = vpop.f32.mrf.mxu0 }
  0xf3   : > { %1710 = vst.msk [vmem:[%s2795_s25 + $0x8] sm:$0xff] %vm1708_vm5, %v1693_v6  ;;  %v1698_v44 = vadd.f32 %v2789_v49, %v1676_v38  ;;  %v1674_v46 = vmul.f32 %v2784_v50, %v1064_v8  ;;  %v1075_v43 = vadd.f32 %v2125_v56, %v2107_v11  ;;  %v2129_v52 = vpop.f32.mrf.mxu1 }
  0xf4   : > { %v902_v53 = vpop.f32.mrf.mxu0 }
  0xf5   : > { %1715 = vst.msk [vmem:[%s2795_s25 + $0x60] sm:$0xff] %vm1708_vm5, %v1698_v44  ;;  %v1696_v54 = vadd.f32 %v2789_v49, %v1674_v46  ;;  %v1677_v40 = vmul.f32 %v2784_v50, %v1075_v43  ;;  %v1067_v45 = vadd.f32 %v1066_v27, %v902_v53  ;;  %v1082_v58 = vpop.f32.mrf.mxu1 }
  0xf7   : > { %1713 = vst.msk [vmem:[%s2795_s25 + $0x40] sm:$0xff] %vm1708_vm5, %v1696_v54  ;;  %v1699_v59 = vadd.f32 %v2789_v49, %v1677_v40  ;;  %v1675_v13 = vmul.f32 %v2784_v50, %v1067_v45 }
  0xf8   : > { %v2110_v14 = vpop.f32.mrf.mxu0  ;;  %v2132_v28 = vpop.f32.mrf.mxu1 }
  0xf9   : > { %1716 = vst.msk [vmem:[%s2795_s25 + $0x68] sm:$0xff] %vm1708_vm5, %v1699_v59  ;;  %v1697_v34 = vadd.f32 %v2789_v49, %v1675_v13  ;;  %v1088_v60 = vadd.f32 %v2128_v36, %v2110_v14 }
  0xfa   : > { %v915_v0 = vpop.f32.mrf.mxu0  ;;  %v1095_v1 = vpop.f32.mrf.mxu1 }
  0xfb   : > { %1714 = vst.msk [vmem:[%s2795_s25 + $0x48] sm:$0xff] %vm1708_vm5, %v1697_v34  ;;  %v1680_v4 = vmul.f32 %v2784_v50, %v1088_v60  ;;  %v1080_v42 = vadd.f32 %v1079_v41, %v915_v0 }
  0xfc   : > { %v2111_v2 = vpop.f32.mrf.mxu0  ;;  %v2133_v3 = vpop.f32.mrf.mxu1 }
  0xfd   : > { %v1702_v16 = vadd.f32 %v2789_v49, %v1680_v4  ;;  %v1678_v7 = vmul.f32 %v2784_v50, %v1080_v42  ;;  %v1091_v9 = vadd.f32 %v2129_v52, %v2111_v2 }
  0xfe   : > { %v918_v48 = vpop.f32.mrf.mxu0  ;;  %v1098_v51 = vpop.f32.mrf.mxu1 }
  0xff   : > { %1719 = vst.msk [vmem:[%s2795_s25 + $0xa0] sm:$0xff] %vm1708_vm5, %v1702_v16  ;;  %v1700_v55 = vadd.f32 %v2789_v49, %v1678_v7  ;;  %v1681_v61 = vmul.f32 %v2784_v50, %v1091_v9  ;;  %v1083_v12 = vadd.f32 %v1082_v58, %v918_v48 }
 0x100   : > { %v2114_v15 = vpop.f32.mrf.mxu0  ;;  %v2156_v37 = vpop.f32.mrf.mxu1 }
 0x101   : > { %1717 = vst.msk [vmem:[%s2795_s25 + $0x80] sm:$0xff] %vm1708_vm5, %v1700_v55  ;;  %v1703_v18 = vadd.f32 %v2789_v49, %v1681_v61  ;;  %v1679_v33 = vmul.f32 %v2784_v50, %v1083_v12  ;;  %v1104_v39 = vadd.f32 %v2132_v28, %v2114_v15 }
 0x102   : > { %v931_v47 = vpop.f32.mrf.mxu0  ;;  %v1251_v35 = vpop.f32.mrf.mxu1 }
 0x103   : > { %1720 = vst.msk [vmem:[%s2795_s25 + $0xa8] sm:$0xff] %vm1708_vm5, %v1703_v18  ;;  %v1701_v19 = vadd.f32 %v2789_v49, %v1679_v33  ;;  %v1684_v20 = vmul.f32 %v2784_v50, %v1104_v39  ;;  %v1096_v57 = vadd.f32 %v1095_v1, %v931_v47 }
 0x104   : > { %v2115_v31 = vpop.f32.mrf.mxu0  ;;  %v2157_v21 = vpop.f32.mrf.mxu1 }
 0x105   : > { %1718 = vst.msk [vmem:[%s2795_s25 + $0x88] sm:$0xff] %vm1708_vm5, %v1701_v19  ;;  %v1706_v22 = vadd.f32 %v2789_v49, %v1684_v20  ;;  %v1682_v56 = vmul.f32 %v2784_v50, %v1096_v57  ;;  %v1107_v24 = vadd.f32 %v2133_v3, %v2115_v31 }
 0x106   : > { %v934_v63 = vpop.f32.mrf.mxu0  ;;  %v1254_v5 = vpop.f32.mrf.mxu1 }
 0x107   : > { %1723 = vst.msk [vmem:[%s2795_s25 + $0xe0] sm:$0xff] %vm1708_vm5, %v1706_v22  ;;  %v1704_v62 = vadd.f32 %v2789_v49, %v1682_v56  ;;  %v1685_v27 = vmul.f32 %v2784_v50, %v1107_v24  ;;  %v1099_v25 = vadd.f32 %v1098_v51, %v934_v63 }
 0x108   : > { %v2138_v26 = vpop.f32.mrf.mxu0  ;;  %v2160_v23 = vpop.f32.mrf.mxu1 }
 0x109   : > { %1721 = vst.msk [vmem:[%s2795_s25 + $0xc0] sm:$0xff] %vm1708_vm5, %v1704_v62  ;;  %v1707_v29 = vadd.f32 %v2789_v49, %v1685_v27  ;;  %v1683_v30 = vmul.f32 %v2784_v50, %v1099_v25  ;;  %v1260_v7 = vadd.f32 %v2156_v37, %v2138_v26 }
 0x10a   : > { %v1151_v10 = vpop.f32.mrf.mxu0  ;;  %v1267_v32 = vpop.f32.mrf.mxu1 }
 0x10b   : > { %1724 = vst.msk [vmem:[%s2795_s25 + $0xe8] sm:$0xff] %vm1708_vm5, %v1707_v29  ;;  %v1705_v36 = vadd.f32 %v2789_v49, %v1683_v30  ;;  %v1252_v51 = vadd.f32 %v1251_v35, %v1151_v10 }
 0x10c   : > { %v2139_v17 = vpop.f32.mrf.mxu0  ;;  %v2161_v6 = vpop.f32.mrf.mxu1 }
 0x10d   : > { %1722 = vst.msk [vmem:[%s2795_s25 + $0xc8] sm:$0xff] %vm1708_vm5, %v1705_v36  ;;  %v1263_v15 = vadd.f32 %v2157_v21, %v2139_v17 }
 0x10e   : > { %v1154_v38 = vpop.f32.mrf.mxu0  ;;  %v2860_v8 = vpop.f32.mrf.mxu1 }
 0x10f   : > { %v1255_v19 = vadd.f32 %v1254_v5, %v1154_v38 }
 0x110   : > { %v2142_v41 = vpop.f32.mrf.mxu0  ;;  %v2862_v11 = vpop.f32.mrf.mxu1 }
 0x111   : > { %v1276_v22 = vadd.f32 %v2160_v23, %v2142_v41 }
 0x112   : > { %v1167_v44 = vpop.f32.mrf.mxu0  ;;  %v2864_v46 = vpop.f32.mrf.mxu1 }
 0x113   : > { %v1268_v62 = vadd.f32 %v1267_v32, %v1167_v44 }
 0x114   : > { %v2143_v43 = vpop.f32.mrf.mxu0  ;;  %v2866_v52 = vpop.f32.mrf.mxu1 }
 0x115   : > { %v1279_v30 = vadd.f32 %v2161_v6, %v2143_v43 }
 0x116   : > { %v1170_v53 = vpop.f32.mrf.mxu0  ;;  %v2868_v54 = vpop.f32.mrf.mxu1 }
 0x117   : > { %v1271_v44 = vadd.f32 %v2860_v8, %v1170_v53 }
 0x118   : > { %v2870_v40 = vpop.f32.mrf.mxu0  ;;  %v2872_v45 = vpop.f32.mrf.mxu1 }
 0x11a   : > { %v2874_v58 = vpop.f32.mrf.mxu0  ;;  %v2876_v59 = vpop.f32.mrf.mxu1 }
 0x11c   : > { %v2878_v13 = vpop.f32.mrf.mxu0  ;;  %v2880_v14 = vpop.f32.mrf.mxu1 }
 0x11e   : > { %v2882_v28 = vpop.f32.mrf.mxu0  ;;  %v2884_v34 = vpop.f32.mrf.mxu1 }
 0x120   : > { %v2886_v60 = vpop.f32.mrf.mxu0  ;;  %v2192_v0 = vpop.f32.mrf.mxu1 }
 0x122   : > { %v2888_v1 = vpop.f32.mrf.mxu0  ;;  %v1583_v4 = vpop.f32.mrf.mxu1 }
 0x124   : > { %v2890_v42 = vpop.f32.mrf.mxu0  ;;  %v2193_v2 = vpop.f32.mrf.mxu1 }
 0x126   : > { %v2892_v3 = vpop.f32.mrf.mxu0  ;;  %v1586_v16 = vpop.f32.mrf.mxu1 }
 0x128   : > { %v2174_v9 = vpop.f32.mrf.mxu0  ;;  %v2196_v48 = vpop.f32.mrf.mxu1 }
 0x129   : > { %v1482_v55 = vadd.f32 %v2174_v9, %v1260_v7  ;;  %v1292_v7 = vadd.f32 %v2862_v11, %v2870_v40 }
 0x12a   : > { %v1417_v61 = vpop.f32.mrf.mxu0  ;;  %v1599_v12 = vpop.f32.mrf.mxu1 }
 0x12b   : > { %v1648_v18 = vadd.f32 %v2192_v0, %v1482_v55  ;;  %v1480_v33 = vadd.f32 %v1417_v61, %v1252_v51  ;;  %v1284_v55 = vadd.f32 %v2864_v46, %v2874_v58 }
 0x12c   : > { %v2175_v39 = vpop.f32.mrf.mxu0  ;;  %v2197_v47 = vpop.f32.mrf.mxu1 }
 0x12d   : > { %v1727_v20 = vmul.f32 %v2784_v50, %v1648_v18  ;;  %v1646_v57 = vadd.f32 %v1583_v4, %v1480_v33  ;;  %v1483_v31 = vadd.f32 %v2175_v39, %v1263_v15  ;;  %v1295_v33 = vadd.f32 %v2866_v52, %v2878_v13 }
 0x12e   : > { %v1420_v56 = vpop.f32.mrf.mxu0  ;;  %v1602_v37 = vpop.f32.mrf.mxu1 }
 0x12f   : > { %v1743_v35 = vadd.f32 %v2789_v49, %v1727_v20  ;;  %v1725_v24 = vmul.f32 %v2784_v50, %v1646_v57  ;;  %v1649_v63 = vadd.f32 %v2193_v2, %v1483_v31  ;;  %v1481_v21 = vadd.f32 %v1420_v56, %v1255_v19 }
 0x130   : > { %v2178_v27 = vpop.f32.mrf.mxu0  ;;  %v2200_v25 = vpop.f32.mrf.mxu1  ;;  %v1287_v20 = vadd.f32 %v2868_v54, %v2882_v28 }
 0x131   : > { %2022 = vst.msk [vmem:[%s2795_s25 + $0x30] sm:$0xff] %vm1708_vm5, %v1743_v35  ;;  %v1741_v5 = vadd.f32 %v2789_v49, %v1725_v24  ;;  %v1728_v26 = vmul.f32 %v2784_v50, %v1649_v63  ;;  %v1647_v23 = vadd.f32 %v1586_v16, %v1481_v21  ;;  %v1486_v29 = vadd.f32 %v2178_v27, %v1276_v22 }
 0x132   : > { %v1433_v10 = vpop.f32.mrf.mxu0  ;;  %v1615_v36 = vpop.f32.mrf.mxu1  ;;  %v1300_v21 = vadd.f32 %v2876_v59, %v2888_v1 }
 0x133   : > { %2020 = vst.msk [vmem:[%s2795_s25 + $0x10] sm:$0xff] %vm1708_vm5, %v1741_v5  ;;  %v1744_v17 = vadd.f32 %v2789_v49, %v1728_v26  ;;  %v1726_v32 = vmul.f32 %v2784_v50, %v1647_v23  ;;  %v1652_v38 = vadd.f32 %v2196_v48, %v1486_v29  ;;  %v1484_v41 = vadd.f32 %v1433_v10, %v1268_v62 }
 0x134   : > { %v2179_v0 = vpop.f32.mrf.mxu0  ;;  %v2201_v4 = vpop.f32.mrf.mxu1  ;;  %v1311_v26 = vadd.f32 %v2880_v14, %v2890_v42  ;;  %v1303_v10 = vadd.f32 %v2884_v34, %v2892_v3 }
 0x135   : > { %2023 = vst.msk [vmem:[%s2795_s25 + $0x38] sm:$0xff] %vm1708_vm5, %v1744_v17  ;;  %v1742_v6 = vadd.f32 %v2789_v49, %v1726_v32  ;;  %v1731_v43 = vmul.f32 %v2784_v50, %v1652_v38  ;;  %v1650_v2 = vadd.f32 %v1599_v12, %v1484_v41  ;;  %v1487_v16 = vadd.f32 %v2179_v0, %v1279_v30 }
 0x136   : > { %v1436_v9 = vpop.f32.mrf.mxu0  ;;  %v1618_v15 = vpop.f32.mrf.mxu1 }
 0x137   : > { %2021 = vst.msk [vmem:[%s2795_s25 + $0x18] sm:$0xff] %vm1708_vm5, %v1742_v6  ;;  %v1747_v8 = vadd.f32 %v2789_v49, %v1731_v43  ;;  %v1729_v53 = vmul.f32 %v2784_v50, %v1650_v2  ;;  %v1653_v48 = vadd.f32 %v2197_v47, %v1487_v16  ;;  %v1485_v51 = vadd.f32 %v1436_v9, %v1271_v44 }
 0x138   : > { %v2182_v61 = vpop.f32.mrf.mxu0  ;;  %v2204_v31 = vpop.f32.mrf.mxu1 }
 0x139   : > { %2026 = vst.msk [vmem:[%s2795_s25 + $0x70] sm:$0xff] %vm1708_vm5, %v1747_v8  ;;  %v1745_v11 = vadd.f32 %v2789_v49, %v1729_v53  ;;  %v1732_v40 = vmul.f32 %v2784_v50, %v1653_v48  ;;  %v1651_v12 = vadd.f32 %v1602_v37, %v1485_v51  ;;  %v1490_v18 = vadd.f32 %v2182_v61, %v1292_v7 }
 0x13a   : > { %v1449_v39 = vpop.f32.mrf.mxu0  ;;  %v1308_v37 = vadd.f32 %v2872_v45, %v2886_v60  ;;  %v1631_v62 = vpop.f32.mrf.mxu1 }
 0x13b   : > { %2024 = vst.msk [vmem:[%s2795_s25 + $0x50] sm:$0xff] %vm1708_vm5, %v1745_v11  ;;  %v1748_v46 = vadd.f32 %v2789_v49, %v1732_v40  ;;  %v1730_v58 = vmul.f32 %v2784_v50, %v1651_v12  ;;  %v1656_v47 = vadd.f32 %v2200_v25, %v1490_v18  ;;  %v1488_v19 = vadd.f32 %v1449_v39, %v1284_v55 }
 0x13c   : > { %v2183_v57 = vpop.f32.mrf.mxu0 }
 0x13d   : > { %2027 = vst.msk [vmem:[%s2795_s25 + $0x78] sm:$0xff] %vm1708_vm5, %v1748_v46  ;;  %v1746_v52 = vadd.f32 %v2789_v49, %v1730_v58  ;;  %v1735_v13 = vmul.f32 %v2784_v50, %v1656_v47  ;;  %v1654_v22 = vadd.f32 %v1615_v36, %v1488_v19  ;;  %v1491_v56 = vadd.f32 %v2183_v57, %v1295_v33  ;;  %v2205_v36 = vpop.f32.mrf.mxu1 }
 0x13e   : > { %v1452_v35 = vpop.f32.mrf.mxu0 }
 0x13f   : > { %2025 = vst.msk [vmem:[%s2795_s25 + $0x58] sm:$0xff] %vm1708_vm5, %v1746_v52  ;;  %v1751_v54 = vadd.f32 %v2789_v49, %v1735_v13  ;;  %v1733_v28 = vmul.f32 %v2784_v50, %v1654_v22  ;;  %v1657_v24 = vadd.f32 %v2201_v4, %v1491_v56  ;;  %v1489_v63 = vadd.f32 %v1452_v35, %v1287_v20  ;;  %v1634_v4 = vpop.f32.mrf.mxu1 }
 0x140   : > { %v2186_v27 = vpop.f32.mrf.mxu0 }
 0x141   : > { %2030 = vst.msk [vmem:[%s2795_s25 + $0xb0] sm:$0xff] %vm1708_vm5, %v1751_v54  ;;  %v1749_v45 = vadd.f32 %v2789_v49, %v1733_v28  ;;  %v1736_v60 = vmul.f32 %v2784_v50, %v1657_v24  ;;  %v1655_v25 = vadd.f32 %v1618_v15, %v1489_v63  ;;  %v1494_v5 = vadd.f32 %v2186_v27, %v1308_v37 }
 0x142   : > { %v1465_v23 = vpop.f32.mrf.mxu0 }
 0x143   : > { %2028 = vst.msk [vmem:[%s2795_s25 + $0x90] sm:$0xff] %vm1708_vm5, %v1749_v45  ;;  %v1752_v59 = vadd.f32 %v2789_v49, %v1736_v60  ;;  %v1734_v1 = vmul.f32 %v2784_v50, %v1655_v25  ;;  %v1660_v29 = vadd.f32 %v2204_v31, %v1494_v5  ;;  %v1492_v30 = vadd.f32 %v1465_v23, %v1300_v21 }
 0x144   : > { %v2187_v17 = vpop.f32.mrf.mxu0 }
 0x145   : > { %2031 = vst.msk [vmem:[%s2795_s25 + $0xb8] sm:$0xff] %vm1708_vm5, %v1752_v59  ;;  %v1750_v14 = vadd.f32 %v2789_v49, %v1734_v1  ;;  %v1739_v42 = vmul.f32 %v2784_v50, %v1660_v29  ;;  %v1658_v32 = vadd.f32 %v1631_v62, %v1492_v30  ;;  %v1495_v38 = vadd.f32 %v2187_v17, %v1311_v26 }
 0x146   : > { %v1468_v41 = vpop.f32.mrf.mxu0 }
 0x147   : > { %2029 = vst.msk [vmem:[%s2795_s25 + $0x98] sm:$0xff] %vm1708_vm5, %v1750_v14  ;;  %v1755_v44 = vadd.f32 %v2789_v49, %v1739_v42  ;;  %v1737_v34 = vmul.f32 %v2784_v50, %v1658_v32  ;;  %v1661_v3 = vadd.f32 %v2205_v36, %v1495_v38  ;;  %v1493_v0 = vadd.f32 %v1468_v41, %v1303_v10 }
 0x149   : > { %2034 = vst.msk [vmem:[%s2795_s25 + $0xf0] sm:$0xff] %vm1708_vm5, %v1755_v44  ;;  %v1753_v6 = vadd.f32 %v2789_v49, %v1737_v34  ;;  %v1740_v43 = vmul.f32 %v2784_v50, %v1661_v3  ;;  %v1659_v2 = vadd.f32 %v1634_v4, %v1493_v0 }
 0x14b   : > { %2032 = vst.msk [vmem:[%s2795_s25 + $0xd0] sm:$0xff] %vm1708_vm5, %v1753_v6  ;;  %v1756_v16 = vadd.f32 %v2789_v49, %v1740_v43  ;;  %v1738_v7 = vmul.f32 %v2784_v50, %v1659_v2 }
 0x14d   : > { %2035 = vst.msk [vmem:[%s2795_s25 + $0xf8] sm:$0xff] %vm1708_vm5, %v1756_v16  ;;  %v1754_v9 = vadd.f32 %v2789_v49, %v1738_v7 }
 0x14f   : > { %2033 = vst.msk [vmem:[%s2795_s25 + $0xd8] sm:$0xff] %vm1708_vm5, %v1754_v9 }
 0x150 PF: > { %s15_s22 = sadd.s32 1, %s2309_s22   ;;  %s2999_s18 = smov %s2301_s20 }
 0x151   : > { %p12_p9 = scmp.ge.s32.totalorder %s15_s22, 6   ;;  %s3000_s19 = smov %s2305_s21 }
 0x152   : > { %s3001_s20 = smov %s3004_s23  ;;  %s3002_s21 = smov %s3008_s24 }
 0x153   :  { %14 = sbr.rel (!%p12_p9) target bundleno = 3 (0x3), region = 80 }

// kernel: upsampling_layer.2
= control target key start
LH: loop header
LB: loop body
LE: loop exit
PB: predicated region body
PF: predicated region fallthrough
CT: control target
= control target key end

     0   :  { %s2494_s12 = smov 0   ;;  %s2496_s13 = smov 0   ;;  %s3596_s0 = inlined_call_operand.vmem [shape: bf16[2,17,17,4], index: 0, kind: input, shape index: {}, may-alias: {0,1}]   ;;  %s3597_s1 = inlined_call_operand.vmem [shape: bf16[2,17,17,4], index: 1, kind: input, shape index: {}, may-alias: {0,1}]   ;;  %s3598_s2 = inlined_call_operand.vmem [shape: bf16[6,4,16], index: 2, kind: input, shape index: {}]   ;;  %s3599_s3 = inlined_call_operand.vmem [shape: f32[2,2,4,16], index: 3, kind: output, shape index: {}]  }
   0x1   :  { %s2498_s14 = smov 0   ;;  %s2500_s15 = smov 0  }
   0x2   :  { %s2502_s16 = smov 0  }
   0x3 LB: > { %s22_s17 = sadd.s32 1, %s2464_s14  ;;  %s25_s18 = sadd.s32 1, %s2468_s15  ;;  %s2472_s16 = sphi %s2502_s16, %s13_s16   ;;  %s2468_s15 = sphi %s2500_s15, %s3673_s15   ;;  %s2464_s14 = sphi %s2498_s14, %s3672_s14   ;;  %s2460_s13 = sphi %s2496_s13, %s3671_s13   ;;  %s2456_s12 = sphi %s2494_s12, %s3670_s12  }
   0x4   : > { %p23_p0 = scmp.ge.s32.totalorder %s22_s17, 2  ;;  %p2079_p1 = scmp.ge.s32.totalorder %s2472_s16, 1 }
   0x5   : > { %p201_p2 = scmp.lt.s32.totalorder %s2472_s16, 5 }
   0x6   : > { %s3675_s17 = smov (%p23_p0, %s22_s17), 0  ;;  %s3677_s18 = smov (!%p23_p0, %s25_s18), %s2468_s15 }
   0x7   : > { %p202_p3 = pnand %p2079_p1, %p201_p2  ;;  %p27_p4 = scmp.ge.s32.totalorder %s3677_s18, 2 }
   0x9   : > { %s3679_s18 = smov (%p27_p4, %s3677_s18), 0  ;;  %205 = sbr.rel (%p202_p3) target bundleno = 405 (0x195), region = 32 }
   0xe   : > { %v734_v0 = vld [vmem:[%s3598_s2] sm:$0x3]  ;;  %vm3600_vm0 = vcmask 1041408   ;;  %v2110_v1 = vld [vmem:[%s3598_s2 + $0x2] sm:$0x3]  ;;  %s2533_s23 = sshll.u32 %s2456_s12, 3 }
   0xf   : > { %2368 = vmatprep.subr.msk.bf16.mxu1 %vm3600_vm0, %v734_v0  ;;  %v952_v2 = vsel %vm3600_vm0, %v734_v0, 0  ;;  %2367 = vmatprep.subr.msk.bf16.mxu0 %vm3600_vm0, %v2110_v1  ;;  %p257_p5 = scmp.lt.s32.totalorder %s2460_s13, 1  ;;  %p259_p6 = scmp.lt.s32.totalorder %s2533_s23, 16  ;;  %v788_v3 = vsel %vm3600_vm0, %v2110_v1, 0  ;;  %v2144_v4 = vld [vmem:[%s3598_s2 + $0x6] sm:$0x3] }
  0x10   : > { %2278 = vmatpush3.bf16.msra.mxu1 %v952_v2  ;;  %2260 = vmatpush3.bf16.msra.mxu0 %v788_v3  ;;  %v2143_v5 = vld [vmem:[%s3598_s2 + $0x4] sm:$0x3]  ;;  %vm761_vm1 = vcmask 31744   ;;  %vm322_vm2 = vsmask.f32 3328  ;;  %v2560_v6 = vsel %vm3600_vm0, %v2144_v4, 0 }
  0x11   : > { %s3681_s13 = smov (!%p257_p5, %s2460_s13), 1  ;;  %2369 = vmatprep.subr.msk.bf16.mxu0 %vm3600_vm0, %v2144_v4  ;;  %2370 = vmatprep.subr.msk.bf16.mxu1 %vm3600_vm0, %v2143_v5  ;;  %vm323_vm3 = vsmask.f32 7440  ;;  %v1156_v7 = vsel %vm3600_vm0, %v2143_v5, 0  ;;  %v2579_v35 = vld [vmem:[%s3598_s2 + $0xa] sm:$0x3] }
  0x12   : > { %s260_s28 = scalar_select %p259_p6, %s2533_s23, 16  ;;  %vm2583_vm4 = vmor %vm322_vm2, %vm323_vm3  ;;  %vm1707_vm8 = vcmask 130048  }
  0x13   : > { %s2374_s29 = smul.u32 51, %s3681_s13  ;;  %s2204_s20 = sadd.s32 8, %s2533_s23 }
  0x14   : > { %s2373_s30 = smul.u32 3, %s260_s28  ;;  %p2735_p7 = scmp.lt.s32.totalorder %s2204_s20, 16 }
  0x15   : > { %p291_p9 = scmp.lt.s32.totalorder %s2456_s12, 1 }
  0x16   : > { %s263_s4 = sadd.s32 %s2374_s29, %s2373_s30  ;;  %s3683_s20 = smov (!%p2735_p7, %s2204_s20), 16 }
  0x17   : > { %s2081_s5 = sshll.u32 %s263_s4, 2  ;;  %s3685_s20 = smov (!%p2735_p7, %s3683_s20), 16 }
  0x18   : > { %s2557_s8 = scalar_lea.vmem %s3596_s0, %s2081_s5  ;;  %s2375_s22 = smul.u32 3, %s3685_s20 }
  0x19   : > { %v298_v8 = vld [vmem:[%s2557_s8] sm:$0xf]  ;;  %v299_v9 = vld [vmem:[%s2557_s8 + $0x4] sm:$0xf]  ;;  %v300_v10 = vld [vmem:[%s2557_s8 + $0xc] sm:$0xf] }
  0x1a   : > { %v326_v11 = vshrl.u32 %v298_v8, 16  ;;  %v329_v12 = vshll.u32 %v298_v8, 16  ;;  %v335_v13 = vshll.u32 %v299_v9, 16  ;;  %v339_v14 = vshrl.u32 %v299_v9, 16  ;;  %v301_v15 = vld [vmem:[%s2557_s8 + $0x10] sm:$0xf]  ;;  %s2822_s24 = sadd.s32 %s2375_s22, %s2374_s29 }
  0x1b   : > { %v2567_v16 = vcombine.low %v298_v8, %v299_v9  ;;  %v350_v17 = vshrl.u32 %v300_v10, 16  ;;  %v353_v18 = vshll.u32 %v300_v10, 16  ;;  %v359_v19 = vshll.u32 %v301_v15, 16  ;;  %v314_v20 = vld [vmem:[%s2557_s8 + $0x8] sm:$0x1]  ;;  %s2086_s25 = sshll.u32 %s2822_s24, 2 }
  0x1c   : > { %v328_v21 = vrot.slane %v326_v11, 4  ;;  %v331_v22 = vrot.slane %v329_v12, 5  ;;  %v337_v23 = vrot.slane %v335_v13, 5  ;;  %v341_v24 = vrot.slane %v339_v14, 4  ;;  %v315_v25 = vld [vmem:[%s2557_s8 + $0x14] sm:$0x1]  ;;  %s2864_s28 = scalar_lea.vmem %s3597_s1, %s2086_s25 }
  0x1d   : > { %2279 = vmatprep.mubr.msk.bf16.mxu1 %vm761_vm1, %v2567_v16  ;;  %v352_v26 = vrot.slane %v350_v17, 4  ;;  %v355_v27 = vrot.slane %v353_v18, 5  ;;  %v361_v28 = vrot.slane %v359_v19, 5  ;;  %v363_v29 = vshrl.u32 %v301_v15, 16  ;;  %v302_v30 = vld [vmem:[%s2557_s8 + $0x18] sm:$0xf] }
  0x1e   : > { %v2574_v31 = vcombine.low %v300_v10, %v301_v15  ;;  %v332_v32 = vor.u32 %v331_v22, %v328_v21  ;;  %v342_v33 = vor.u32 %v341_v24, %v337_v23  ;;  %v345_v34 = vshll.u32 %v314_v20, 16  ;;  %v303_v40 = vld [vmem:[%s2557_s8 + $0x1c] sm:$0xf]  ;;  %v304_v50 = vld [vmem:[%s2557_s8 + $0x24] sm:$0xf]  ;;  %s1604_s29 = ssub.s32 16, %s2533_s23 }
  0x1f   : > { %v365_v36 = vrot.slane %v363_v29, 4  ;;  %v356_v38 = vor.u32 %v355_v27, %v352_v26  ;;  %v369_v39 = vshll.u32 %v315_v25, 16  ;;  %v374_v41 = vshrl.u32 %v302_v30, 16  ;;  %v305_v55 = vld [vmem:[%s2557_s8 + $0x28] sm:$0xf]  ;;  %p1605_p8 = scmp.lt.s32.totalorder %s1604_s29, 8 }
  0x20   : > { %2280 = vmatmul.mubr.msk.bf16.vlgmr.msra.gmra.mxu1 %vm761_vm1, %v2574_v31  ;;  %v333_v42 = vrot.slane %v332_v32, 4  ;;  %v343_v43 = vrot.slane %v342_v33, 4  ;;  %v347_v44 = vrot.slane %v345_v34, 5  ;;  %v377_v45 = vshll.u32 %v302_v30, 16  ;;  %v316_v60 = vld [vmem:[%s2557_s8 + $0x20] sm:$0x1] }
  0x21   : > { %v357_v46 = vrot.slane %v356_v38, 4  ;;  %v366_v47 = vor.u32 %v365_v36, %v361_v28  ;;  %v371_v48 = vrot.slane %v369_v39, 5  ;;  %2314 = vmatpush3.bf16.msra.mxu1 %v1156_v7  ;;  %v376_v49 = vrot.slane %v374_v41, 4  ;;  %v317_v1 = vld [vmem:[%s2557_s8 + $0x2c] sm:$0x1]  ;;  %s3687_s29 = smov (!%p1605_p8, %s1604_s29), 8 }
  0x22   : > { %v338_v51 = vsel %vm2583_vm4, %v333_v42, %v337_v23  ;;  %v348_v52 = vsel %vm2583_vm4, %v343_v43, %v347_v44  ;;  %v379_v53 = vrot.slane %v377_v45, 5  ;;  %v383_v54 = vshll.u32 %v303_v40, 16  ;;  %2372 = vmatprep.subr.msk.bf16.mxu1 %vm3600_vm0, %v2579_v35  ;;  %v306_v7 = vld [vmem:[%s2557_s8 + $0x30] sm:$0xf]  ;;  %v2620_v17 = vld [vmem:[%s3598_s2 + $0x8] sm:$0x3] }
  0x23   : > { %v2598_v56 = vcombine.low %v338_v51, %v348_v52  ;;  %v362_v57 = vsel %vm2583_vm4, %v357_v46, %v361_v28  ;;  %v367_v58 = vrot.slane %v366_v47, 4  ;;  %v387_v59 = vshrl.u32 %v303_v40, 16  ;;  %v307_v21 = vld [vmem:[%s2557_s8 + $0x34] sm:$0xf]  ;;  %v308_v32 = vld [vmem:[%s2557_s8 + $0x3c] sm:$0xf] }
  0x24   : > { %v385_v61 = vrot.slane %v383_v54, 5  ;;  %v2603_v62 = vcombine.low %v302_v30, %v303_v40  ;;  %v398_v63 = vshrl.u32 %v304_v50, 16  ;;  %v401_v0 = vshll.u32 %v304_v50, 16  ;;  %v309_v38 = vld [vmem:[%s2557_s8 + $0x40] sm:$0xf]  ;;  %s2196_s30 = sshll.u32 %s3687_s29, 4 }
  0x25   : > { %2261 = vmatprep.mubr.msk.bf16.mxu0 %vm761_vm1, %v2598_v56  ;;  %v372_v2 = vsel %vm2583_vm4, %v367_v58, %v371_v48  ;;  %v389_v3 = vrot.slane %v387_v59, 4  ;;  %v407_v4 = vshll.u32 %v305_v55, 16  ;;  %v411_v5 = vshrl.u32 %v305_v55, 16  ;;  %v318_v47 = vld [vmem:[%s2557_s8 + $0x38] sm:$0x1]  ;;  %s1642_s23 = scvt.s32.f32 %s2196_s30  ;;  %s3689_s12 = smov (!%p291_p9, %s2456_s12), 1 }
  0x26   : > { %v2611_v8 = vcombine.low %v362_v57, %v372_v2  ;;  %2283 = vmatprep.mubr.msk.bf16.mxu1 %vm761_vm1, %v2603_v62  ;;  %v400_v9 = vrot.slane %v398_v63, 4  ;;  %v403_v10 = vrot.slane %v401_v0, 5  ;;  %v2615_v11 = vcombine.low %v304_v50, %v305_v55  ;;  %v319_v48 = vld [vmem:[%s2557_s8 + $0x44] sm:$0x1]  ;;  %s2087_s4 = sshll.u32 %s3681_s13, 1 }
  0x27   : > { %v409_v12 = vrot.slane %v407_v4, 5  ;;  %v413_v13 = vrot.slane %v411_v5, 4  ;;  %v380_v14 = vor.u32 %v379_v53, %v376_v49  ;;  %v390_v15 = vor.u32 %v389_v3, %v385_v61  ;;  %v310_v53 = vld [vmem:[%s2557_s8 + $0x48] sm:$0xf]  ;;  %v311_v3 = vld [vmem:[%s2557_s8 + $0x4c] sm:$0xf]  ;;  %s294_s5 = sadd.s32 %s2087_s4, %s3689_s12 }
  0x28   : > { %2262 = vmatmul.mubr.msk.bf16.vlgmr.msra.gmra.mxu0 %vm761_vm1, %v2611_v8  ;;  %2284 = vmatmul.mubr.msk.bf16.gmra.mxu1 %vm761_vm1, %v2615_v11  ;;  %v393_v18 = vshll.u32 %v316_v60, 16  ;;  %v404_v19 = vor.u32 %v403_v10, %v400_v9  ;;  %v417_v20 = vshll.u32 %v317_v1, 16  ;;  %v422_v22 = vshrl.u32 %v306_v7, 16  ;;  %s2088_s6 = sshll.u32 %s294_s5, 2 }
  0x29   : > { %2296 = vmatpush3.bf16.msra.mxu0 %v2560_v6  ;;  %v381_v23 = vrot.slane %v380_v14, 4  ;;  %v391_v24 = vrot.slane %v390_v15, 4  ;;  %v414_v25 = vor.u32 %v413_v13, %v409_v12  ;;  %v425_v26 = vshll.u32 %v306_v7, 16  ;;  %s296_s9 = scalar_lea.vmem %s3599_s3, %s2088_s6 }
  0x2a   : > { %v395_v27 = vrot.slane %v393_v18, 5  ;;  %v405_v28 = vrot.slane %v404_v19, 4  ;;  %v419_v29 = vrot.slane %v417_v20, 5  ;;  %v424_v30 = vrot.slane %v422_v22, 4  ;;  %2371 = vmatprep.subr.msk.bf16.mxu0 %vm3600_vm0, %v2620_v17  ;;  %v312_v18 = vld [vmem:[%s2557_s8 + $0x54] sm:$0xf] }
  0x2b   : > { %v386_v33 = vsel %vm2583_vm4, %v381_v23, %v385_v61  ;;  %v415_v34 = vrot.slane %v414_v25, 4  ;;  %v427_v36 = vrot.slane %v425_v26, 5  ;;  %v431_v6 = vshll.u32 %v307_v21, 16  ;;  %v313_v23 = vld [vmem:[%s2557_s8 + $0x58] sm:$0xf] }
  0x2c   : > { %v396_v39 = vsel %vm2583_vm4, %v391_v24, %v395_v27  ;;  %v410_v40 = vsel %vm2583_vm4, %v405_v28, %v409_v12  ;;  %v435_v41 = vshrl.u32 %v307_v21, 16  ;;  %v2638_v42 = vcombine.low %v306_v7, %v307_v21 }
  0x2d   : > { %v2640_v43 = vcombine.low %v386_v33, %v396_v39  ;;  %v420_v44 = vsel %vm2583_vm4, %v415_v34, %v419_v29  ;;  %v433_v45 = vrot.slane %v431_v6, 5  ;;  %v446_v46 = vshrl.u32 %v308_v32, 16  ;;  %v320_v33 = vld [vmem:[%s2557_s8 + $0x50] sm:$0x1]  ;;  %v321_v39 = vld [vmem:[%s2557_s8 + $0x5c] sm:$0x1] }
  0x2e   : > { %v2646_v49 = vcombine.low %v410_v40, %v420_v44  ;;  %v437_v50 = vrot.slane %v435_v41, 4  ;;  %2287 = vmatprep.mubr.msk.bf16.mxu1 %vm761_vm1, %v2638_v42  ;;  %v449_v51 = vshll.u32 %v308_v32, 16  ;;  %v455_v52 = vshll.u32 %v309_v38, 16 }
  0x2f   : > { %2265 = vmatprep.mubr.msk.bf16.mxu0 %vm761_vm1, %v2640_v43  ;;  %v448_v54 = vrot.slane %v446_v46, 4  ;;  %v459_v55 = vshrl.u32 %v309_v38, 16  ;;  %v2653_v57 = vcombine.low %v308_v32, %v309_v38  ;;  %v428_v58 = vor.u32 %v427_v36, %v424_v30 }
  0x30   : > { %2266 = vmatmul.mubr.msk.bf16.gmra.mxu0 %vm761_vm1, %v2646_v49  ;;  %v451_v59 = vrot.slane %v449_v51, 5  ;;  %v457_v60 = vrot.slane %v455_v52, 5  ;;  %v438_v61 = vor.u32 %v437_v50, %v433_v45  ;;  %v441_v63 = vshll.u32 %v318_v47, 16 }
  0x31   : > { %v461_v0 = vrot.slane %v459_v55, 4  ;;  %2288 = vmatmul.mubr.msk.bf16.gmra.mxu1 %vm761_vm1, %v2653_v57  ;;  %v429_v1 = vrot.slane %v428_v58, 4  ;;  %v465_v2 = vshll.u32 %v319_v48, 16  ;;  %v470_v4 = vshrl.u32 %v310_v53, 16 }
  0x32   : > { %v439_v5 = vrot.slane %v438_v61, 4  ;;  %v443_v7 = vrot.slane %v441_v63, 5  ;;  %v452_v9 = vor.u32 %v451_v59, %v448_v54  ;;  %v473_v10 = vshll.u32 %v310_v53, 16  ;;  %v2691_v63 = vld [vmem:[%s2557_s8 + $0xc] sm:$0xf] }
  0x33   : > { %v434_v12 = vsel %vm2583_vm4, %v429_v1, %v433_v45  ;;  %v462_v13 = vor.u32 %v461_v0, %v457_v60  ;;  %v467_v14 = vrot.slane %v465_v2, 5  ;;  %v472_v15 = vrot.slane %v470_v4, 4 }
  0x34   : > { %v444_v19 = vsel %vm2583_vm4, %v439_v5, %v443_v7  ;;  %v453_v20 = vrot.slane %v452_v9, 4  ;;  %v475_v21 = vrot.slane %v473_v10, 5  ;;  %v479_v22 = vshll.u32 %v311_v3, 16  ;;  %v2704_v5 = vld [vmem:[%s2557_s8 + $0x10] sm:$0xf] }
  0x35   : > { %v2666_v24 = vcombine.low %v434_v12, %v444_v19  ;;  %v463_v25 = vrot.slane %v462_v13, 4  ;;  %v483_v26 = vshrl.u32 %v311_v3, 16  ;;  %v2668_v27 = vcombine.low %v310_v53, %v311_v3  ;;  %v2715_v13 = vld [vmem:[%s2557_s8 + $0x18] sm:$0xf] }
  0x36   : > { %v458_v28 = vsel %vm2583_vm4, %v453_v20, %v457_v60  ;;  %v481_v29 = vrot.slane %v479_v22, 5  ;;  %v494_v30 = vshrl.u32 %v312_v18, 16  ;;  %v497_v32 = vshll.u32 %v312_v18, 16 }
  0x37   : > { %2269 = vmatprep.mubr.msk.bf16.mxu0 %vm761_vm1, %v2666_v24  ;;  %v468_v34 = vsel %vm2583_vm4, %v463_v25, %v467_v14  ;;  %v485_v36 = vrot.slane %v483_v26, 4  ;;  %2291 = vmatprep.mubr.msk.bf16.mxu1 %vm761_vm1, %v2668_v27  ;;  %v503_v6 = vshll.u32 %v313_v23, 16  ;;  %v507_v38 = vshrl.u32 %v313_v23, 16  ;;  %v2718_v14 = vld [vmem:[%s2557_s8 + $0x1c] sm:$0xf] }
  0x38   : > { %v2680_v40 = vcombine.low %v458_v28, %v468_v34  ;;  %v496_v41 = vrot.slane %v494_v30, 4  ;;  %v499_v44 = vrot.slane %v497_v32, 5  ;;  %v2682_v45 = vcombine.low %v312_v18, %v313_v23  ;;  %v2103_v25 = vld [vmem:[%s2557_s8 + $0x14] sm:$0x1]  ;;  %v2745_v28 = vld [vmem:[%s2557_s8 + $0x24] sm:$0xf] }
  0x39   : > { %v505_v46 = vrot.slane %v503_v6, 5  ;;  %v509_v47 = vrot.slane %v507_v38, 4  ;;  %v476_v48 = vor.u32 %v475_v21, %v472_v15  ;;  %v486_v50 = vor.u32 %v485_v36, %v481_v29  ;;  %v2750_v34 = vld [vmem:[%s2557_s8 + $0x28] sm:$0xf]  ;;  %v2104_v36 = vld [vmem:[%s2557_s8 + $0x20] sm:$0x1] }
  0x3a   : > { %2270 = vmatmul.mubr.msk.bf16.gmra.mxu0 %vm761_vm1, %v2680_v40  ;;  %2292 = vmatmul.mubr.msk.bf16.gmra.mxu1 %vm761_vm1, %v2682_v45  ;;  %v489_v51 = vshll.u32 %v320_v33, 16  ;;  %v500_v52 = vor.u32 %v499_v44, %v496_v41  ;;  %v513_v53 = vshll.u32 %v321_v39, 16  ;;  %v543_v7 = vshrl.u32 %v2691_v63, 16 }
  0x3b   : > { %v477_v54 = vrot.slane %v476_v48, 4  ;;  %v487_v55 = vrot.slane %v486_v50, 4  ;;  %v510_v58 = vor.u32 %v509_v47, %v505_v46  ;;  %2315 = vmatprep.mubr.msk.bf16.mxu1 %vm761_vm1, %v2567_v16  ;;  %v546_v9 = vshll.u32 %v2691_v63, 16  ;;  %v2772_v48 = vld [vmem:[%s2557_s8 + $0x30] sm:$0xf] }
  0x3c   : > { %v491_v59 = vrot.slane %v489_v51, 5  ;;  %v501_v60 = vrot.slane %v500_v52, 4  ;;  %v515_v61 = vrot.slane %v513_v53, 5  ;;  %v1488_v12 = vsel %vm3600_vm0, %v2579_v35, 0  ;;  %v2105_v50 = vld [vmem:[%s2557_s8 + $0x2c] sm:$0x1] }
  0x3d   : > { %v482_v0 = vsel %vm2583_vm4, %v477_v54, %v481_v29  ;;  %v511_v1 = vrot.slane %v510_v58, 4  ;;  %v552_v15 = vshll.u32 %v2704_v5, 16  ;;  %v556_v18 = vshrl.u32 %v2704_v5, 16  ;;  %v2776_v51 = vld [vmem:[%s2557_s8 + $0x34] sm:$0xf] }
  0x3e   : > { %v492_v2 = vsel %vm2583_vm4, %v487_v55, %v491_v59  ;;  %v506_v3 = vsel %vm2583_vm4, %v501_v60, %v505_v46  ;;  %v545_v35 = vrot.slane %v543_v7, 4  ;;  %v548_v19 = vrot.slane %v546_v9, 5  ;;  %v2782_v55 = vld [vmem:[%s2557_s8 + $0x3c] sm:$0xf] }
  0x3f   : > { %v2699_v4 = vcombine.low %v482_v0, %v492_v2  ;;  %v516_v16 = vsel %vm2583_vm4, %v511_v1, %v515_v61  ;;  %v567_v20 = vshrl.u32 %v2715_v13, 16  ;;  %v576_v21 = vshll.u32 %v2718_v14, 16  ;;  %v2789_v61 = vld [vmem:[%s2557_s8 + $0x40] sm:$0xf] }
  0x40   : > { %v2708_v10 = vcombine.low %v506_v3, %v516_v16  ;;  %v580_v22 = vshrl.u32 %v2718_v14, 16  ;;  %v558_v23 = vrot.slane %v556_v18, 4  ;;  %v549_v26 = vor.u32 %v548_v19, %v545_v35 }
  0x41   : > { %2273 = vmatprep.mubr.msk.bf16.mxu0 %vm761_vm1, %v2699_v4  ;;  %v569_v29 = vrot.slane %v567_v20, 4  ;;  %v2747_v32 = vrot.slane %v576_v21, 5  ;;  %v562_v6 = vshll.u32 %v2103_v25, 16  ;;  %v591_v38 = vshrl.u32 %v2745_v28, 16 }
  0x42   : > { %2274 = vmatmul.mubr.msk.bf16.gmra.mxu0 %vm761_vm1, %v2708_v10  ;;  %2316 = vmatmul.mubr.msk.bf16.vlgmr.msra.gmra.mxu1 %vm761_vm1, %v2574_v31  ;;  %v570_v31 = vshll.u32 %v2715_v13, 16  ;;  %v582_v33 = vrot.slane %v580_v22, 4  ;;  %v594_v39 = vshll.u32 %v2745_v28, 16  ;;  %v604_v41 = vshrl.u32 %v2750_v34, 16 }
  0x43   : > { %2297 = vmatprep.mubr.msk.bf16.mxu0 %vm761_vm1, %v2598_v56  ;;  %2350 = vmatpush3.bf16.msra.mxu1 %v1488_v12  ;;  %v2739_v56 = vrot.slane %v552_v15, 5  ;;  %v586_v47 = vshll.u32 %v2104_v36, 16  ;;  %v564_v52 = vrot.slane %v562_v6, 5  ;;  %v593_v53 = vrot.slane %v591_v38, 4 }
  0x44   : > { %2319 = vmatprep.mubr.msk.bf16.mxu1 %vm761_vm1, %v2603_v62  ;;  %v1322_v62 = vsel %vm3600_vm0, %v2620_v17, 0  ;;  %v572_v30 = vrot.slane %v570_v31, 5  ;;  %v583_v46 = vor.u32 %v582_v33, %v2747_v32  ;;  %v596_v54 = vrot.slane %v594_v39, 5  ;;  %v2827_v33 = vld [vmem:[%s2557_s8 + $0x48] sm:$0xf] }
  0x45   : > { %v559_v17 = vor.u32 %v558_v23, %v2739_v56  ;;  %v606_v58 = vrot.slane %v604_v41, 4  ;;  %v615_v59 = vshrl.u32 %v2772_v48, 16  ;;  %v618_v60 = vshll.u32 %v2772_v48, 16  ;;  %v2830_v39 = vld [vmem:[%s2557_s8 + $0x4c] sm:$0xf] }
  0x46   : > { %v573_v44 = vor.u32 %v572_v30, %v569_v29  ;;  %v584_v2 = vrot.slane %v583_v46, 4  ;;  %v588_v3 = vrot.slane %v586_v47, 5  ;;  %v624_v16 = vshll.u32 %v2776_v51, 16  ;;  %v2836_v47 = vld [vmem:[%s2557_s8 + $0x54] sm:$0xf] }
  0x47   : > { %v628_v7 = vshrl.u32 %v2776_v51, 16  ;;  %v639_v9 = vshrl.u32 %v2782_v55, 16  ;;  %v642_v12 = vshll.u32 %v2782_v55, 16  ;;  %v610_v18 = vshll.u32 %v2105_v50, 16  ;;  %v2839_v50 = vld [vmem:[%s2557_s8 + $0x58] sm:$0xf] }
  0x48   : > { %v574_v1 = vrot.slane %v573_v44, 4  ;;  %v648_v35 = vshll.u32 %v2789_v61, 16  ;;  %v652_v19 = vshrl.u32 %v2789_v61, 16  ;;  %v620_v31 = vrot.slane %v618_v60, 5 }
  0x49   : > { %v589_v22 = vsel %vm2583_vm4, %v584_v2, %v588_v3  ;;  %v2817_v23 = vrot.slane %v624_v16, 5  ;;  %v644_v25 = vrot.slane %v642_v12, 5  ;;  %v612_v29 = vrot.slane %v610_v18, 5 }
  0x4a   : > { %2298 = vmatmul.mubr.msk.bf16.vlgmr.msra.gmra.mxu0 %vm761_vm1, %v2611_v8  ;;  %2320 = vmatmul.mubr.msk.bf16.gmra.mxu1 %vm761_vm1, %v2615_v11  ;;  %v600_v8 = vshll.u32 %v2750_v34, 16  ;;  %v550_v11 = vrot.slane %v549_v26, 4  ;;  %v579_v21 = vsel %vm2583_vm4, %v574_v1, %v2747_v32  ;;  %v2824_v30 = vrot.slane %v648_v35, 5 }
  0x4b   : > { %2332 = vmatpush3.bf16.msra.mxu0 %v1322_v62  ;;  %2301 = vmatprep.mubr.msk.bf16.mxu0 %vm761_vm1, %v2640_v43  ;;  %v560_v43 = vrot.slane %v559_v17, 4  ;;  %v2107_v62 = vld [vmem:[%s2557_s8 + $0x44] sm:$0x1]  ;;  %v654_v32 = vrot.slane %v652_v19, 4  ;;  %v663_v46 = vshrl.u32 %v2827_v33, 16  ;;  %v687_v60 = vshrl.u32 %v2836_v47, 16 }
  0x4c   : > { %2323 = vmatprep.mubr.msk.bf16.mxu1 %vm761_vm1, %v2638_v42  ;;  %v2784_v42 = vrot.slane %v600_v8, 5  ;;  %v555_v0 = vsel %vm2583_vm4, %v550_v11, %v2739_v56  ;;  %v2106_v56 = vld [vmem:[%s2557_s8 + $0x38] sm:$0x1]  ;;  %v2180_v8 = vcombine.low %v579_v21, %v589_v22  ;;  %v658_v44 = vshll.u32 %v2107_v62, 16  ;;  %v2108_v19 = vld [vmem:[%s2557_s8 + $0x50] sm:$0x1] }
  0x4d   : > { %v565_v15 = vsel %vm2583_vm4, %v560_v43, %v564_v52  ;;  %v634_v38 = vshll.u32 %v2106_v56, 16  ;;  %v655_v43 = vor.u32 %v654_v32, %v2824_v30  ;;  %v666_v52 = vshll.u32 %v2827_v33, 16  ;;  %v2873_v22 = vld [vmem:[%s2864_s28 + $0x4] sm:$0xf] }
  0x4e   : > { %v607_v20 = vor.u32 %v606_v58, %v2784_v42  ;;  %v2179_v26 = vcombine.low %v555_v0, %v565_v15  ;;  %v690_v0 = vshll.u32 %v2836_v47, 16  ;;  %v696_v1 = vshll.u32 %v2839_v50, 16 }
  0x4f   : > { %v660_v3 = vrot.slane %v658_v44, 5  ;;  %v665_v16 = vrot.slane %v663_v46, 4  ;;  %v2162_v18 = vcombine.low %v2691_v63, %v2704_v5  ;;  %v2109_v5 = vld [vmem:[%s2557_s8 + $0x5c] sm:$0x1] }
  0x50   : > { %v608_v17 = vrot.slane %v607_v20, 4  ;;  %v689_v20 = vrot.slane %v687_v60, 4 }
  0x52   : > { %2302 = vmatmul.mubr.msk.bf16.gmra.mxu0 %vm761_vm1, %v2646_v49  ;;  %2324 = vmatmul.mubr.msk.bf16.gmra.mxu1 %vm761_vm1, %v2653_v57  ;;  %v597_v49 = vor.u32 %v596_v54, %v593_v53  ;;  %v617_v57 = vrot.slane %v615_v59, 4  ;;  %v672_v53 = vshll.u32 %v2830_v39, 16  ;;  %v676_v54 = vshrl.u32 %v2830_v39, 16 }
  0x53   : > { %2305 = vmatprep.mubr.msk.bf16.mxu0 %vm761_vm1, %v2666_v24  ;;  %2327 = vmatprep.mubr.msk.bf16.mxu1 %vm761_vm1, %v2668_v27  ;;  %v630_v24 = vrot.slane %v628_v7, 4  ;;  %v641_v27 = vrot.slane %v639_v9, 4  ;;  %v636_v59 = vrot.slane %v634_v38, 5  ;;  %v656_v7 = vrot.slane %v655_v43, 4 }
  0x54   : > { %v598_v36 = vrot.slane %v597_v49, 4  ;;  %v621_v6 = vor.u32 %v620_v31, %v617_v57  ;;  %v668_v9 = vrot.slane %v666_v52, 5  ;;  %v674_v12 = vrot.slane %v672_v53, 5  ;;  %v2870_v49 = vld [vmem:[%s2864_s28] sm:$0xf] }
  0x55   : > { %v631_v41 = vor.u32 %v630_v24, %v2817_v23  ;;  %v645_v11 = vor.u32 %v644_v25, %v641_v27  ;;  %v678_v15 = vrot.slane %v676_v54, 4  ;;  %v692_v57 = vrot.slane %v690_v0, 5 }
  0x56   : > { %v622_v58 = vrot.slane %v621_v6, 4  ;;  %v698_v31 = vrot.slane %v696_v1, 5  ;;  %v661_v62 = vsel %vm2583_vm4, %v656_v7, %v660_v3  ;;  %v669_v27 = vor.u32 %v668_v9, %v665_v16 }
  0x57   : > { %v646_v2 = vrot.slane %v645_v11, 4  ;;  %v679_v25 = vor.u32 %v678_v15, %v674_v12  ;;  %v693_v32 = vor.u32 %v692_v57, %v689_v20  ;;  %v2163_v6 = vcombine.low %v2715_v13, %v2718_v14 }
  0x58   : > { %v627_v56 = vsel %vm2583_vm4, %v622_v58, %v2817_v23  ;;  %v711_v23 = vshrl.u32 %v2870_v49, 16  ;;  %v670_v11 = vrot.slane %v669_v27, 4  ;;  %v2169_v15 = vcombine.low %v2870_v49, %v2873_v22 }
  0x59   : > { %v651_v63 = vsel %vm2583_vm4, %v646_v2, %v2824_v30  ;;  %v720_v30 = vshll.u32 %v2873_v22, 16  ;;  %v680_v44 = vrot.slane %v679_v25, 4  ;;  %v2166_v2 = vcombine.low %v2782_v55, %v2789_v61 }
  0x5a   : > { %2306 = vmatmul.mubr.msk.bf16.gmra.mxu0 %vm761_vm1, %v2680_v40  ;;  %2328 = vmatmul.mubr.msk.bf16.gmra.mxu1 %vm761_vm1, %v2682_v45  ;;  %v603_v40 = vsel %vm2583_vm4, %v598_v36, %v2784_v42  ;;  %v613_v45 = vsel %vm2583_vm4, %v608_v17, %v612_v29  ;;  %v632_v42 = vrot.slane %v631_v41, 4  ;;  %v714_v29 = vshll.u32 %v2870_v49, 16 }
  0x5b   : > { %2309 = vmatprep.mubr.msk.bf16.mxu0 %vm761_vm1, %v2699_v4  ;;  %2351 = vmatprep.mubr.msk.bf16.mxu1 %vm761_vm1, %v2179_v26  ;;  %v700_v4 = vshrl.u32 %v2839_v50, 16  ;;  %v2181_v35 = vcombine.low %v603_v40, %v613_v45  ;;  %v682_v26 = vshll.u32 %v2108_v19, 16  ;;  %v706_v17 = vshll.u32 %v2109_v5, 16 }
  0x5c   : > { %v637_v24 = vsel %vm2583_vm4, %v632_v42, %v636_v59  ;;  %v2183_v41 = vcombine.low %v651_v63, %v661_v62  ;;  %v713_v43 = vrot.slane %v711_v23, 4  ;;  %v716_v52 = vrot.slane %v714_v29, 5  ;;  %v541_v59 = vld [vmem:[%s2864_s28 + $0x8] sm:$0x1] }
  0x5d   : > { %v702_v21 = vrot.slane %v700_v4, 4  ;;  %v2182_v38 = vcombine.low %v627_v56, %v637_v24  ;;  %v684_v46 = vrot.slane %v682_v26, 5  ;;  %v722_v53 = vrot.slane %v720_v30, 5 }
  0x5e   : > { %v694_v40 = vrot.slane %v693_v32, 4  ;;  %v708_v58 = vrot.slane %v706_v17, 5  ;;  %v675_v13 = vsel %vm2583_vm4, %v670_v11, %v674_v12  ;;  %v730_v60 = vshll.u32 %v541_v59, 16 }
  0x5f   : > { %v703_v36 = vor.u32 %v702_v21, %v698_v31  ;;  %v685_v14 = vsel %vm2583_vm4, %v680_v44, %v684_v46  ;;  %v2165_v4 = vcombine.low %v2772_v48, %v2776_v51  ;;  %v2167_v55 = vcombine.low %v2827_v33, %v2830_v39 }
  0x60   : > { %v699_v0 = vsel %vm2583_vm4, %v694_v40, %v698_v31  ;;  %v2184_v42 = vcombine.low %v675_v13, %v685_v14  ;;  %v732_v9 = vrot.slane %v730_v60, 5  ;;  %v2168_v12 = vcombine.low %v2836_v47, %v2839_v50 }
  0x61   : > { %v704_v45 = vrot.slane %v703_v36, 4  ;;  %v1608_v33 = vlaneseq }
  0x62   : > { %2310 = vmatmul.mubr.msk.bf16.gmra.mxu0 %vm761_vm1, %v2708_v10  ;;  %2352 = vmatmul.mubr.msk.bf16.vlgmr.msra.gmra.mxu1 %vm761_vm1, %v2180_v8  ;;  %v724_v10 = vshrl.u32 %v2873_v22, 16  ;;  %v2164_v8 = vcombine.low %v2745_v28, %v2750_v34  ;;  %v717_v28 = vor.u32 %v716_v52, %v713_v43  ;;  %v2950_v22 = vstv %s2196_s30 }
  0x63   : > { %2333 = vmatprep.mubr.msk.bf16.mxu0 %vm761_vm1, %v2162_v18  ;;  %2355 = vmatprep.mubr.msk.bf16.mxu1 %vm761_vm1, %v2181_v35  ;;  %v709_v1 = vsel %vm2583_vm4, %v704_v45, %v708_v58  ;;  %v2937_v47 = vshrl.u32 %v1608_v33, 7 }
  0x64   : > { %v726_v54 = vrot.slane %v724_v10, 4  ;;  %v2185_v3 = vcombine.low %v699_v0, %v709_v1  ;;  %v718_v16 = vrot.slane %v717_v28, 4 }
  0x65   : > { %v2943_v49 = vadd.s32 16, %v2937_v47  ;;  %v2946_v31 = vadd.s32 8, %v2937_v47  ;;  %vm1626_vm5 = vcmp.lt.s32.totalorder %v2937_v47, %v2950_v22  ;;  %v2957_v63 = vadd.s32 24, %v2937_v47 }
  0x66   : > { %v727_v34 = vor.u32 %v726_v54, %v722_v53  ;;  %v723_v48 = vsel %vm2583_vm4, %v718_v16, %v722_v53  ;;  %v2966_v25 = vadd.s32 32, %v2937_v47  ;;  %v2987_v17 = vadd.s32 48, %v2937_v47 }
  0x67   : > { %3623 = vst [vmem:[#allocation2_spill] sm:$0xff] %v2946_v31  ;;  %vm1628_vm6 = vcmp.lt.s32.totalorder %v2943_v49, %v2950_v22  ;;  %vm1627_vm7 = vcmp.lt.s32.totalorder %v2946_v31, %v2950_v22  ;;  %vm1629_vm9 = vcmp.lt.s32.totalorder %v2957_v63, %v2950_v22  ;;  %v2994_v11 = vadd.s32 40, %v2937_v47 }
  0x68   : > { %v728_v7 = vrot.slane %v727_v34, 4  ;;  %vm1630_vm10 = vcmp.lt.s32.totalorder %v2966_v25, %v2950_v22  ;;  %v3004_v40 = vadd.s32 56, %v2937_v47  ;;  %vm1632_vm11 = vcmp.lt.s32.totalorder %v2987_v17, %v2950_v22 }
  0x69   : > { %vm1631_vm12 = vcmp.lt.s32.totalorder %v2994_v11, %v2950_v22 }
  0x6a   : > { %2334 = vmatmul.mubr.msk.bf16.vlgmr.msra.gmra.mxu0 %vm761_vm1, %v2163_v6  ;;  %2356 = vmatmul.mubr.msk.bf16.gmra.mxu1 %vm761_vm1, %v2182_v38  ;;  %v733_v51 = vsel %vm2583_vm4, %v728_v7, %v732_v9  ;;  %vm1633_vm13 = vcmp.lt.s32.totalorder %v3004_v40, %v2950_v22 }
  0x6b   : > { %2337 = vmatprep.mubr.msk.bf16.mxu0 %vm761_vm1, %v2164_v8  ;;  %2359 = vmatprep.mubr.msk.bf16.mxu1 %vm761_vm1, %v2183_v41  ;;  %v2186_v61 = vcombine.low %v723_v48, %v733_v51 }
  0x72   : > { %2338 = vmatmul.mubr.msk.bf16.gmra.mxu0 %vm761_vm1, %v2165_v4  ;;  %2360 = vmatmul.mubr.msk.bf16.gmra.mxu1 %vm761_vm1, %v2184_v42  ;;  %v3023_v4 = vadd.s32 64, %v2937_v47 }
  0x73   : > { %2341 = vmatprep.mubr.msk.bf16.mxu0 %vm761_vm1, %v2166_v2  ;;  %2363 = vmatprep.mubr.msk.bf16.mxu1 %vm761_vm1, %v2185_v3 }
  0x74   : > { %vm3610_vm14 = vcmp.lt.s32.totalorder %v3023_v4, %v2950_v22 }
  0x7a   : > { %2342 = vmatmul.mubr.msk.bf16.gmra.mxu0 %vm761_vm1, %v2167_v55  ;;  %2364 = vmatmul.mubr.msk.bf16.gmra.mxu1 %vm761_vm1, %v2186_v61 }
  0x7b   : > { %2345 = vmatprep.mubr.msk.bf16.mxu0 %vm761_vm1, %v2168_v12  ;;  %v3042_v12 = vadd.s32 80, %v2937_v47 }
  0x7d   : > { %3624 = vst [vmem:[#allocation3_spill] sm:$0xff] %v3042_v12  ;;  %vm1636_vm15 = vcmp.lt.s32.totalorder %v3042_v12, %v2950_v22 }
  0x82   : > { %2346 = vmatmul.mubr.msk.bf16.gmra.mxu0 %vm761_vm1, %v2169_v15 }
  0xe0   : > { %v2281_v37 = vpop.f32.mrf.mxu1 }
  0xe2   : > { %v988_v18 = vpop.f32.mrf.mxu1 }
  0xe4   : > { %v2282_v39 = vpop.f32.mrf.mxu1 }
  0xe6   : > { %v991_v50 = vpop.f32.mrf.mxu1 }
  0xe8   : > { %v2263_v35 = vpop.f32.mrf.mxu0  ;;  %v2285_v19 = vpop.f32.mrf.mxu1 }
  0xe9   : > { %v2940_v20 = vadd.f32 %v2281_v37, %v2263_v35  ;;  %v3047_v37 = vadd.s32 72, %v2937_v47 }
  0xea   : > { %v824_v57 = vpop.f32.mrf.mxu0  ;;  %v1004_v21 = vpop.f32.mrf.mxu1 }
  0xeb   : > { %v2952_v56 = vadd.f32 %v988_v18, %v824_v57  ;;  %v1677_v10 = vsel %vm1628_vm6, %v2940_v20, 0.0  ;;  %vm1635_vm1 = vcmp.lt.s32.totalorder %v3047_v37, %v2950_v22 }
  0xec   : > { %v2264_v24 = vpop.f32.mrf.mxu0  ;;  %v2286_v5 = vpop.f32.mrf.mxu1  ;;  %v1711_v53 = vsel %vm1707_vm8, %v1677_v10, 0.0 }
  0xed   : > { %v2959_v62 = vadd.f32 %v2282_v39, %v2264_v24  ;;  %v1675_v23 = vsel %vm1626_vm5, %v2952_v56, 0.0 }
  0xee   : > { %v827_v27 = vpop.f32.mrf.mxu0  ;;  %v1007_v26 = vpop.f32.mrf.mxu1  ;;  %v1708_v38 = vsel %vm1707_vm8, %v1675_v23, 0.0  ;;  %v3067_v23 = vadd.s32 96, %v2937_v47 }
  0xef   : > { %v2972_v29 = vadd.f32 %v991_v50, %v827_v27  ;;  %v1678_v44 = vsel %vm1629_vm9, %v2959_v62, 0.0 }
  0xf0   : > { %v2267_v30 = vpop.f32.mrf.mxu0  ;;  %v1713_v14 = vsel %vm1707_vm8, %v1678_v44, 0.0  ;;  %3626 = vst [vmem:[#allocation5_spill] sm:$0xff] %v3067_v23  ;;  %vm3601_vm3 = vcmp.lt.s32.totalorder %v3067_v23, %v2950_v22 }
  0xf1   : > { %v1676_v32 = vsel %vm1627_vm7, %v2972_v29, 0.0  ;;  %v2984_v36 = vadd.f32 %v2285_v19, %v2267_v30  ;;  %v2289_v6 = vpop.f32.mrf.mxu1  ;;  %v3053_v19 = vadd.s32 88, %v2937_v47 }
  0xf2   : > { %v1709_v8 = vsel %vm1707_vm8, %v1676_v32, 0.0  ;;  %v840_v41 = vpop.f32.mrf.mxu0 }
  0xf3   : > { %v1710_v46 = vadd.f32 %v1709_v8, %v1708_v38  ;;  %v3000_v43 = vadd.f32 %v1004_v21, %v840_v41  ;;  %v1020_v52 = vpop.f32.mrf.mxu1  ;;  %v1681_v42 = vsel %vm1632_vm11, %v2984_v36, 0.0  ;;  %3625 = vst [vmem:[#allocation4_spill] sm:$0xff] %v3053_v19  ;;  %vm1637_vm2 = vcmp.lt.s32.totalorder %v3053_v19, %v2950_v22 }
  0xf4   : > { %v2268_v54 = vpop.f32.mrf.mxu0  ;;  %v1719_v61 = vsel %vm1707_vm8, %v1681_v42, 0.0 }
  0xf5   : > { %v1712_v45 = vadd.f32 %v1711_v53, %v1710_v46  ;;  %v1679_v58 = vsel %vm1630_vm10, %v3000_v43, 0.0  ;;  %v3010_v59 = vadd.f32 %v2286_v5, %v2268_v54  ;;  %v2290_v13 = vpop.f32.mrf.mxu1  ;;  %v3092_v54 = vadd.s32 104, %v2937_v47 }
  0xf6   : > { %v843_v28 = vpop.f32.mrf.mxu0  ;;  %v1715_v1 = vsel %vm1707_vm8, %v1679_v58, 0.0 }
  0xf7   : > { %v1714_v34 = vadd.f32 %v1713_v14, %v1712_v45  ;;  %v3017_v60 = vadd.f32 %v1007_v26, %v843_v28  ;;  %v1023_v0 = vpop.f32.mrf.mxu1  ;;  %v1682_v48 = vsel %vm1633_vm13, %v3010_v59, 0.0  ;;  %3628 = vst [vmem:[#allocation7_spill] sm:$0xff] %v3092_v54  ;;  %vm1639_vm0 = vcmp.lt.s32.totalorder %v3092_v54, %v2950_v22 }
  0xf8   : > { %v1721_v50 = vsel %vm1707_vm8, %v1682_v48, 0.0 }
  0xf9   : > { %v1716_v2 = vadd.f32 %v1715_v1, %v1714_v34  ;;  %v1680_v3 = vsel %vm1631_vm12, %v3017_v60, 0.0 }
  0xfa   : > { %v1717_v16 = vsel %vm1707_vm8, %v1680_v3, 0.0  ;;  %v2271_v7 = vpop.f32.mrf.mxu0  ;;  %v2293_v9 = vpop.f32.mrf.mxu1 }
  0xfb   : > { %v1718_v51 = vadd.f32 %v1717_v16, %v1716_v2  ;;  %v3038_v55 = vadd.f32 %v2289_v6, %v2271_v7 }
  0xfc   : > { %v856_v15 = vpop.f32.mrf.mxu0  ;;  %v1036_v18 = vpop.f32.mrf.mxu1 }
  0xfd   : > { %v1720_v33 = vadd.f32 %v1719_v61, %v1718_v51  ;;  %v3049_v39 = vadd.f32 %v1020_v52, %v856_v15  ;;  %v1685_v8 = vsel %vm1636_vm15, %v3038_v55, 0.0  ;;  %v3087_v52 = vadd.s32 112, %v2937_v47 }
  0xfe   : > { %v2272_v35 = vpop.f32.mrf.mxu0  ;;  %v2294_v57 = vpop.f32.mrf.mxu1  ;;  %v1727_v28 = vsel %vm1707_vm8, %v1685_v8, 0.0 }
  0xff   : > { %v1683_v21 = vsel %vm3610_vm14, %v3049_v39, 0.0  ;;  %v1722_v24 = vadd.f32 %v1721_v50, %v1720_v33  ;;  %v3059_v5 = vadd.f32 %v2290_v13, %v2272_v35  ;;  %3627 = vst [vmem:[#allocation6_spill] sm:$0xff] %v3087_v52  ;;  %vm1640_vm4 = vcmp.lt.s32.totalorder %v3087_v52, %v2950_v22 }
 0x100   : > { %v1723_v27 = vsel %vm1707_vm8, %v1683_v21, 0.0  ;;  %v859_v26 = vpop.f32.mrf.mxu0  ;;  %v1039_v30 = vpop.f32.mrf.mxu1  ;;  %v1782_v21 = vstv %s1642_s23 }
 0x101   : > { %v1724_v10 = vadd.f32 %v1723_v27, %v1722_v24  ;;  %v3069_v32 = vadd.f32 %v1023_v0, %v859_v26  ;;  %v1686_v58 = vsel %vm1637_vm2, %v3059_v5, 0.0  ;;  %v3104_v0 = vadd.s32 120, %v2937_v47 }
 0x102   : > { %v2275_v6 = vpop.f32.mrf.mxu0  ;;  %v3073_v38 = vpop.f32.mrf.mxu1  ;;  %v1729_v16 = vsel %vm1707_vm8, %v1686_v58, 0.0  ;;  %2432 = vrcp.f32 %v1782_v21 }
 0x103   : > { %v1684_v41 = vsel %vm1635_vm1, %v3069_v32, 0.0  ;;  %v3083_v44 = vadd.f32 %v2293_v9, %v2275_v6  ;;  %3629 = vst [vmem:[#allocation8_spill] sm:$0xff] %v3104_v0 }
 0x104   : > { %v1725_v46 = vsel %vm1707_vm8, %v1684_v41, 0.0  ;;  %v872_v53 = vpop.f32.mrf.mxu0  ;;  %v3094_v45 = vpop.f32.mrf.mxu1 }
 0x105   : > { %v1726_v13 = vadd.f32 %v1725_v46, %v1724_v10  ;;  %v3100_v14 = vadd.f32 %v1036_v18, %v872_v53  ;;  %v1689_v33 = vsel %vm1640_vm4, %v3083_v44, 0.0 }
 0x106   : > { %v2276_v34 = vpop.f32.mrf.mxu0  ;;  %v3106_v1 = vpop.f32.mrf.mxu1  ;;  %v1735_v10 = vsel %vm1707_vm8, %v1689_v33, 0.0 }
 0x107   : > { %v1728_v42 = vadd.f32 %v1727_v28, %v1726_v13  ;;  %v1687_v2 = vsel %vm3601_vm3, %v3100_v14, 0.0  ;;  %v3112_v3 = vadd.f32 %v2294_v57, %v2276_v34  ;;  %vm3619_vm3 = vcmp.lt.s32.totalorder %v3104_v0, %v2950_v22 }
 0x108   : > { %v875_v7 = vpop.f32.mrf.mxu0  ;;  %v3121_v9 = vpop.f32.mrf.mxu1  ;;  %v1731_v61 = vsel %vm1707_vm8, %v1687_v2, 0.0 }
 0x109   : > { %v1730_v48 = vadd.f32 %v1729_v16, %v1728_v42  ;;  %v3123_v51 = vadd.f32 %v1039_v30, %v875_v7  ;;  %v1690_v26 = vsel %vm3619_vm3, %v3112_v3, 0.0 }
 0x10a   : > { %v3128_v15 = vpop.f32.mrf.mxu0  ;;  %v3130_v18 = vpop.f32.mrf.mxu1  ;;  %v1737_v46 = vsel %vm1707_vm8, %v1690_v26, 0.0 }
 0x10b   : > { %v1732_v50 = vadd.f32 %v1731_v61, %v1730_v48  ;;  %v1688_v35 = vsel %vm1639_vm0, %v3123_v51, 0.0 }
 0x10c   : > { %v1733_v57 = vsel %vm1707_vm8, %v1688_v35, 0.0  ;;  %v3141_v24 = vpop.f32.mrf.mxu0  ;;  %v3143_v27 = vpop.f32.mrf.mxu1 }
 0x10d   : > { %v1734_v30 = vadd.f32 %v1733_v57, %v1732_v50 }
 0x10e   : > { %v3150_v6 = vpop.f32.mrf.mxu0  ;;  %v3152_v8 = vpop.f32.mrf.mxu1 }
 0x10f   : > { %v1736_v41 = vadd.f32 %v1735_v10, %v1734_v30  ;;  %v3167_v10 = vpop.eup %2432 }
 0x110   : > { %v1095_v53 = vpop.f32.mrf.mxu0  ;;  %v3155_v58 = vpop.f32.mrf.mxu1  ;;  %3632 = vst [vmem:[#allocation11_spill] sm:$0xff] %v3167_v10 }
 0x111   : > { %v1738_v13 = vadd.f32 %v1737_v46, %v1736_v41  ;;  %v1196_v31 = vadd.f32 %v3121_v9, %v1095_v53 }
 0x112   : > { %v2303_v28 = vpop.f32.mrf.mxu0  ;;  %v3157_v34 = vpop.f32.mrf.mxu1 }
 0x113   : > { %v1739_v42 = vrot.slane %v1738_v13, 4 }
 0x114   : > { %v1108_v2 = vpop.f32.mrf.mxu0  ;;  %v3159_v16 = vpop.f32.mrf.mxu1 }
 0x115   : > { %v1740_v7 = vadd.f32 %v1739_v42, %v1738_v13 }
 0x116   : > { %v2304_v48 = vpop.f32.mrf.mxu0  ;;  %v3161_v61 = vpop.f32.mrf.mxu1 }
 0x117   : > { %v1741_v33 = vrot.slane %v1740_v7, 2 }
 0x118   : > { %v1111_v50 = vpop.f32.mrf.mxu0  ;;  %v3163_v35 = vpop.f32.mrf.mxu1 }
 0x119   : > { %3630 = vst [vmem:[#allocation9_spill] sm:$0xff] %v3163_v35  ;;  %v1742_v57 = vadd.f32 %v1741_v33, %v1740_v7 }
 0x11a   : > { %v2307_v21 = vpop.f32.mrf.mxu0  ;;  %v3165_v26 = vpop.f32.mrf.mxu1 }
 0x11b   : > { %3631 = vst [vmem:[#allocation10_spill] sm:$0xff] %v3165_v26  ;;  %v1743_v30 = vrot.slane %v1742_v57, 1  ;;  %v3266_v53 = vadd.f32 %v3157_v34, %v2307_v21 }
 0x11c   : > { %v1124_v41 = vpop.f32.mrf.mxu0  ;;  %v3169_v46 = vpop.f32.mrf.mxu1 }
 0x11d   : > { %3633 = vst [vmem:[#allocation12_spill] sm:$0xff] %v3169_v46  ;;  %v3171_v0 = vadd.f32 %v1743_v30, %v1742_v57 }
 0x11e   : > { %v2308_v13 = vpop.f32.mrf.mxu0  ;;  %v3173_v42 = vpop.f32.mrf.mxu1 }
 0x11f   : > { %3634 = vst [vmem:[#allocation13_spill] sm:$0xff] %v3171_v0  ;;  %3635 = vst [vmem:[#allocation14_spill] sm:$0xff] %v3173_v42  ;;  %v3177_v52 = vmul.f32 %v3167_v10, %v3171_v0 }
 0x120   : > { %v3179_v35 = vpop.f32.mrf.mxu0  ;;  %v3181_v7 = vpop.f32.mrf.mxu1 }
 0x121   : > { %3636 = vst [vmem:[#allocation15_spill] sm:$0xff] %v3179_v35  ;;  %3637 = vst [vmem:[#allocation16_spill] sm:$0xff] %v3181_v7  ;;  %v1786_v33 = vsub.f32 %v2952_v56, %v3177_v52  ;;  %v1787_v26 = vsub.f32 %v2972_v29, %v3177_v52  ;;  %v1788_v57 = vsub.f32 %v2940_v20, %v3177_v52 }
 0x122   : > { %v1789_v30 = vsub.f32 %v2959_v62, %v3177_v52  ;;  %v1790_v0 = vsub.f32 %v3000_v43, %v3177_v52  ;;  %v1791_v10 = vsub.f32 %v3017_v60, %v3177_v52  ;;  %v1792_v7 = vsub.f32 %v2984_v36, %v3177_v52  ;;  %v3199_v42 = vpop.f32.mrf.mxu0  ;;  %v3201_v29 = vpop.f32.mrf.mxu1 }
 0x123   : > { %v1793_v56 = vsub.f32 %v3010_v59, %v3177_v52  ;;  %3638 = vst [vmem:[#allocation17_spill] sm:$0xff] %v3199_v42  ;;  %v1794_v20 = vsub.f32 %v3049_v39, %v3177_v52  ;;  %v1795_v62 = vsub.f32 %v3069_v32, %v3177_v52  ;;  %v1796_v43 = vsub.f32 %v3038_v55, %v3177_v52 }
 0x124   : > { %v1797_v60 = vsub.f32 %v3059_v5, %v3177_v52  ;;  %v1798_v36 = vsub.f32 %v3100_v14, %v3177_v52  ;;  %v1799_v59 = vsub.f32 %v3123_v51, %v3177_v52  ;;  %v1800_v42 = vsub.f32 %v3083_v44, %v3177_v52  ;;  %v3219_v46 = vpop.f32.mrf.mxu0  ;;  %v3221_v32 = vpop.f32.mrf.mxu1 }
 0x125   : > { %v1801_v39 = vsub.f32 %v3112_v3, %v3177_v52  ;;  %3639 = vst [vmem:[#allocation18_spill] sm:$0xff] %v3219_v46  ;;  %v1802_v55 = vsel %vm1626_vm5, %v1786_v33, 0.0  ;;  %v1803_v5 = vsel %vm1627_vm7, %v1787_v26, 0.0  ;;  %v1804_v44 = vsel %vm1628_vm6, %v1788_v57, 0.0 }
 0x126   : > { %v3229_v14 = vpop.f32.mrf.mxu0  ;;  %v3231_v51 = vpop.f32.mrf.mxu1  ;;  %v1201_v52 = vadd.f32 %v3073_v38, %v3128_v15  ;;  %v1193_v3 = vadd.f32 %v3094_v45, %v3141_v24  ;;  %v1850_v35 = vmul.f32 %v1802_v55, %v1802_v55  ;;  %v1851_v26 = vmul.f32 %v1803_v5, %v1803_v5 }
 0x127   : > { %3640 = vst [vmem:[#allocation19_spill] sm:$0xff] %v3229_v14  ;;  %v1204_v14 = vadd.f32 %v3106_v1, %v3150_v6  ;;  %v1805_v57 = vsel %vm1629_vm9, %v1789_v30, 0.0  ;;  %v3251_v38 = vadd.f32 %v3130_v18, %v2303_v28  ;;  %v1209_v45 = vadd.f32 %v3143_v27, %v1108_v2 }
 0x128   : > { %v3240_v46 = vpop.f32.mrf.mxu0  ;;  %v3242_v33 = vpop.f32.mrf.mxu1  ;;  %v3255_v15 = vadd.f32 %v3152_v8, %v2304_v48  ;;  %v1806_v1 = vsel %vm1630_vm10, %v1790_v0, 0.0  ;;  %v1852_v9 = vmul.f32 %v1804_v44, %v1804_v44  ;;  %v3263_v6 = vadd.f32 %v3155_v58, %v1111_v50 }
 0x129   : > { %3641 = vst [vmem:[#allocation20_spill] sm:$0xff] %v3240_v46  ;;  %v1807_v18 = vsel %vm1631_vm12, %v1791_v10, 0.0  ;;  %v1808_v27 = vsel %vm1632_vm11, %v1792_v7, 0.0  ;;  %v3275_v8 = vadd.f32 %v3159_v16, %v1124_v41  ;;  %v3278_v0 = vadd.f32 %v3161_v61, %v2308_v13 }
 0x12a   : > { %v2335_v24 = vpop.f32.mrf.mxu0  ;;  %v3257_v55 = vpop.f32.mrf.mxu1  ;;  %v1809_v34 = vsel %vm1633_vm13, %v1793_v56, 0.0  ;;  %v1853_v2 = vmul.f32 %v1805_v57, %v1805_v57  ;;  %v1866_v48 = vsel %vm1707_vm8, %v1850_v35, 0.0  ;;  %v1867_v50 = vsel %vm1707_vm8, %v1851_v26, 0.0 }
 0x12b   : > { %v1810_v16 = vsel %vm3610_vm14, %v1794_v20, 0.0  ;;  %v1811_v61 = vsel %vm1635_vm1, %v1795_v62, 0.0  ;;  %v1854_v21 = vmul.f32 %v1806_v1, %v1806_v1  ;;  %v1868_v10 = vadd.f32 %v1867_v50, %v1866_v48 }
 0x12c   : > { %v1358_v28 = vpop.f32.mrf.mxu0  ;;  %v3280_v58 = vpop.f32.mrf.mxu1  ;;  %v1812_v7 = vsel %vm1636_vm15, %v1796_v43, 0.0  ;;  %v1813_v35 = vsel %vm1637_vm2, %v1797_v60, 0.0  ;;  %vm3642_vm14 = vcmp.lt.s32.totalorder %v3067_v23, %v2950_v22  ;;  %v1869_v56 = vsel %vm1707_vm8, %v1852_v9, 0.0 }
 0x12d   : > { %v1814_v30 = vsel %vm3642_vm14, %v1798_v36, 0.0  ;;  %v1815_v20 = vsel %vm1639_vm0, %v1799_v59, 0.0  ;;  %v1816_v5 = vsel %vm1640_vm4, %v1800_v42, 0.0  ;;  %v1855_v44 = vmul.f32 %v1807_v18, %v1807_v18 }
 0x12e   : > { %v2336_v41 = vpop.f32.mrf.mxu0  ;;  %v3293_v13 = vpop.f32.mrf.mxu1  ;;  %v1870_v43 = vadd.f32 %v1869_v56, %v1868_v10  ;;  %v1817_v60 = vsel %vm3619_vm3, %v1801_v39, 0.0  ;;  %v1856_v48 = vmul.f32 %v1808_v27, %v1808_v27  ;;  %v1857_v36 = vmul.f32 %v1809_v34, %v1809_v34 }
 0x12f   : > { %v1871_v9 = vsel %vm1707_vm8, %v1853_v2, 0.0  ;;  %v1858_v50 = vmul.f32 %v1810_v16, %v1810_v16  ;;  %v1859_v23 = vmul.f32 %v1811_v61, %v1811_v61  ;;  %v1873_v59 = vsel %vm1707_vm8, %v1854_v21, 0.0 }
 0x130   : > { %v1361_v26 = vpop.f32.mrf.mxu0  ;;  %v1543_v57 = vpop.f32.mrf.mxu1  ;;  %v1872_v54 = vadd.f32 %v1871_v9, %v1870_v43  ;;  %v1423_v42 = vadd.f32 %v2335_v24, %v1201_v52  ;;  %v1421_v18 = vadd.f32 %v1358_v28, %v1193_v3  ;;  %v1424_v10 = vadd.f32 %v2336_v41, %v1204_v14 }
 0x131   : > { %v1422_v56 = vadd.f32 %v1361_v26, %v1196_v31  ;;  %v1860_v12 = vmul.f32 %v1812_v7, %v1812_v7  ;;  %v1861_v46 = vmul.f32 %v1813_v35, %v1813_v35  ;;  %v1875_v39 = vsel %vm1707_vm8, %v1855_v44, 0.0 }
 0x132   : > { %v2339_v19 = vpop.f32.mrf.mxu0  ;;  %v3316_v62 = vpop.f32.mrf.mxu1  ;;  %v1874_v1 = vadd.f32 %v1873_v59, %v1872_v54  ;;  %v3320_v2 = vadd.f32 %v3201_v29, %v1423_v42  ;;  %v3323_v16 = vadd.f32 %v3221_v32, %v1421_v18  ;;  %v3326_v61 = vadd.f32 %v3231_v51, %v1424_v10 }
 0x133   : > { %v3329_v52 = vadd.f32 %v3242_v33, %v1422_v56  ;;  %v1862_v31 = vmul.f32 %v1814_v30, %v1814_v30  ;;  %v1863_v14 = vmul.f32 %v1815_v20, %v1815_v20  ;;  %v1877_v21 = vsel %vm1707_vm8, %v1856_v48, 0.0 }
 0x134   : > { %v1374_v27 = vpop.f32.mrf.mxu0  ;;  %v1556_v34 = vpop.f32.mrf.mxu1  ;;  %v1876_v3 = vadd.f32 %v1875_v39, %v1874_v1  ;;  %v1691_v29 = vsel %vm1626_vm5, %v3323_v16, 0.0  ;;  %v1427_v33 = vadd.f32 %v2339_v19, %v3251_v38  ;;  %v1864_v41 = vmul.f32 %v1816_v5, %v1816_v5 }
 0x135   : > { %v1425_v54 = vadd.f32 %v1374_v27, %v1209_v45  ;;  %v1692_v51 = vsel %vm1627_vm7, %v3329_v52, 0.0  ;;  %v1879_v45 = vsel %vm1707_vm8, %v1857_v36, 0.0  ;;  %v1693_v35 = vsel %vm1628_vm6, %v3320_v2, 0.0 }
 0x136   : > { %v2340_v24 = vpop.f32.mrf.mxu0  ;;  %v3331_v28 = vpop.f32.mrf.mxu1  ;;  %v1878_v7 = vadd.f32 %v1877_v21, %v1876_v3  ;;  %v1745_v20 = vsel %vm1707_vm8, %v1691_v29, 0.0  ;;  %v1694_v44 = vsel %vm1629_vm9, %v3326_v61, 0.0  ;;  %v1746_v43 = vsel %vm1707_vm8, %v1692_v51, 0.0  ;;  %v3646_v29 = vld [vmem:[#allocation15_spill] sm:$0xff] }
 0x137   : > { %v3355_v19 = vadd.f32 %v3280_v58, %v1425_v54  ;;  %v1747_v5 = vadd.f32 %v1746_v43, %v1745_v20  ;;  %v1428_v26 = vadd.f32 %v2340_v24, %v3255_v15  ;;  %v3359_v9 = vmul.f32 %v1817_v60, %v1817_v60 }
 0x138   : > { %v1377_v30 = vpop.f32.mrf.mxu0  ;;  %v1880_v38 = vadd.f32 %v1879_v45, %v1878_v7  ;;  %v1559_v36 = vpop.f32.mrf.mxu1  ;;  %v1881_v59 = vsel %vm1707_vm8, %v1858_v50, 0.0  ;;  %v1748_v42 = vsel %vm1707_vm8, %v1693_v35, 0.0  ;;  %v3364_v18 = vadd.f32 %v3257_v55, %v1427_v33 }
 0x139   : > { %v1426_v1 = vadd.f32 %v1377_v30, %v3263_v6  ;;  %v1749_v58 = vadd.f32 %v1748_v42, %v1747_v5  ;;  %v1695_v15 = vsel %vm1630_vm10, %v3355_v19, 0.0  ;;  %v1883_v60 = vsel %vm1707_vm8, %v1859_v23, 0.0  ;;  %v3647_v23 = vld [vmem:[#allocation9_spill] sm:$0xff]  ;;  %v3649_v42 = vld [vmem:[#allocation12_spill] sm:$0xff] }
 0x13a   : > { %v2343_v48 = vpop.f32.mrf.mxu0  ;;  %v1882_v10 = vadd.f32 %v1881_v59, %v1880_v38  ;;  %v1885_v39 = vsel %vm1707_vm8, %v1860_v12, 0.0  ;;  %v1750_v50 = vsel %vm1707_vm8, %v1694_v44, 0.0  ;;  %v3377_v54 = vadd.f32 %v3293_v13, %v1428_v26  ;;  %v2365_v21 = vpop.f32.mrf.mxu1  ;;  %v3648_v59 = vld [vmem:[#allocation18_spill] sm:$0xff] }
 0x13b   : > { %v3370_v56 = vadd.f32 %v1543_v57, %v1426_v1  ;;  %v1751_v3 = vadd.f32 %v1750_v50, %v1749_v58  ;;  %v1228_v51 = vadd.f32 %v3647_v23, %v3646_v29  ;;  %v1752_v12 = vsel %vm1707_vm8, %v1695_v15, 0.0  ;;  %v3652_v50 = vld [vmem:[#allocation10_spill] sm:$0xff] }
 0x13c   : > { %v1390_v6 = vpop.f32.mrf.mxu0  ;;  %v1884_v55 = vadd.f32 %v1883_v60, %v1882_v10  ;;  %v1697_v13 = vsel %vm1632_vm11, %v3364_v18, 0.0  ;;  %v1887_v20 = vsel %vm1707_vm8, %v1861_v46, 0.0  ;;  %v1889_v44 = vsel %vm1707_vm8, %v1862_v31, 0.0 }
 0x13d   : > { %v1429_v27 = vadd.f32 %v1390_v6, %v3275_v8  ;;  %v1696_v57 = vsel %vm1631_vm12, %v3370_v56, 0.0  ;;  %v1431_v8 = vadd.f32 %v2343_v48, %v3266_v53  ;;  %v1753_v45 = vadd.f32 %v1752_v12, %v1751_v3  ;;  %v1572_v48 = vpop.f32.mrf.mxu1 }
 0x13e   : > { %v2344_v24 = vpop.f32.mrf.mxu0  ;;  %v1754_v33 = vsel %vm1707_vm8, %v1696_v57, 0.0  ;;  %v1886_v7 = vadd.f32 %v1885_v39, %v1884_v55  ;;  %v1891_v43 = vsel %vm1707_vm8, %v1863_v14, 0.0  ;;  %v1698_v53 = vsel %vm1633_vm13, %v3377_v54, 0.0  ;;  %v3651_v39 = vld [vmem:[#allocation17_spill] sm:$0xff]  ;;  %v3654_v57 = vld [vmem:[#allocation14_spill] sm:$0xff] }
 0x13f   : > { %v3392_v35 = vadd.f32 %v1556_v34, %v1429_v27  ;;  %v1755_v26 = vadd.f32 %v1754_v33, %v1753_v45  ;;  %v1432_v1 = vadd.f32 %v2344_v24, %v3278_v0  ;;  %v1241_v10 = vadd.f32 %v3649_v42, %v3648_v59  ;;  %v3655_v33 = vld [vmem:[#allocation20_spill] sm:$0xff] }
 0x140   : > { %v1393_v30 = vpop.f32.mrf.mxu0  ;;  %v1888_v5 = vadd.f32 %v1887_v20, %v1886_v7  ;;  %v1756_v46 = vsel %vm1707_vm8, %v1697_v13, 0.0  ;;  %v3406_v31 = vadd.f32 %v3316_v62, %v1431_v8  ;;  %v1893_v15 = vsel %vm1707_vm8, %v1864_v41, 0.0  ;;  %v3653_v41 = vld [vmem:[#allocation19_spill] sm:$0xff]  ;;  %v3656_v8 = vld [vmem:[#allocation16_spill] sm:$0xff] }
 0x141   : > { %v1430_v38 = vadd.f32 %v1393_v30, %v1228_v51  ;;  %v1757_v6 = vadd.f32 %v1756_v46, %v1755_v26  ;;  %vm3650_vm14 = vcmp.lt.s32.totalorder %v3023_v4, %v2950_v22  ;;  %v1249_v27 = vadd.f32 %v3652_v50, %v3651_v39  ;;  %v2366_v51 = vpop.f32.mrf.mxu1 }
 0x142   : > { %v2347_v34 = vpop.f32.mrf.mxu0  ;;  %v1890_v58 = vadd.f32 %v1889_v44, %v1888_v5  ;;  %v1699_v0 = vsel %vm3650_vm14, %v3392_v35, 0.0  ;;  %v1758_v55 = vsel %vm1707_vm8, %v1698_v53, 0.0  ;;  %v1252_v24 = vadd.f32 %v3654_v57, %v3653_v41 }
 0x143   : > { %v3408_v14 = vadd.f32 %v1559_v36, %v1430_v38  ;;  %v1759_v29 = vadd.f32 %v1758_v55, %v1757_v6  ;;  %v3425_v23 = vadd.f32 %v3331_v28, %v1432_v1  ;;  %v1244_v7 = vadd.f32 %v3656_v8, %v3655_v33  ;;  %v1575_v46 = vpop.f32.mrf.mxu1 }
 0x144   : > { %v1406_v60 = vpop.f32.mrf.mxu0  ;;  %v1892_v3 = vadd.f32 %v1891_v43, %v1890_v58  ;;  %v1701_v45 = vsel %vm1636_vm15, %v3406_v31, 0.0  ;;  %v1760_v30 = vsel %vm1707_vm8, %v1699_v0, 0.0  ;;  %v1435_v38 = vadd.f32 %v2347_v34, %v1249_v27  ;;  %v3659_v0 = vld [vmem:[#allocation5_spill] sm:$0xff] }
 0x145   : > { %v1700_v62 = vsel %vm1635_vm1, %v3408_v14, 0.0  ;;  %v1433_v36 = vadd.f32 %v1406_v60, %v1241_v10  ;;  %v1761_v43 = vadd.f32 %v1760_v30, %v1759_v29  ;;  %v1895_v53 = vsel %vm1707_vm8, %v3359_v9, 0.0 }
 0x146   : > { %v2348_v12 = vpop.f32.mrf.mxu0  ;;  %v1762_v20 = vsel %vm1707_vm8, %v1700_v62, 0.0  ;;  %v1894_v44 = vadd.f32 %v1893_v15, %v1892_v3  ;;  %v1702_v42 = vsel %vm1637_vm2, %v3425_v23, 0.0  ;;  %v1764_v15 = vsel %vm1707_vm8, %v1701_v45, 0.0 }
 0x147   : > { %v3435_v5 = vadd.f32 %v1572_v48, %v1433_v36  ;;  %v1763_v10 = vadd.f32 %v1762_v20, %v1761_v43  ;;  %v1436_v58 = vadd.f32 %v2348_v12, %v1252_v24  ;;  %v3446_v34 = vadd.f32 %v2365_v21, %v1435_v38  ;;  %v3663_v24 = vld [vmem:[#allocation8_spill] sm:$0xff] }
 0x148   : > { %v1409_v28 = vpop.f32.mrf.mxu0  ;;  %v1896_v1 = vadd.f32 %v1895_v53, %v1894_v44  ;;  %vm3660_vm14 = vcmp.lt.s32.totalorder %v3659_v0, %v2950_v22  ;;  %v1766_v60 = vsel %vm1707_vm8, %v1702_v42, 0.0 }
 0x149   : > { %v1434_v26 = vadd.f32 %v1409_v28, %v1244_v7  ;;  %v1765_v48 = vadd.f32 %v1764_v15, %v1763_v10  ;;  %v1703_v9 = vsel %vm3660_vm14, %v3435_v5, 0.0  ;;  %v3457_v55 = vadd.f32 %v2366_v51, %v1436_v58 }
 0x14a   : > { %v1897_v62 = vrot.slane %v1896_v1, 4  ;;  %v1768_v36 = vsel %vm1707_vm8, %v1703_v9, 0.0  ;;  %v1705_v41 = vsel %vm1640_vm4, %v3446_v34, 0.0  ;;  %vm1956_vm14 = vcmask 1040384  }
 0x14b   : > { %v3444_v6 = vadd.f32 %v1575_v46, %v1434_v26  ;;  %v1767_v27 = vadd.f32 %v1766_v60, %v1765_v48  ;;  %v1706_v29 = vsel %vm3619_vm3, %v3457_v55, 0.0  ;;  %v1772_v51 = vsel %vm1707_vm8, %v1705_v41, 0.0  ;;  %v3664_v46 = vld [vmem:[#allocation11_spill] sm:$0xff] }
 0x14c   : > { %v1898_v33 = vadd.f32 %v1897_v62, %v1896_v1  ;;  %v1774_v7 = vsel %vm1707_vm8, %v1706_v29, 0.0  ;;  %v3665_v1 = vld [vmem:[#allocation13_spill] sm:$0xff]  ;;  %vm3666_vm3 = vcmask 1041408  }
 0x14d   : > { %v1704_v50 = vsel %vm1639_vm0, %v3444_v6, 0.0  ;;  %v1769_v57 = vadd.f32 %v1768_v36, %v1767_v27 }
 0x14e   : > { %v1770_v21 = vsel %vm1707_vm8, %v1704_v50, 0.0  ;;  %v1899_v30 = vrot.slane %v1898_v33, 2 }
 0x14f   : > { %v1771_v12 = vadd.f32 %v1770_v21, %v1769_v57 }
 0x150   : > { %v1900_v43 = vadd.f32 %v1899_v30, %v1898_v33 }
 0x151   : > { %v1773_v8 = vadd.f32 %v1772_v51, %v1771_v12 }
 0x152   : > { %v1901_v53 = vrot.slane %v1900_v43, 1 }
 0x153   : > { %v1775_v45 = vadd.f32 %v1774_v7, %v1773_v8 }
 0x154   : > { %v1902_v10 = vadd.f32 %v1901_v53, %v1900_v43 }
 0x155   : > { %v1776_v20 = vrot.slane %v1775_v45, 4 }
 0x157   : > { %v1777_v44 = vadd.f32 %v1776_v20, %v1775_v45 }
 0x159   : > { %v1778_v38 = vrot.slane %v1777_v44, 2 }
 0x15b   : > { %v1779_v28 = vadd.f32 %v1778_v38, %v1777_v44 }
 0x15d   : > { %v1780_v26 = vrot.slane %v1779_v28, 1 }
 0x15f   : > { %v1781_v42 = vadd.f32 %v1780_v26, %v1779_v28 }
 0x161   : > { %v3472_v58 = vmul.f32 %v3664_v46, %v1781_v42  ;;  %v1957_v15 = vsel %vm1956_vm14, %v3665_v1, %v1781_v42 }
 0x162   : > { %v3476_v48 = vsel %vm3666_vm3, %v1957_v15, %v1902_v10 }
 0x163   : > { %v1818_v9 = vsub.f32 %v3323_v16, %v3472_v58  ;;  %v1819_v60 = vsub.f32 %v3329_v52, %v3472_v58  ;;  %v1820_v50 = vsub.f32 %v3320_v2, %v3472_v58  ;;  %v1821_v27 = vsub.f32 %v3326_v61, %v3472_v58 }
 0x164   : > { %v1822_v16 = vsub.f32 %v3355_v19, %v3472_v58  ;;  %v1823_v61 = vsub.f32 %v3370_v56, %v3472_v58  ;;  %v1824_v32 = vsub.f32 %v3364_v18, %v3472_v58  ;;  %v1825_v56 = vsub.f32 %v3377_v54, %v3472_v58 }
 0x165   : > { %v1834_v62 = vsel %vm1626_vm5, %v1818_v9, 0.0  ;;  %v1835_v36 = vsel %vm1627_vm7, %v1819_v60, 0.0  ;;  %v1836_v52 = vsel %vm1628_vm6, %v1820_v50, 0.0  ;;  %v1837_v47 = vsel %vm1629_vm9, %v1821_v27, 0.0 }
 0x166   : > { %v1903_v21 = vmul.f32 %v1834_v62, %v1834_v62  ;;  %v1904_v2 = vmul.f32 %v1835_v36, %v1835_v36  ;;  %v1905_v41 = vmul.f32 %v1836_v52, %v1836_v52  ;;  %v1838_v19 = vsel %vm1630_vm10, %v1822_v16, 0.0 }
 0x167   : > { %v1906_v57 = vmul.f32 %v1837_v47, %v1837_v47  ;;  %v1839_v63 = vsel %vm1631_vm12, %v1823_v61, 0.0  ;;  %v1907_v33 = vmul.f32 %v1838_v19, %v1838_v19  ;;  %v1826_v25 = vsub.f32 %v3392_v35, %v3472_v58 }
 0x168   : > { %v1919_v49 = vsel %vm1707_vm8, %v1903_v21, 0.0  ;;  %v1920_v29 = vsel %vm1707_vm8, %v1904_v2, 0.0  ;;  %v1922_v18 = vsel %vm1707_vm8, %v1905_v41, 0.0  ;;  %v1840_v51 = vsel %vm1632_vm11, %v1824_v32, 0.0 }
 0x169   : > { %v1921_v12 = vadd.f32 %v1920_v29, %v1919_v49  ;;  %v1908_v7 = vmul.f32 %v1839_v63, %v1839_v63  ;;  %v1924_v45 = vsel %vm1707_vm8, %v1906_v57, 0.0  ;;  %v1827_v54 = vsub.f32 %v3408_v14, %v3472_v58 }
 0x16a   : > { %v1841_v11 = vsel %vm1633_vm13, %v1825_v56, 0.0  ;;  %v1909_v20 = vmul.f32 %v1840_v51, %v1840_v51  ;;  %v1926_v44 = vsel %vm1707_vm8, %v1907_v33, 0.0  ;;  %v1828_v35 = vsub.f32 %v3406_v31, %v3472_v58 }
 0x16b   : > { %v1923_v8 = vadd.f32 %v1922_v18, %v1921_v12  ;;  %vm3667_vm5 = vcmp.lt.s32.totalorder %v3023_v4, %v2950_v22  ;;  %v1910_v38 = vmul.f32 %v1841_v11, %v1841_v11  ;;  %v1928_v28 = vsel %vm1707_vm8, %v1908_v7, 0.0 }
 0x16c   : > { %v1842_v17 = vsel %vm3667_vm5, %v1826_v25, 0.0  ;;  %v1829_v14 = vsub.f32 %v3425_v23, %v3472_v58  ;;  %v1843_v40 = vsel %vm1635_vm1, %v1827_v54, 0.0  ;;  %v1930_v42 = vsel %vm1707_vm8, %v1909_v20, 0.0 }
 0x16d   : > { %v1925_v30 = vadd.f32 %v1924_v45, %v1923_v8  ;;  %v1911_v26 = vmul.f32 %v1842_v17, %v1842_v17  ;;  %v1830_v31 = vsub.f32 %v3435_v5, %v3472_v58  ;;  %v1844_v4 = vsel %vm1636_vm15, %v1828_v35, 0.0 }
 0x16e   : > { %v1912_v46 = vmul.f32 %v1843_v40, %v1843_v40  ;;  %v1932_v1 = vsel %vm1707_vm8, %v1910_v38, 0.0  ;;  %v1831_v23 = vsub.f32 %v3444_v6, %v3472_v58  ;;  %v1845_v37 = vsel %vm1637_vm2, %v1829_v14, 0.0 }
 0x16f   : > { %v1927_v43 = vadd.f32 %v1926_v44, %v1925_v30  ;;  %v1913_v9 = vmul.f32 %v1844_v4, %v1844_v4  ;;  %v1934_v60 = vsel %vm1707_vm8, %v1911_v26, 0.0  ;;  %v1832_v5 = vsub.f32 %v3446_v34, %v3472_v58 }
 0x170   : > { %vm3668_vm6 = vcmp.lt.s32.totalorder %v3659_v0, %v2950_v22  ;;  %v1914_v27 = vmul.f32 %v1845_v37, %v1845_v37  ;;  %v1936_v62 = vsel %vm1707_vm8, %v1912_v46, 0.0  ;;  %v1833_v6 = vsub.f32 %v3457_v55, %v3472_v58 }
 0x171   : > { %v1929_v53 = vadd.f32 %v1928_v28, %v1927_v43  ;;  %v1846_v13 = vsel %vm3668_vm6, %v1830_v31, 0.0  ;;  %v1847_v59 = vsel %vm1639_vm0, %v1831_v23, 0.0  ;;  %v1938_v34 = vsel %vm1707_vm8, %v1913_v9, 0.0 }
 0x172   : > { %v1915_v16 = vmul.f32 %v1846_v13, %v1846_v13  ;;  %v1848_v0 = vsel %vm1640_vm4, %v1832_v5, 0.0  ;;  %v1916_v21 = vmul.f32 %v1847_v59, %v1847_v59  ;;  %v1940_v2 = vsel %vm1707_vm8, %v1914_v27, 0.0 }
 0x173   : > { %v1931_v10 = vadd.f32 %v1930_v42, %v1929_v53  ;;  %vm3669_vm7 = vcmp.lt.s32.totalorder %v3663_v24, %v2950_v22  ;;  %v1917_v58 = vmul.f32 %v1848_v0, %v1848_v0  ;;  %vm1959_vm0 = vcmask 1042432  }
 0x174   : > { %v1849_v39 = vsel %vm3669_vm7, %v1833_v6, 0.0  ;;  %v1942_v61 = vsel %vm1707_vm8, %v1915_v16, 0.0  ;;  %v1944_v32 = vsel %vm1707_vm8, %v1916_v21, 0.0  ;;  %vm1961_vm9 = vcmask 125952  }
 0x175   : > { %v1933_v15 = vadd.f32 %v1932_v1, %v1931_v10  ;;  %v1918_v41 = vmul.f32 %v1849_v39, %v1849_v39  ;;  %v1946_v19 = vsel %vm1707_vm8, %v1917_v58, 0.0 }
 0x177   : > { %v1935_v50 = vadd.f32 %v1934_v60, %v1933_v15  ;;  %v1948_v49 = vsel %vm1707_vm8, %v1918_v41, 0.0 }
 0x179   : > { %v1937_v36 = vadd.f32 %v1936_v62, %v1935_v50 }
 0x17b   : > { %v1939_v52 = vadd.f32 %v1938_v34, %v1937_v36 }
 0x17d   : > { %v1941_v55 = vadd.f32 %v1940_v2, %v1939_v52 }
 0x17f   : > { %v1943_v47 = vadd.f32 %v1942_v61, %v1941_v55 }
 0x181   : > { %v1945_v3 = vadd.f32 %v1944_v32, %v1943_v47 }
 0x183   : > { %v1947_v57 = vadd.f32 %v1946_v19, %v1945_v3 }
 0x185   : > { %v1949_v29 = vadd.f32 %v1948_v49, %v1947_v57 }
 0x187   : > { %v1950_v22 = vrot.slane %v1949_v29, 4 }
 0x189   : > { %v1951_v24 = vadd.f32 %v1950_v22, %v1949_v29 }
 0x18b   : > { %v1952_v56 = vrot.slane %v1951_v24, 2 }
 0x18d   : > { %v1953_v63 = vadd.f32 %v1952_v56, %v1951_v24 }
 0x18f   : > { %v1954_v12 = vrot.slane %v1953_v63, 1 }
 0x191   : > { %v1955_v33 = vadd.f32 %v1954_v12, %v1953_v63 }
 0x193   : > { %v1960_v18 = vsel %vm1959_vm0, %v3476_v48, %v1955_v33 }
 0x194   : > { %1962 = vst.msk [vmem:[%s296_s9] sm:$0xf] %vm1961_vm9, %v1960_v18 }
 0x195 PF: > { %s13_s16 = sadd.s32 1, %s2472_s16   ;;  %s3670_s12 = smov %s2464_s14 }
 0x196   : > { %p10_p10 = scmp.ge.s32.totalorder %s13_s16, 6   ;;  %s3671_s13 = smov %s2468_s15 }
 0x197   : > { %s3672_s14 = smov %s3675_s17  ;;  %s3673_s15 = smov %s3679_s18 }
 0x198   :  { %12 = sbr.rel (!%p10_p10) target bundleno = 3 (0x3), region = 71 }

</bundles_post_ra>
